<compile_context>
chip_gen: v6e
topology: v6e:2x2x1
jax: 0.10.0
libtpu: 0.0.40
codegen_flags: <defaults>
</compile_context>

<pallas_src>
import jax
import jax.numpy as jnp
from jax import lax
from jax.experimental import pallas as pl
from jax.experimental.pallas import tpu as pltpu


LATENT_DIM = 32
IMG_SHAPE = (28, 28)
HIDDEN = (128, 256, 512, 1024)
OUT_DIM = IMG_SHAPE[0] * IMG_SHAPE[1]          # 784
OUT_PAD = 896                                  # 7 * 128, lane-dense head
BN_EPS = 0.8
LRELU_SLOPE = 0.2
BN_TILE = 8                                    # rows per BatchNorm batch tile


def _leaky_relu(x):
    return jnp.where(x > 0, x, LRELU_SLOPE * x)


def _batch_norm(x, gamma, beta):
    # Training-mode BatchNorm1d: per-feature batch mean / biased variance.
    mean = jnp.mean(x, axis=0, keepdims=True)
    xc = x - mean
    var = jnp.mean(xc * xc, axis=0, keepdims=True)
    scale = gamma * lax.rsqrt(var + BN_EPS)
    return xc * scale + beta


def _bdot(h_f32, w_bf16):
    # Cast activations to bf16 at the MXU boundary, accumulate in f32.
    return jnp.dot(h_f32.astype(jnp.bfloat16), w_bf16,
                   preferred_element_type=jnp.float32)


def _qdot(h_f32, w_i8, col_scale_f32):
    # int8 weight -> bf16 (exact for |q| <= 127), per-column scale applied to
    # the f32 result (== scaling the weight columns).
    w_bf16 = w_i8.astype(jnp.float32).astype(jnp.bfloat16)
    acc = jnp.dot(h_f32.astype(jnp.bfloat16), w_bf16,
                  preferred_element_type=jnp.float32)
    return acc * col_scale_f32


def generator_kernel(z_ref,
                     w1_ref, b1_ref,
                     w2_ref, b2_ref, g2_ref, be2_ref,
                     w3_ref, b3_ref, g3_ref, be3_ref,
                     w4_hbm, s4_ref, b4_ref, g4_ref, be4_ref,
                     w5_hbm, s5_ref, b5_ref,
                     out_ref,
                     w4_buf, w5_buf, sem):
    i = pl.program_id(0)

    cp4 = pltpu.make_async_copy(w4_hbm, w4_buf, sem.at[0])
    cp5 = pltpu.make_async_copy(w5_hbm, w5_buf, sem.at[1])

    # Issue the two big int8 weight DMAs once (first batch tile only); they
    # overlap with blocks 1-3 below.  Scratch persists across grid steps.
    @pl.when(i == 0)
    def _():
        cp4.start()
        cp5.start()

    # Block 1: Linear(latent, 128) -> LeakyReLU (no norm)
    h = _bdot(z_ref[...], w1_ref[...]) + b1_ref[...]
    h = _leaky_relu(h)

    # Block 2: Linear(128, 256) -> BatchNorm1d -> LeakyReLU
    h = _bdot(h, w2_ref[...]) + b2_ref[...]
    h = _leaky_relu(_batch_norm(h, g2_ref[...], be2_ref[...]))

    # Block 3: Linear(256, 512) -> BatchNorm1d -> LeakyReLU
    h = _bdot(h, w3_ref[...]) + b3_ref[...]
    h = _leaky_relu(_batch_norm(h, g3_ref[...], be3_ref[...]))

    # Block 4: Linear(512, 1024) [int8 weight] -> BatchNorm1d -> LeakyReLU
    @pl.when(i == 0)
    def _():
        cp4.wait()
    h = _qdot(h, w4_buf[...], s4_ref[...]) + b4_ref[...]
    h = _leaky_relu(_batch_norm(h, g4_ref[...], be4_ref[...]))

    # Head: Linear(1024, 896-padded-784) [int8 weight] -> Tanh
    @pl.when(i == 0)
    def _():
        cp5.wait()
    y = _qdot(h, w5_buf[...], s5_ref[...]) + b5_ref[...]
    out_ref[...] = jnp.tanh(y)


def _quantize_cols(w):
    """Symmetric per-output-column int8 quantization; zero columns get scale 1."""
    amax = jnp.max(jnp.abs(w), axis=0, keepdims=True)
    scale = jnp.where(amax > 0, amax / 127.0, jnp.float32(1.0))
    q = jnp.clip(jnp.round(w / scale), -127, 127).astype(jnp.int8)
    return q, scale.astype(jnp.float32)


def init_params(key, latent_dim=LATENT_DIM):
    dims = (latent_dim,) + HIDDEN + (OUT_DIM,)
    keys = jax.random.split(key, 2 * (len(dims) - 1))
    raw = {}
    for li, (din, dout) in enumerate(zip(dims[:-1], dims[1:]), start=1):
        s = 1.0 / jnp.sqrt(jnp.float32(din))
        w = s * jax.random.normal(keys[2 * li - 2], (din, dout), jnp.float32)
        b = 0.01 * jax.random.normal(keys[2 * li - 1], (1, dout), jnp.float32)
        raw[li] = (w, b)

    params = {}
    # Blocks 1-3: bf16 weights, f32 biases.
    for li in (1, 2, 3):
        w, b = raw[li]
        params[f"w{li}"] = w.astype(jnp.bfloat16)
        params[f"b{li}"] = b
    # BatchNorm affine params (blocks 2-4), f32.
    for li in (2, 3, 4):
        dout = raw[li][0].shape[1]
        params[f"g{li}"] = jnp.ones((1, dout), jnp.float32)
        params[f"be{li}"] = jnp.zeros((1, dout), jnp.float32)
    # Block 4: int8 per-column quantized weight + f32 scale/bias.
    w4, b4 = raw[4]
    params["w4q"], params["s4"] = _quantize_cols(w4)
    params["b4"] = b4
    # Head: pad to 896 lanes (pad columns are exact zeros), then quantize.
    w5, b5 = raw[5]
    w5 = jnp.pad(w5, ((0, 0), (0, OUT_PAD - OUT_DIM)))
    b5 = jnp.pad(b5, ((0, 0), (0, OUT_PAD - OUT_DIM)))
    params["w5q"], params["s5"] = _quantize_cols(w5)
    params["b5"] = b5
    return params


def _resident(shape):
    """Full-array block, constant index_map -> VMEM-resident across the grid."""
    nd = len(shape)
    return pl.BlockSpec(tuple(shape), lambda i, _nd=nd: (0,) * _nd)


@jax.jit
def generator_forward(z, params):
    B = z.shape[0]
    assert B % BN_TILE == 0, "batch must be a multiple of BN_TILE (=8)"
    n_tiles = B // BN_TILE

    args = (
        z,
        params["w1"], params["b1"],
        params["w2"], params["b2"], params["g2"], params["be2"],
        params["w3"], params["b3"], params["g3"], params["be3"],
        params["w4q"], params["s4"], params["b4"], params["g4"], params["be4"],
        params["w5q"], params["s5"], params["b5"],
    )

    hbm = pl.BlockSpec(memory_space=pl.ANY)      # w4q / w5q: manual async DMA
    in_specs = [
        pl.BlockSpec((BN_TILE, LATENT_DIM), lambda i: (i, 0)),          # z
        _resident(params["w1"].shape), _resident(params["b1"].shape),
        _resident(params["w2"].shape), _resident(params["b2"].shape),
        _resident(params["g2"].shape), _resident(params["be2"].shape),
        _resident(params["w3"].shape), _resident(params["b3"].shape),
        _resident(params["g3"].shape), _resident(params["be3"].shape),
        hbm,
        _resident(params["s4"].shape), _resident(params["b4"].shape),
        _resident(params["g4"].shape), _resident(params["be4"].shape),
        hbm,
        _resident(params["s5"].shape), _resident(params["b5"].shape),
    ]
    out_specs = pl.BlockSpec((BN_TILE, OUT_PAD), lambda i: (i, 0))

    flat = pl.pallas_call(
        generator_kernel,
        out_shape=jax.ShapeDtypeStruct((B, OUT_PAD), jnp.float32),
        grid_spec=pltpu.PrefetchScalarGridSpec(
            num_scalar_prefetch=0,
            grid=(n_tiles,),
            in_specs=in_specs,
            out_specs=out_specs,
            scratch_shapes=[
                pltpu.VMEM((HIDDEN[2], HIDDEN[3]), jnp.int8),   # w4 buffer
                pltpu.VMEM((HIDDEN[3], OUT_PAD), jnp.int8),     # w5 buffer
                pltpu.SemaphoreType.DMA((2,)),
            ]),
        compiler_params=pltpu.CompilerParams(
            # "arbitrary": the issue-DMA-once guard requires sequential tiles.
            dimension_semantics=("arbitrary",)),
    )(*args)
    return flat[:, :OUT_DIM].reshape(B, *IMG_SHAPE)


def _reference_tile(z, p):
    """Pure-JAX reference for one 8-row tile, identical numerical recipe."""
    f32, bf16 = jnp.float32, jnp.bfloat16

    def lrelu(x):
        return jnp.where(x > 0, x, LRELU_SLOPE * x)

    def bn(x, g, b):
        m = jnp.mean(x, axis=0, keepdims=True)
        xc = x - m
        v = jnp.mean(xc * xc, axis=0, keepdims=True)
        return xc * (g * lax.rsqrt(v + BN_EPS)) + b

    def dot(h, w):
        return jnp.dot(h.astype(bf16), w, preferred_element_type=f32)

    def qdot(h, q, s):
        return dot(h, q.astype(bf16)) * s

    h = lrelu(dot(z, p["w1"]) + p["b1"])
    h = lrelu(bn(dot(h, p["w2"]) + p["b2"], p["g2"], p["be2"]))
    h = lrelu(bn(dot(h, p["w3"]) + p["b3"], p["g3"], p["be3"]))
    h = lrelu(bn(qdot(h, p["w4q"], p["s4"]) + p["b4"], p["g4"], p["be4"]))
    y = jnp.tanh(qdot(h, p["w5q"], p["s5"]) + p["b5"])
    return y[:, :OUT_DIM]


def generator_reference(z, params):
    tiles = [_reference_tile(z[i:i + BN_TILE], params)
             for i in range(0, z.shape[0], BN_TILE)]
    return jnp.concatenate(tiles, axis=0).reshape(z.shape[0], *IMG_SHAPE)


if __name__ == "__main__":
    key = jax.random.PRNGKey(0)
    pkey, zkey = jax.random.split(key)
    params = init_params(pkey)

    # Two BatchNorm tiles of 8 rows: exercises the batch-tile grid with
    # VMEM-resident weights and the issue-DMA-once guard.
    B = 2 * BN_TILE
    z = jax.random.normal(zkey, (B, LATENT_DIM), jnp.float32)

    img = jax.block_until_ready(generator_forward(z, params))
    assert img.shape == (B, *IMG_SHAPE), img.shape

    ref = generator_reference(z, params)
    if not jnp.allclose(img, ref, atol=2e-3, rtol=2e-3):
        err = float(jnp.max(jnp.abs(img - ref)))
        raise AssertionError(f"Pallas output mismatch vs JAX reference (max abs err {err})")

    print("KERNEL_OK")
</pallas_src>

<mosaic_0001>
module attributes {stable_mosaic.version = 11 : i64} {
  func.func @generator_kernel(%arg0: i32, %arg1: memref<8x32xf32, #tpu.memory_space<vmem>>, %arg2: memref<32x128xbf16, #tpu.memory_space<vmem>>, %arg3: memref<1x128xf32, #tpu.memory_space<vmem>>, %arg4: memref<128x256xbf16, #tpu.memory_space<vmem>>, %arg5: memref<1x256xf32, #tpu.memory_space<vmem>>, %arg6: memref<1x256xf32, #tpu.memory_space<vmem>>, %arg7: memref<1x256xf32, #tpu.memory_space<vmem>>, %arg8: memref<256x512xbf16, #tpu.memory_space<vmem>>, %arg9: memref<1x512xf32, #tpu.memory_space<vmem>>, %arg10: memref<1x512xf32, #tpu.memory_space<vmem>>, %arg11: memref<1x512xf32, #tpu.memory_space<vmem>>, %arg12: memref<512x1024xi8, #tpu.memory_space<any>>, %arg13: memref<1x1024xf32, #tpu.memory_space<vmem>>, %arg14: memref<1x1024xf32, #tpu.memory_space<vmem>>, %arg15: memref<1x1024xf32, #tpu.memory_space<vmem>>, %arg16: memref<1x1024xf32, #tpu.memory_space<vmem>>, %arg17: memref<1024x896xi8, #tpu.memory_space<any>>, %arg18: memref<1x896xf32, #tpu.memory_space<vmem>>, %arg19: memref<1x896xf32, #tpu.memory_space<vmem>>, %arg20: memref<8x896xf32, #tpu.memory_space<vmem>>, %arg21: memref<512x1024xi8, #tpu.memory_space<vmem>>, %arg22: memref<1024x896xi8, #tpu.memory_space<vmem>>, %arg23: memref<2x!tpu.dma_semaphore, #tpu.memory_space<semaphore_mem>>) attributes {dimension_semantics = [#tpu.dimension_semantics<arbitrary>], iteration_bounds = array<i64: 2>, scalar_prefetch = 0 : i64, scratch_operands = 3 : i64, tpu.core_type = #tpu.core_type<tc>, window_params = [{transform_indices = @transform_0, window_bounds = array<i64: 8, 32>}, {pipeline_mode = #tpu.pipeline_mode<synchronous>, transform_indices = @transform_1, window_bounds = array<i64: 32, 128>}, {pipeline_mode = #tpu.pipeline_mode<synchronous>, transform_indices = @transform_2, window_bounds = array<i64: 1, 128>}, {pipeline_mode = #tpu.pipeline_mode<synchronous>, transform_indices = @transform_3, window_bounds = array<i64: 128, 256>}, {pipeline_mode = #tpu.pipeline_mode<synchronous>, transform_indices = @transform_4, window_bounds = array<i64: 1, 256>}, {pipeline_mode = #tpu.pipeline_mode<synchronous>, transform_indices = @transform_5, window_bounds = array<i64: 1, 256>}, {pipeline_mode = #tpu.pipeline_mode<synchronous>, transform_indices = @transform_6, window_bounds = array<i64: 1, 256>}, {pipeline_mode = #tpu.pipeline_mode<synchronous>, transform_indices = @transform_7, window_bounds = array<i64: 256, 512>}, {pipeline_mode = #tpu.pipeline_mode<synchronous>, transform_indices = @transform_8, window_bounds = array<i64: 1, 512>}, {pipeline_mode = #tpu.pipeline_mode<synchronous>, transform_indices = @transform_9, window_bounds = array<i64: 1, 512>}, {pipeline_mode = #tpu.pipeline_mode<synchronous>, transform_indices = @transform_10, window_bounds = array<i64: 1, 512>}, {}, {pipeline_mode = #tpu.pipeline_mode<synchronous>, transform_indices = @transform_12, window_bounds = array<i64: 1, 1024>}, {pipeline_mode = #tpu.pipeline_mode<synchronous>, transform_indices = @transform_13, window_bounds = array<i64: 1, 1024>}, {pipeline_mode = #tpu.pipeline_mode<synchronous>, transform_indices = @transform_14, window_bounds = array<i64: 1, 1024>}, {pipeline_mode = #tpu.pipeline_mode<synchronous>, transform_indices = @transform_15, window_bounds = array<i64: 1, 1024>}, {}, {pipeline_mode = #tpu.pipeline_mode<synchronous>, transform_indices = @transform_17, window_bounds = array<i64: 1, 896>}, {pipeline_mode = #tpu.pipeline_mode<synchronous>, transform_indices = @transform_18, window_bounds = array<i64: 1, 896>}, {transform_indices = @transform_19, window_bounds = array<i64: 8, 896>}]} {
    %c0_i32 = arith.constant 0 : i32
    %0 = arith.cmpi eq, %arg0, %c0_i32 : i32
    %1 = arith.extui %0 : i1 to i32
    %c0_i32_0 = arith.constant 0 : i32
    %c1_i32 = arith.constant 1 : i32
    %c0_i32_1 = arith.constant 0 : i32
    %2 = arith.cmpi ne, %1, %c0_i32_1 : i32
    scf.if %2 {
      %135 = tpu.memref_slice %arg23[%c0_i32_0] : memref<2x!tpu.dma_semaphore, #tpu.memory_space<semaphore_mem>> -> memref<1x!tpu.dma_semaphore, #tpu.memory_space<semaphore_mem>>
      %136 = tpu.memref_squeeze %135 : memref<1x!tpu.dma_semaphore, #tpu.memory_space<semaphore_mem>> -> memref<!tpu.dma_semaphore, #tpu.memory_space<semaphore_mem>>
      tpu.enqueue_dma source(%arg12 : memref<512x1024xi8, #tpu.memory_space<any>>) target(%arg21 : memref<512x1024xi8, #tpu.memory_space<vmem>>) target_semaphore(%136 : memref<!tpu.dma_semaphore, #tpu.memory_space<semaphore_mem>>)
      %137 = tpu.memref_slice %arg23[%c1_i32] : memref<2x!tpu.dma_semaphore, #tpu.memory_space<semaphore_mem>> -> memref<1x!tpu.dma_semaphore, #tpu.memory_space<semaphore_mem>>
      %138 = tpu.memref_squeeze %137 : memref<1x!tpu.dma_semaphore, #tpu.memory_space<semaphore_mem>> -> memref<!tpu.dma_semaphore, #tpu.memory_space<semaphore_mem>>
      tpu.enqueue_dma source(%arg17 : memref<1024x896xi8, #tpu.memory_space<any>>) target(%arg22 : memref<1024x896xi8, #tpu.memory_space<vmem>>) target_semaphore(%138 : memref<!tpu.dma_semaphore, #tpu.memory_space<semaphore_mem>>)
    } else {
    }
    %c0 = arith.constant 0 : index
    %c0_2 = arith.constant 0 : index
    %3 = vector.load %arg1[%c0, %c0_2] : memref<8x32xf32, #tpu.memory_space<vmem>>, vector<8x32xf32>
    %c0_3 = arith.constant 0 : index
    %c0_4 = arith.constant 0 : index
    %4 = vector.load %arg2[%c0_3, %c0_4] : memref<32x128xbf16, #tpu.memory_space<vmem>>, vector<32x128xbf16>
    %5 = arith.truncf %3 : vector<8x32xf32> to vector<8x32xbf16>
    %cst = arith.constant dense<0.000000e+00> : vector<8x128xf32>
    %6 = tpu.matmul %5, %4, %cst {dimension_numbers = #tpu.dot_dimension_numbers<[1], [0], [0], [1], [0, 0, 1, 1], [], []>} : vector<8x32xbf16>, vector<32x128xbf16>, vector<8x128xf32> -> vector<8x128xf32>
    %c0_5 = arith.constant 0 : index
    %c0_6 = arith.constant 0 : index
    %7 = vector.load %arg3[%c0_5, %c0_6] : memref<1x128xf32, #tpu.memory_space<vmem>>, vector<1x128xf32>
    %8 = vector.broadcast %7 : vector<1x128xf32> to vector<8x128xf32>
    %9 = arith.addf %6, %8 : vector<8x128xf32>
    %cst_7 = arith.constant 0.000000e+00 : f32
    %10 = vector.broadcast %cst_7 : f32 to vector<8x128xf32>
    %11 = arith.cmpf ogt, %9, %10 : vector<8x128xf32>
    %cst_8 = arith.constant 2.000000e-01 : f32
    %12 = vector.broadcast %cst_8 : f32 to vector<8x128xf32>
    %13 = arith.mulf %12, %9 : vector<8x128xf32>
    %14 = arith.select %11, %9, %13 : vector<8x128xi1>, vector<8x128xf32>
    %c0_9 = arith.constant 0 : index
    %c0_10 = arith.constant 0 : index
    %15 = vector.load %arg4[%c0_9, %c0_10] : memref<128x256xbf16, #tpu.memory_space<vmem>>, vector<128x256xbf16>
    %16 = arith.truncf %14 : vector<8x128xf32> to vector<8x128xbf16>
    %cst_11 = arith.constant dense<0.000000e+00> : vector<8x256xf32>
    %17 = tpu.matmul %16, %15, %cst_11 {dimension_numbers = #tpu.dot_dimension_numbers<[1], [0], [0], [1], [0, 0, 1, 1], [], []>} : vector<8x128xbf16>, vector<128x256xbf16>, vector<8x256xf32> -> vector<8x256xf32>
    %c0_12 = arith.constant 0 : index
    %c0_13 = arith.constant 0 : index
    %18 = vector.load %arg5[%c0_12, %c0_13] : memref<1x256xf32, #tpu.memory_space<vmem>>, vector<1x256xf32>
    %19 = vector.broadcast %18 : vector<1x256xf32> to vector<8x256xf32>
    %20 = arith.addf %17, %19 : vector<8x256xf32>
    %c0_14 = arith.constant 0 : index
    %c0_15 = arith.constant 0 : index
    %21 = vector.load %arg6[%c0_14, %c0_15] : memref<1x256xf32, #tpu.memory_space<vmem>>, vector<1x256xf32>
    %c0_16 = arith.constant 0 : index
    %c0_17 = arith.constant 0 : index
    %22 = vector.load %arg7[%c0_16, %c0_17] : memref<1x256xf32, #tpu.memory_space<vmem>>, vector<1x256xf32>
    %cst_18 = arith.constant dense<0.000000e+00> : vector<256xf32>
    %23 = vector.multi_reduction <add>, %20, %cst_18 [0] : vector<8x256xf32> to vector<256xf32>
    %24 = vector.shape_cast %23 : vector<256xf32> to vector<1x256xf32>
    %cst_19 = arith.constant 8.000000e+00 : f32
    %25 = vector.broadcast %cst_19 : f32 to vector<1x256xf32>
    %26 = arith.divf %24, %25 : vector<1x256xf32>
    %27 = vector.broadcast %26 : vector<1x256xf32> to vector<8x256xf32>
    %28 = arith.subf %20, %27 : vector<8x256xf32>
    %29 = arith.mulf %28, %28 : vector<8x256xf32>
    %cst_20 = arith.constant dense<0.000000e+00> : vector<256xf32>
    %30 = vector.multi_reduction <add>, %29, %cst_20 [0] : vector<8x256xf32> to vector<256xf32>
    %31 = vector.shape_cast %30 : vector<256xf32> to vector<1x256xf32>
    %cst_21 = arith.constant 8.000000e+00 : f32
    %32 = vector.broadcast %cst_21 : f32 to vector<1x256xf32>
    %33 = arith.divf %31, %32 : vector<1x256xf32>
    %cst_22 = arith.constant 8.000000e-01 : f32
    %34 = vector.broadcast %cst_22 : f32 to vector<1x256xf32>
    %35 = arith.addf %33, %34 : vector<1x256xf32>
    %36 = math.rsqrt %35 : vector<1x256xf32>
    %37 = arith.mulf %21, %36 : vector<1x256xf32>
    %38 = vector.broadcast %37 : vector<1x256xf32> to vector<8x256xf32>
    %39 = arith.mulf %28, %38 : vector<8x256xf32>
    %40 = vector.broadcast %22 : vector<1x256xf32> to vector<8x256xf32>
    %41 = arith.addf %39, %40 : vector<8x256xf32>
    %cst_23 = arith.constant 0.000000e+00 : f32
    %42 = vector.broadcast %cst_23 : f32 to vector<8x256xf32>
    %43 = arith.cmpf ogt, %41, %42 : vector<8x256xf32>
    %cst_24 = arith.constant 2.000000e-01 : f32
    %44 = vector.broadcast %cst_24 : f32 to vector<8x256xf32>
    %45 = arith.mulf %44, %41 : vector<8x256xf32>
    %46 = arith.select %43, %41, %45 : vector<8x256xi1>, vector<8x256xf32>
    %c0_25 = arith.constant 0 : index
    %c0_26 = arith.constant 0 : index
    %47 = vector.load %arg8[%c0_25, %c0_26] : memref<256x512xbf16, #tpu.memory_space<vmem>>, vector<256x512xbf16>
    %48 = arith.truncf %46 : vector<8x256xf32> to vector<8x256xbf16>
    %cst_27 = arith.constant dense<0.000000e+00> : vector<8x512xf32>
    %49 = tpu.matmul %48, %47, %cst_27 {dimension_numbers = #tpu.dot_dimension_numbers<[1], [0], [0], [1], [0, 0, 1, 1], [], []>} : vector<8x256xbf16>, vector<256x512xbf16>, vector<8x512xf32> -> vector<8x512xf32>
    %c0_28 = arith.constant 0 : index
    %c0_29 = arith.constant 0 : index
    %50 = vector.load %arg9[%c0_28, %c0_29] : memref<1x512xf32, #tpu.memory_space<vmem>>, vector<1x512xf32>
    %51 = vector.broadcast %50 : vector<1x512xf32> to vector<8x512xf32>
    %52 = arith.addf %49, %51 : vector<8x512xf32>
    %c0_30 = arith.constant 0 : index
    %c0_31 = arith.constant 0 : index
    %53 = vector.load %arg10[%c0_30, %c0_31] : memref<1x512xf32, #tpu.memory_space<vmem>>, vector<1x512xf32>
    %c0_32 = arith.constant 0 : index
    %c0_33 = arith.constant 0 : index
    %54 = vector.load %arg11[%c0_32, %c0_33] : memref<1x512xf32, #tpu.memory_space<vmem>>, vector<1x512xf32>
    %cst_34 = arith.constant dense<0.000000e+00> : vector<512xf32>
    %55 = vector.multi_reduction <add>, %52, %cst_34 [0] : vector<8x512xf32> to vector<512xf32>
    %56 = vector.shape_cast %55 : vector<512xf32> to vector<1x512xf32>
    %cst_35 = arith.constant 8.000000e+00 : f32
    %57 = vector.broadcast %cst_35 : f32 to vector<1x512xf32>
    %58 = arith.divf %56, %57 : vector<1x512xf32>
    %59 = vector.broadcast %58 : vector<1x512xf32> to vector<8x512xf32>
    %60 = arith.subf %52, %59 : vector<8x512xf32>
    %61 = arith.mulf %60, %60 : vector<8x512xf32>
    %cst_36 = arith.constant dense<0.000000e+00> : vector<512xf32>
    %62 = vector.multi_reduction <add>, %61, %cst_36 [0] : vector<8x512xf32> to vector<512xf32>
    %63 = vector.shape_cast %62 : vector<512xf32> to vector<1x512xf32>
    %cst_37 = arith.constant 8.000000e+00 : f32
    %64 = vector.broadcast %cst_37 : f32 to vector<1x512xf32>
    %65 = arith.divf %63, %64 : vector<1x512xf32>
    %cst_38 = arith.constant 8.000000e-01 : f32
    %66 = vector.broadcast %cst_38 : f32 to vector<1x512xf32>
    %67 = arith.addf %65, %66 : vector<1x512xf32>
    %68 = math.rsqrt %67 : vector<1x512xf32>
    %69 = arith.mulf %53, %68 : vector<1x512xf32>
    %70 = vector.broadcast %69 : vector<1x512xf32> to vector<8x512xf32>
    %71 = arith.mulf %60, %70 : vector<8x512xf32>
    %72 = vector.broadcast %54 : vector<1x512xf32> to vector<8x512xf32>
    %73 = arith.addf %71, %72 : vector<8x512xf32>
    %cst_39 = arith.constant 0.000000e+00 : f32
    %74 = vector.broadcast %cst_39 : f32 to vector<8x512xf32>
    %75 = arith.cmpf ogt, %73, %74 : vector<8x512xf32>
    %cst_40 = arith.constant 2.000000e-01 : f32
    %76 = vector.broadcast %cst_40 : f32 to vector<8x512xf32>
    %77 = arith.mulf %76, %73 : vector<8x512xf32>
    %78 = arith.select %75, %73, %77 : vector<8x512xi1>, vector<8x512xf32>
    %c0_i32_41 = arith.constant 0 : i32
    %79 = arith.cmpi eq, %arg0, %c0_i32_41 : i32
    %80 = arith.extui %79 : i1 to i32
    %c0_i32_42 = arith.constant 0 : i32
    %c0_i32_43 = arith.constant 0 : i32
    %81 = arith.cmpi ne, %80, %c0_i32_43 : i32
    scf.if %81 {
      %135 = tpu.memref_slice %arg23[%c0_i32_42] : memref<2x!tpu.dma_semaphore, #tpu.memory_space<semaphore_mem>> -> memref<1x!tpu.dma_semaphore, #tpu.memory_space<semaphore_mem>>
      %136 = tpu.memref_squeeze %135 : memref<1x!tpu.dma_semaphore, #tpu.memory_space<semaphore_mem>> -> memref<!tpu.dma_semaphore, #tpu.memory_space<semaphore_mem>>
      tpu.wait_dma2 semaphore(%136 : memref<!tpu.dma_semaphore, #tpu.memory_space<semaphore_mem>>) src(%arg12 : memref<512x1024xi8, #tpu.memory_space<any>>) dst(%arg21 : memref<512x1024xi8, #tpu.memory_space<vmem>>)
    } else {
    }
    %c0_44 = arith.constant 0 : index
    %c0_45 = arith.constant 0 : index
    %82 = vector.load %arg21[%c0_44, %c0_45] : memref<512x1024xi8, #tpu.memory_space<vmem>>, vector<512x1024xi8>
    %c0_46 = arith.constant 0 : index
    %c0_47 = arith.constant 0 : index
    %83 = vector.load %arg13[%c0_46, %c0_47] : memref<1x1024xf32, #tpu.memory_space<vmem>>, vector<1x1024xf32>
    %84 = arith.sitofp %82 : vector<512x1024xi8> to vector<512x1024xf32>
    %85 = arith.truncf %84 : vector<512x1024xf32> to vector<512x1024xbf16>
    %86 = arith.truncf %78 : vector<8x512xf32> to vector<8x512xbf16>
    %cst_48 = arith.constant dense<0.000000e+00> : vector<8x1024xf32>
    %87 = tpu.matmul %86, %85, %cst_48 {dimension_numbers = #tpu.dot_dimension_numbers<[1], [0], [0], [1], [0, 0, 1, 1], [], []>} : vector<8x512xbf16>, vector<512x1024xbf16>, vector<8x1024xf32> -> vector<8x1024xf32>
    %88 = vector.broadcast %83 : vector<1x1024xf32> to vector<8x1024xf32>
    %89 = arith.mulf %87, %88 : vector<8x1024xf32>
    %c0_49 = arith.constant 0 : index
    %c0_50 = arith.constant 0 : index
    %90 = vector.load %arg14[%c0_49, %c0_50] : memref<1x1024xf32, #tpu.memory_space<vmem>>, vector<1x1024xf32>
    %91 = vector.broadcast %90 : vector<1x1024xf32> to vector<8x1024xf32>
    %92 = arith.addf %89, %91 : vector<8x1024xf32>
    %c0_51 = arith.constant 0 : index
    %c0_52 = arith.constant 0 : index
    %93 = vector.load %arg15[%c0_51, %c0_52] : memref<1x1024xf32, #tpu.memory_space<vmem>>, vector<1x1024xf32>
    %c0_53 = arith.constant 0 : index
    %c0_54 = arith.constant 0 : index
    %94 = vector.load %arg16[%c0_53, %c0_54] : memref<1x1024xf32, #tpu.memory_space<vmem>>, vector<1x1024xf32>
    %cst_55 = arith.constant dense<0.000000e+00> : vector<1024xf32>
    %95 = vector.multi_reduction <add>, %92, %cst_55 [0] : vector<8x1024xf32> to vector<1024xf32>
    %96 = vector.shape_cast %95 : vector<1024xf32> to vector<1x1024xf32>
    %cst_56 = arith.constant 8.000000e+00 : f32
    %97 = vector.broadcast %cst_56 : f32 to vector<1x1024xf32>
    %98 = arith.divf %96, %97 : vector<1x1024xf32>
    %99 = vector.broadcast %98 : vector<1x1024xf32> to vector<8x1024xf32>
    %100 = arith.subf %92, %99 : vector<8x1024xf32>
    %101 = arith.mulf %100, %100 : vector<8x1024xf32>
    %cst_57 = arith.constant dense<0.000000e+00> : vector<1024xf32>
    %102 = vector.multi_reduction <add>, %101, %cst_57 [0] : vector<8x1024xf32> to vector<1024xf32>
    %103 = vector.shape_cast %102 : vector<1024xf32> to vector<1x1024xf32>
    %cst_58 = arith.constant 8.000000e+00 : f32
    %104 = vector.broadcast %cst_58 : f32 to vector<1x1024xf32>
    %105 = arith.divf %103, %104 : vector<1x1024xf32>
    %cst_59 = arith.constant 8.000000e-01 : f32
    %106 = vector.broadcast %cst_59 : f32 to vector<1x1024xf32>
    %107 = arith.addf %105, %106 : vector<1x1024xf32>
    %108 = math.rsqrt %107 : vector<1x1024xf32>
    %109 = arith.mulf %93, %108 : vector<1x1024xf32>
    %110 = vector.broadcast %109 : vector<1x1024xf32> to vector<8x1024xf32>
    %111 = arith.mulf %100, %110 : vector<8x1024xf32>
    %112 = vector.broadcast %94 : vector<1x1024xf32> to vector<8x1024xf32>
    %113 = arith.addf %111, %112 : vector<8x1024xf32>
    %cst_60 = arith.constant 0.000000e+00 : f32
    %114 = vector.broadcast %cst_60 : f32 to vector<8x1024xf32>
    %115 = arith.cmpf ogt, %113, %114 : vector<8x1024xf32>
    %cst_61 = arith.constant 2.000000e-01 : f32
    %116 = vector.broadcast %cst_61 : f32 to vector<8x1024xf32>
    %117 = arith.mulf %116, %113 : vector<8x1024xf32>
    %118 = arith.select %115, %113, %117 : vector<8x1024xi1>, vector<8x1024xf32>
    %c0_i32_62 = arith.constant 0 : i32
    %119 = arith.cmpi eq, %arg0, %c0_i32_62 : i32
    %120 = arith.extui %119 : i1 to i32
    %c1_i32_63 = arith.constant 1 : i32
    %c0_i32_64 = arith.constant 0 : i32
    %121 = arith.cmpi ne, %120, %c0_i32_64 : i32
    scf.if %121 {
      %135 = tpu.memref_slice %arg23[%c1_i32_63] : memref<2x!tpu.dma_semaphore, #tpu.memory_space<semaphore_mem>> -> memref<1x!tpu.dma_semaphore, #tpu.memory_space<semaphore_mem>>
      %136 = tpu.memref_squeeze %135 : memref<1x!tpu.dma_semaphore, #tpu.memory_space<semaphore_mem>> -> memref<!tpu.dma_semaphore, #tpu.memory_space<semaphore_mem>>
      tpu.wait_dma2 semaphore(%136 : memref<!tpu.dma_semaphore, #tpu.memory_space<semaphore_mem>>) src(%arg17 : memref<1024x896xi8, #tpu.memory_space<any>>) dst(%arg22 : memref<1024x896xi8, #tpu.memory_space<vmem>>)
    } else {
    }
    %c0_65 = arith.constant 0 : index
    %c0_66 = arith.constant 0 : index
    %122 = vector.load %arg22[%c0_65, %c0_66] : memref<1024x896xi8, #tpu.memory_space<vmem>>, vector<1024x896xi8>
    %c0_67 = arith.constant 0 : index
    %c0_68 = arith.constant 0 : index
    %123 = vector.load %arg18[%c0_67, %c0_68] : memref<1x896xf32, #tpu.memory_space<vmem>>, vector<1x896xf32>
    %124 = arith.sitofp %122 : vector<1024x896xi8> to vector<1024x896xf32>
    %125 = arith.truncf %124 : vector<1024x896xf32> to vector<1024x896xbf16>
    %126 = arith.truncf %118 : vector<8x1024xf32> to vector<8x1024xbf16>
    %cst_69 = arith.constant dense<0.000000e+00> : vector<8x896xf32>
    %127 = tpu.matmul %126, %125, %cst_69 {dimension_numbers = #tpu.dot_dimension_numbers<[1], [0], [0], [1], [0, 0, 1, 1], [], []>} : vector<8x1024xbf16>, vector<1024x896xbf16>, vector<8x896xf32> -> vector<8x896xf32>
    %128 = vector.broadcast %123 : vector<1x896xf32> to vector<8x896xf32>
    %129 = arith.mulf %127, %128 : vector<8x896xf32>
    %c0_70 = arith.constant 0 : index
    %c0_71 = arith.constant 0 : index
    %130 = vector.load %arg19[%c0_70, %c0_71] : memref<1x896xf32, #tpu.memory_space<vmem>>, vector<1x896xf32>
    %131 = vector.broadcast %130 : vector<1x896xf32> to vector<8x896xf32>
    %132 = arith.addf %129, %131 : vector<8x896xf32>
    %133 = math.tanh %132 : vector<8x896xf32>
    %c0_72 = arith.constant 0 : index
    %c0_73 = arith.constant 0 : index
    %134 = vector.load %arg20[%c0_72, %c0_73] : memref<8x896xf32, #tpu.memory_space<vmem>>, vector<8x896xf32>
    tpu.vector_store %arg20[%c0_72, %c0_73], %133 {strides = array<i32>} : memref<8x896xf32, #tpu.memory_space<vmem>>, vector<8x896xf32>,
    return
  }
  func.func @transform_0(%arg0: i32) -> (i32, i32) {
    %c0_i32 = arith.constant 0 : i32
    %c0_i32_0 = arith.constant 0 : i32
    return %arg0, %c0_i32 : i32, i32
  }
  func.func @transform_1(%arg0: i32) -> (i32, i32) {
    %c0_i32 = arith.constant 0 : i32
    %c0_i32_0 = arith.constant 0 : i32
    %c0_i32_1 = arith.constant 0 : i32
    return %c0_i32, %c0_i32_0 : i32, i32
  }
  func.func @transform_2(%arg0: i32) -> (i32, i32) {
    %c0_i32 = arith.constant 0 : i32
    %c0_i32_0 = arith.constant 0 : i32
    %c0_i32_1 = arith.constant 0 : i32
    return %c0_i32, %c0_i32_0 : i32, i32
  }
  func.func @transform_3(%arg0: i32) -> (i32, i32) {
    %c0_i32 = arith.constant 0 : i32
    %c0_i32_0 = arith.constant 0 : i32
    %c0_i32_1 = arith.constant 0 : i32
    return %c0_i32, %c0_i32_0 : i32, i32
  }
  func.func @transform_4(%arg0: i32) -> (i32, i32) {
    %c0_i32 = arith.constant 0 : i32
    %c0_i32_0 = arith.constant 0 : i32
    %c0_i32_1 = arith.constant 0 : i32
    return %c0_i32, %c0_i32_0 : i32, i32
  }
  func.func @transform_5(%arg0: i32) -> (i32, i32) {
    %c0_i32 = arith.constant 0 : i32
    %c0_i32_0 = arith.constant 0 : i32
    %c0_i32_1 = arith.constant 0 : i32
    return %c0_i32, %c0_i32_0 : i32, i32
  }
  func.func @transform_6(%arg0: i32) -> (i32, i32) {
    %c0_i32 = arith.constant 0 : i32
    %c0_i32_0 = arith.constant 0 : i32
    %c0_i32_1 = arith.constant 0 : i32
    return %c0_i32, %c0_i32_0 : i32, i32
  }
  func.func @transform_7(%arg0: i32) -> (i32, i32) {
    %c0_i32 = arith.constant 0 : i32
    %c0_i32_0 = arith.constant 0 : i32
    %c0_i32_1 = arith.constant 0 : i32
    return %c0_i32, %c0_i32_0 : i32, i32
  }
  func.func @transform_8(%arg0: i32) -> (i32, i32) {
    %c0_i32 = arith.constant 0 : i32
    %c0_i32_0 = arith.constant 0 : i32
    %c0_i32_1 = arith.constant 0 : i32
    return %c0_i32, %c0_i32_0 : i32, i32
  }
  func.func @transform_9(%arg0: i32) -> (i32, i32) {
    %c0_i32 = arith.constant 0 : i32
    %c0_i32_0 = arith.constant 0 : i32
    %c0_i32_1 = arith.constant 0 : i32
    return %c0_i32, %c0_i32_0 : i32, i32
  }
  func.func @transform_10(%arg0: i32) -> (i32, i32) {
    %c0_i32 = arith.constant 0 : i32
    %c0_i32_0 = arith.constant 0 : i32
    %c0_i32_1 = arith.constant 0 : i32
    return %c0_i32, %c0_i32_0 : i32, i32
  }
  func.func @transform_12(%arg0: i32) -> (i32, i32) {
    %c0_i32 = arith.constant 0 : i32
    %c0_i32_0 = arith.constant 0 : i32
    %c0_i32_1 = arith.constant 0 : i32
    return %c0_i32, %c0_i32_0 : i32, i32
  }
  func.func @transform_13(%arg0: i32) -> (i32, i32) {
    %c0_i32 = arith.constant 0 : i32
    %c0_i32_0 = arith.constant 0 : i32
    %c0_i32_1 = arith.constant 0 : i32
    return %c0_i32, %c0_i32_0 : i32, i32
  }
  func.func @transform_14(%arg0: i32) -> (i32, i32) {
    %c0_i32 = arith.constant 0 : i32
    %c0_i32_0 = arith.constant 0 : i32
    %c0_i32_1 = arith.constant 0 : i32
    return %c0_i32, %c0_i32_0 : i32, i32
  }
  func.func @transform_15(%arg0: i32) -> (i32, i32) {
    %c0_i32 = arith.constant 0 : i32
    %c0_i32_0 = arith.constant 0 : i32
    %c0_i32_1 = arith.constant 0 : i32
    return %c0_i32, %c0_i32_0 : i32, i32
  }
  func.func @transform_17(%arg0: i32) -> (i32, i32) {
    %c0_i32 = arith.constant 0 : i32
    %c0_i32_0 = arith.constant 0 : i32
    %c0_i32_1 = arith.constant 0 : i32
    return %c0_i32, %c0_i32_0 : i32, i32
  }
  func.func @transform_18(%arg0: i32) -> (i32, i32) {
    %c0_i32 = arith.constant 0 : i32
    %c0_i32_0 = arith.constant 0 : i32
    %c0_i32_1 = arith.constant 0 : i32
    return %c0_i32, %c0_i32_0 : i32, i32
  }
  func.func @transform_19(%arg0: i32) -> (i32, i32) {
    %c0_i32 = arith.constant 0 : i32
    %c0_i32_0 = arith.constant 0 : i32
    return %arg0, %c0_i32 : i32, i32
  }
}

</mosaic_0001>

<bundles_post_ra>
// kernel: generator_forward.1
= control target key start
LH: loop header
LB: loop body
LE: loop exit
PB: predicated region body
PF: predicated region fallthrough
CT: control target
= control target key end

     0   :  { %s6335_s0 = inlined_call_operand.hbm [shape: f32[16,32], index: 0, kind: input, shape index: {}]   ;;  %s6336_s1 = inlined_call_operand.vmem [shape: bf16[32,128], index: 1, kind: input, shape index: {}]   ;;  %s6337_s2 = inlined_call_operand.vmem [shape: f32[1,128], index: 2, kind: input, shape index: {}]   ;;  %s6338_s3 = inlined_call_operand.hbm [shape: bf16[128,256], index: 3, kind: input, shape index: {}]   ;;  %s6339_s4 = inlined_call_operand.hbm [shape: f32[1,256], index: 4, kind: input, shape index: {}]   ;;  %s6340_s5 = inlined_call_operand.hbm [shape: f32[1,256], index: 5, kind: input, shape index: {}]   ;;  %s6341_s6 = inlined_call_operand.hbm [shape: f32[1,256], index: 6, kind: input, shape index: {}]   ;;  %s6342_s7 = inlined_call_operand.hbm [shape: bf16[256,512], index: 7, kind: input, shape index: {}]   ;;  %s6343_s8 = inlined_call_operand.hbm [shape: f32[1,512], index: 8, kind: input, shape index: {}]   ;;  %s6344_s9 = inlined_call_operand.hbm [shape: f32[1,512], index: 9, kind: input, shape index: {}]   ;;  %s6345_s10 = inlined_call_operand.hbm [shape: f32[1,512], index: 10, kind: input, shape index: {}]   ;;  %s6346_s11 = inlined_call_operand.hbm [shape: s8[512,1024], index: 11, kind: input, shape index: {}]   ;;  %s6347_s12 = inlined_call_operand.vmem [shape: f32[1,1024], index: 12, kind: input, shape index: {}]   ;;  %s6348_s13 = inlined_call_operand.hbm [shape: f32[1,1024], index: 13, kind: input, shape index: {}]   ;;  %s6349_s14 = inlined_call_operand.hbm [shape: f32[1,1024], index: 14, kind: input, shape index: {}]   ;;  %s6350_s15 = inlined_call_operand.hbm [shape: f32[1,1024], index: 15, kind: input, shape index: {}]   ;;  %s6351_s16 = inlined_call_operand.hbm [shape: s8[1024,896], index: 16, kind: input, shape index: {}]   ;;  %s6352_s17 = inlined_call_operand.hbm [shape: f32[1,896], index: 17, kind: input, shape index: {}]   ;;  %s6353_s18 = inlined_call_operand.hbm [shape: f32[1,896], index: 18, kind: input, shape index: {}]   ;;  %s6354_s19 = inlined_call_operand.vmem [shape: f32[16,896], index: 19, kind: output, shape index: {}]  }
   0x1   :  { %6360 = sst [smem:[#allocation43_spill]] %s6335_s0 }
   0x2   :  { %6361 = sst [smem:[#allocation44_spill]] %s6336_s1 }
   0x3   :  { %6362 = sst [smem:[#allocation45_spill]] %s6337_s2 }
   0x4   :  { %6363 = sst [smem:[#allocation46_spill]] %s6338_s3 }
   0x5   :  { %6364 = sst [smem:[#allocation47_spill]] %s6339_s4 }
   0x6   :  { %6365 = sst [smem:[#allocation48_spill]] %s6340_s5 }
   0x7   :  { %6366 = sst [smem:[#allocation49_spill]] %s6341_s6 }
   0x8   :  { %6367 = sst [smem:[#allocation50_spill]] %s6346_s11 }
   0x9   :  { %6368 = sst [smem:[#allocation51_spill]] %s6347_s12 }
   0xa   :  { %6369 = sst [smem:[#allocation52_spill]] %s6351_s16 }
   0xb   :  { %6370 = sst [smem:[#allocation53_spill]] %s6354_s19 }
   0xc   :  { %24 = vsyncpa [#allocation6], 0 }
   0xd   :  { %26 = vsyncpa [#allocation6 + $0x1], 0 }
   0xe   :  { %27 = vsyncpa [#allocation8], 0 }
   0xf   :  { %28 = vsyncpa [#allocation11], 0 }
  0x10   :  { %29 = vsyncpa [#allocation14], 0 }
  0x11   :  { %30 = vsyncpa [#allocation17], 0 }
  0x12   :  { %31 = vsyncpa [#allocation20], 0 }
  0x13   :  { %32 = vsyncpa [#allocation23], 0 }
  0x14   :  { %33 = vsyncpa [#allocation26], 0  ;;  %s5716_s0 = smov 0   ;;  %s5718_s30 = smov 0  }
  0x15   :  { %s5720_s20 = smov 0   ;;  %s5722_s21 = smov 0  }
  0x16 LB: > { %s5592_s1 = smov [#allocation7]   ;;  %s5737_s2 = sadd.s32 4294967295, %s5590_s21   ;;  %s5590_s21 = sphi %s5722_s21, %s6414_s21   ;;  %s5586_s20 = sphi %s5720_s20, %s6413_s20   ;;  %s5582_s30 = sphi %s5718_s30, %s6412_s30   ;;  %s5578_s0 = sphi %s5716_s0, %s6411_s0  }
  0x17   : > { %s450_s22 = sshll.u32 %s5592_s1, 4  ;;  %p4528_p0 = scmp.ge.s32.totalorder %s5590_s21, 1  ;;  %s451_s22 = int_to_ptr.vmem [resolvable:$true] %s450_s22 }
  0x18   : > { %p6357_p1 = scmp.eq.s32.totalorder %s5737_s2, 0  ;;  %p432_p2 = scmp.lt.s32.totalorder %s5590_s21, 3 }
  0x19   : > { %s5593_s24 = smov [#allocation10]   ;;  %s5594_s26 = smov [#allocation13]  }
  0x1a   : > { %p5742_p3 = pnand %p4528_p0, %p432_p2  ;;  %s475_s25 = sshll.u32 %s5593_s24, 4  ;;  %s476_s25 = int_to_ptr.vmem [resolvable:$true] %s475_s25 }
  0x1b   : > { %s496_s27 = sshll.u32 %s5594_s26, 4  ;;  %s5117_s29 = scalar_lea.vmem %s451_s22, 2048  ;;  %s5754_s27 = int_to_ptr.vmem [resolvable:$true] %s496_s27 }
  0x1c   : > { %s6371_s23 = scalar_select %p5742_p3, 1, 0 }
  0x1d   : > { %p4813_p4 = pneg %p5742_p3  ;;  %p5118_p7 = scmp.ne.s32.totalorder %s451_s22, %s5117_s29 }
  0x1e   : > { %p5125_p10 = scmp.lt.s32.totalorder %s451_s22, %s451_s22  ;;  %p5126_p11 = scmp.lt.s32.totalorder %s5117_s29, %s5117_s29 }
  0x1f   : > { %p5750_p5 = pnand %p4813_p4, %p6357_p1 }
  0x20   : > { %p5127_p12 = por %p5126_p11, %p5125_p10 }
  0x21   : > { %p5758_p6 = pneg %p5750_p5 }
  0x23   : > { %p5120_p8 = pnand %p5118_p7, %p5758_p6 }
  0x25   : > { %p5121_p9 = pneg %p5120_p8 }
  0x27   : > { %p5128_p13 = pnand %p5127_p12, %p5121_p9 }
  0x29   : > { %5131 = shalt.err (!%p5128_p13)
}
  0x2a   : > { %s5595_s1 = smov 128   ;;  %s5596_s24 = smov 8  }
  0x2b   : > { %s6374_s16 = sld [smem:[#allocation46_spill]]  ;;  %s5143_s11 = scalar_lea.vmem %s476_s25, 32 }
  0x2c   : > { %p5144_p0 = scmp.ne.s32.totalorder %s476_s25, %s5143_s11  ;;  %p5151_p7 = scmp.lt.s32.totalorder %s476_s25, %s476_s25 }
  0x2d   : > { %p5152_p8 = scmp.lt.s32.totalorder %s5143_s11, %s5143_s11 }
  0x2e   : > { %p5146_p2 = pnand %p5144_p0, %p5758_p6 }
  0x2f   : > { %p5153_p1 = por %p5152_p8, %p5151_p7 }
  0x30   : > { %p5147_p4 = pneg %p5146_p2 }
  0x31   : > { %4816 = dma.hbm_to_vmem [thread:$0]  (!%p5750_p5), %s6374_s16, 2048, %s451_s22, [#allocation8], %s5595_s1, %s5595_s1, %s5596_s24  }
  0x32   : > { %p5154_p10 = pnand %p5153_p1, %p5147_p4 }
  0x34   : > { %5157 = shalt.err (!%p5154_p10)
}
  0x35   : > { %s6375_s5 = sld [smem:[#allocation48_spill]]  ;;  %s5169_s12 = scalar_lea.vmem %s5754_s27, 8192 }
  0x36   : > { %p5170_p9 = scmp.ne.s32.totalorder %s5754_s27, %s5169_s12  ;;  %p5177_p13 = scmp.lt.s32.totalorder %s5754_s27, %s5754_s27 }
  0x37   : > { %p5178_p0 = scmp.lt.s32.totalorder %s5169_s12, %s5169_s12 }
  0x38   : > { %p5172_p11 = pnand %p5170_p9, %p5758_p6 }
  0x39   : > { %p5179_p1 = por %p5178_p0, %p5177_p13 }
  0x3a   : > { %p5173_p12 = pneg %p5172_p11 }
  0x3b   : > { %4822 = dma.hbm_to_vmem [thread:$0]  (!%p5750_p5), %s6375_s5, 32, %s476_s25, [#allocation11]  }
  0x3c   : > { %p5180_p2 = pnand %p5179_p1, %p5173_p12 }
  0x3e   : > { %5183 = shalt.err (!%p5180_p2)
}
  0x3f   : > { %s5597_s11 = smov 256   ;;  %s5598_s16 = smov 16  }
  0x40   : > { %4828 = dma.hbm_to_vmem [thread:$0]  (!%p5750_p5), %s6342_s7, 8192, %s5754_s27, [#allocation14], %s5597_s11, %s5597_s11, %s5598_s16  }
  0x41   : > { %s5599_s25 = smov [#allocation16]   ;;  %s5600_s24 = smov [#allocation19]  }
  0x42   : > { %s521_s1 = sshll.u32 %s5599_s25, 4  ;;  %s546_s26 = sshll.u32 %s5600_s24, 4  ;;  %s522_s1 = int_to_ptr.vmem [resolvable:$true] %s521_s1  ;;  %s547_s26 = int_to_ptr.vmem [resolvable:$true] %s546_s26 }
  0x43   : > { %s5195_s29 = scalar_lea.vmem %s522_s1, 64  ;;  %p5203_p10 = scmp.lt.s32.totalorder %s522_s1, %s522_s1 }
  0x44   : > { %p5196_p4 = scmp.ne.s32.totalorder %s522_s1, %s5195_s29  ;;  %p5204_p9 = scmp.lt.s32.totalorder %s5195_s29, %s5195_s29 }
  0x46   : > { %p5198_p7 = pnand %p5196_p4, %p5758_p6  ;;  %p5205_p11 = por %p5204_p9, %p5203_p10 }
  0x48   : > { %p5199_p8 = pneg %p5198_p7 }
  0x4a   : > { %p5206_p12 = pnand %p5205_p11, %p5199_p8 }
  0x4c   : > { %5209 = shalt.err (!%p5206_p12)
}
  0x4d   : > { %4834 = dma.hbm_to_vmem [thread:$0]  (!%p5750_p5), %s6344_s9, 64, %s522_s1, [#allocation17]  }
  0x4e   : > { %s5221_s27 = scalar_lea.vmem %s547_s26, 128  ;;  %p5229_p2 = scmp.lt.s32.totalorder %s547_s26, %s547_s26 }
  0x4f   : > { %p5222_p13 = scmp.ne.s32.totalorder %s547_s26, %s5221_s27  ;;  %p5230_p4 = scmp.lt.s32.totalorder %s5221_s27, %s5221_s27 }
  0x51   : > { %p5224_p0 = pnand %p5222_p13, %p5758_p6  ;;  %p5231_p7 = por %p5230_p4, %p5229_p2 }
  0x53   : > { %p5225_p1 = pneg %p5224_p0 }
  0x55   : > { %p5232_p3 = pnand %p5231_p7, %p5225_p1 }
  0x57   : > { %5235 = shalt.err (!%p5232_p3)
}
  0x58   : > { %4840 = dma.hbm_to_vmem [thread:$0]  (!%p5750_p5), %s6348_s13, 128, %s547_s26, [#allocation20]  }
  0x59   : > { %s5601_s22 = smov [#allocation22]   ;;  %s5602_s1 = smov [#allocation9]  }
  0x5a   : > { %s568_s25 = sshll.u32 %s5601_s22, 4  ;;  %s464_s24 = sshll.u32 %s5602_s1, 4  ;;  %s569_s25 = int_to_ptr.vmem [resolvable:$true] %s568_s25  ;;  %s465_s24 = int_to_ptr.vmem [resolvable:$true] %s464_s24 }
  0x5b   : > { %s5247_s29 = scalar_lea.vmem %s569_s25, 128  ;;  %p5255_p11 = scmp.lt.s32.totalorder %s569_s25, %s569_s25 }
  0x5c   : > { %p5248_p8 = scmp.ne.s32.totalorder %s569_s25, %s5247_s29  ;;  %p5256_p12 = scmp.lt.s32.totalorder %s5247_s29, %s5247_s29 }
  0x5e   : > { %p5250_p10 = pnand %p5248_p8, %p5758_p6  ;;  %p5257_p3 = por %p5256_p12, %p5255_p11 }
  0x60   : > { %p5251_p9 = pneg %p5250_p10 }
  0x62   : > { %p5258_p13 = pnand %p5257_p3, %p5251_p9 }
  0x64   : > { %5261 = shalt.err (!%p5258_p13)
}
  0x65   : > { %4846 = dma.hbm_to_vmem [thread:$0]  (!%p5750_p5), %s6350_s15, 128, %s569_s25, [#allocation23]  }
  0x66   : > { %s5273_s26 = scalar_lea.vmem %s465_s24, 32  ;;  %p5281_p4 = scmp.lt.s32.totalorder %s465_s24, %s465_s24 }
  0x67   : > { %p5274_p0 = scmp.ne.s32.totalorder %s465_s24, %s5273_s26  ;;  %p5282_p7 = scmp.lt.s32.totalorder %s5273_s26, %s5273_s26 }
  0x69   : > { %p5276_p1 = pnand %p5274_p0, %p5758_p6  ;;  %p5283_p8 = por %p5282_p7, %p5281_p4 }
  0x6b   : > { %p5277_p2 = pneg %p5276_p1 }
  0x6d   : > { %p5284_p10 = pnand %p5283_p8, %p5277_p2 }
  0x6f   : > { %5287 = shalt.err (!%p5284_p10)
}
  0x70   : > { %s6376_s4 = sld [smem:[#allocation47_spill]]  ;;  %s5603_s16 = smov [#allocation12]  }
  0x71   : > { %s486_s22 = sshll.u32 %s5603_s16, 4  ;;  %s5604_s25 = smov [#allocation15]   ;;  %s487_s22 = int_to_ptr.vmem [resolvable:$true] %s486_s22 }
  0x72   : > { %s510_s1 = sshll.u32 %s5604_s25, 4  ;;  %s5299_s29 = scalar_lea.vmem %s487_s22, 32  ;;  %s511_s1 = int_to_ptr.vmem [resolvable:$true] %s510_s1 }
  0x73   : > { %p5300_p9 = scmp.ne.s32.totalorder %s487_s22, %s5299_s29  ;;  %p5307_p3 = scmp.lt.s32.totalorder %s487_s22, %s487_s22 }
  0x74   : > { %p5308_p13 = scmp.lt.s32.totalorder %s5299_s29, %s5299_s29 }
  0x75   : > { %p5302_p11 = pnand %p5300_p9, %p5758_p6 }
  0x76   : > { %4819 = dma.hbm_to_vmem [thread:$0]  (!%p5750_p5), %s6376_s4, 32, %s465_s24, [#allocation8]  }
  0x77   : > { %p5303_p12 = pneg %p5302_p11  ;;  %p5309_p0 = por %p5308_p13, %p5307_p3 }
  0x79   : > { %p5310_p1 = pnand %p5309_p0, %p5303_p12 }
  0x7b   : > { %5313 = shalt.err (!%p5310_p1)
}
  0x7c   : > { %s6377_s6 = sld [smem:[#allocation49_spill]]  ;;  %s5325_s24 = scalar_lea.vmem %s511_s1, 64 }
  0x7d   : > { %p5326_p2 = scmp.ne.s32.totalorder %s511_s1, %s5325_s24  ;;  %p5333_p8 = scmp.lt.s32.totalorder %s511_s1, %s511_s1 }
  0x7e   : > { %p5334_p10 = scmp.lt.s32.totalorder %s5325_s24, %s5325_s24 }
  0x7f   : > { %p5328_p4 = pnand %p5326_p2, %p5758_p6 }
  0x80   : > { %p5335_p9 = por %p5334_p10, %p5333_p8 }
  0x81   : > { %p5329_p7 = pneg %p5328_p4 }
  0x82   : > { %4825 = dma.hbm_to_vmem [thread:$0]  (!%p5750_p5), %s6377_s6, 32, %s487_s22, [#allocation11]  }
  0x83   : > { %p5336_p11 = pnand %p5335_p9, %p5329_p7 }
  0x85   : > { %5339 = shalt.err (!%p5336_p11)
}
  0x86   : > { %4831 = dma.hbm_to_vmem [thread:$0]  (!%p5750_p5), %s6343_s8, 64, %s511_s1, [#allocation14]  }
  0x87   : > { %s5605_s11 = smov [#allocation18]   ;;  %s5606_s22 = smov [#allocation21]  }
  0x88   : > { %s532_s16 = sshll.u32 %s5605_s11, 4  ;;  %s557_s25 = sshll.u32 %s5606_s22, 4  ;;  %s533_s16 = int_to_ptr.vmem [resolvable:$true] %s532_s16  ;;  %s558_s25 = int_to_ptr.vmem [resolvable:$true] %s557_s25 }
  0x89   : > { %s5351_s29 = scalar_lea.vmem %s533_s16, 64  ;;  %p5359_p0 = scmp.lt.s32.totalorder %s533_s16, %s533_s16 }
  0x8a   : > { %p5352_p12 = scmp.ne.s32.totalorder %s533_s16, %s5351_s29  ;;  %p5360_p1 = scmp.lt.s32.totalorder %s5351_s29, %s5351_s29 }
  0x8c   : > { %p5354_p3 = pnand %p5352_p12, %p5758_p6  ;;  %p5361_p2 = por %p5360_p1, %p5359_p0 }
  0x8e   : > { %p5355_p13 = pneg %p5354_p3 }
  0x90   : > { %p5362_p4 = pnand %p5361_p2, %p5355_p13 }
  0x92   : > { %5365 = shalt.err (!%p5362_p4)
}
  0x93   : > { %4837 = dma.hbm_to_vmem [thread:$0]  (!%p5750_p5), %s6345_s10, 64, %s533_s16, [#allocation17]  }
  0x94   : > { %s5377_s1 = scalar_lea.vmem %s558_s25, 128  ;;  %p5385_p9 = scmp.lt.s32.totalorder %s558_s25, %s558_s25 }
  0x95   : > { %p5378_p7 = scmp.ne.s32.totalorder %s558_s25, %s5377_s1  ;;  %p5386_p11 = scmp.lt.s32.totalorder %s5377_s1, %s5377_s1 }
  0x97   : > { %p5380_p8 = pnand %p5378_p7, %p5758_p6  ;;  %p5387_p12 = por %p5386_p11, %p5385_p9 }
  0x99   : > { %p5381_p10 = pneg %p5380_p8 }
  0x9b   : > { %p5388_p3 = pnand %p5387_p12, %p5381_p10 }
  0x9d   : > { %5391 = shalt.err (!%p5388_p3)
}
  0x9e   : > { %4843 = dma.hbm_to_vmem [thread:$0]  (!%p5750_p5), %s6349_s14, 128, %s558_s25, [#allocation20]  }
  0x9f   : > { %s5607_s27 = smov [#allocation24]   ;;  %s5608_s16 = smov [#allocation25]  }
  0xa0   : > { %s579_s11 = sshll.u32 %s5607_s27, 4  ;;  %s590_s22 = sshll.u32 %s5608_s16, 4  ;;  %s580_s11 = int_to_ptr.vmem [resolvable:$true] %s579_s11  ;;  %s591_s22 = int_to_ptr.vmem [resolvable:$true] %s590_s22 }
  0xa1   : > { %s5403_s29 = scalar_lea.vmem %s580_s11, 112  ;;  %s5410_s12 = scalar_lea.vmem %s580_s11, 128 }
  0xa2   : > { %p5404_p13 = scmp.ne.s32.totalorder %s580_s11, %s5403_s29  ;;  %p5411_p2 = scmp.lt.s32.totalorder %s580_s11, %s580_s11 }
  0xa3   : > { %p5412_p4 = scmp.lt.s32.totalorder %s5410_s12, %s5403_s29 }
  0xa4   : > { %p5406_p0 = pnand %p5404_p13, %p5758_p6 }
  0xa5   : > { %p5413_p7 = por %p5412_p4, %p5411_p2 }
  0xa6   : > { %p5407_p1 = pneg %p5406_p0 }
  0xa8   : > { %p5414_p8 = pnand %p5413_p7, %p5407_p1 }
  0xaa   : > { %5417 = shalt.err (!%p5414_p8)
}
  0xab   : > { %4849 = dma.hbm_to_vmem [thread:$0]  (!%p5750_p5), %s6352_s17, 112, %s580_s11, [#allocation23]  }
  0xac   : > { %s5429_s1 = scalar_lea.vmem %s591_s22, 112  ;;  %s5436_s24 = scalar_lea.vmem %s591_s22, 128 }
  0xad   : > { %p5430_p10 = scmp.ne.s32.totalorder %s591_s22, %s5429_s1  ;;  %p5437_p12 = scmp.lt.s32.totalorder %s591_s22, %s591_s22 }
  0xae   : > { %p5438_p3 = scmp.lt.s32.totalorder %s5436_s24, %s5429_s1 }
  0xaf   : > { %p5432_p9 = pnand %p5430_p10, %p5758_p6 }
  0xb0   : > { %p5439_p13 = por %p5438_p3, %p5437_p12 }
  0xb1   : > { %p5433_p11 = pneg %p5432_p9 }
  0xb3   : > { %p5440_p0 = pnand %p5439_p13, %p5433_p11 }
  0xb5   : > { %5443 = shalt.err (!%p5440_p0)
}
  0xb6   : > { %4852 = dma.hbm_to_vmem [thread:$0]  (!%p5750_p5), %s6353_s18, 112, %s591_s22, [#allocation26]  }
  0xb7   : > { %s5859_s28 = sadd.s32 1, %s5590_s21   ;;  %s46_s11 = sadd.s32 1, %s5586_s20 }
  0xb8   : > { %s43_s3 = ssub.s32 %s5590_s21, %s5859_s28  ;;  %p53_p1 = scmp.ne.s32.totalorder %s5586_s20, %s5582_s30 }
  0xb9   : > { %p44_p6 = scmp.eq.s32.totalorder %s43_s3, 0  ;;  %p54_p2 = scmp.eq.s32.totalorder %s5590_s21, 0 }
  0xba   : > { %p59_p4 = scmp.ne.s32.totalorder %s5582_s30, %s5578_s0  ;;  %p6378_p8 = scmp.eq.s32.totalorder %s5737_s2, 0 }
  0xbb   : > { %s5870_s16 = scalar_select %p44_p6, %s5586_s20, %s46_s11  }
  0xbc   : > { %p55_p7 = por %p54_p2, %p53_p1  ;;  %p5874_p10 = por %p6378_p8, %p59_p4 }
  0xbd   : > { %p4870_p9 = scmp.lt.s32.totalorder %s5590_s21, 2  ;;  %s601_s12 = sand.u32 1, %s5586_s20  }
  0xbe   : > { %s6379_s29 = scalar_select %p5874_p10, 1, 0 }
  0xbf   : > { %s4543_s22 = sshll.u32 %s601_s12, 3  ;;  %s4544_s19 = sshll.u32 %s5590_s21, 7 }
  0xc0   : > { %s6380_s24 = sld [smem:[#allocation43_spill]]  ;;  %s605_s0 = scalar_lea.vmem [#allocation5], %s4543_s22 }
  0xc1   : > { %s612_s27 = sshll.u32 %s605_s0, 4  ;;  %p5886_p5 = pnand %p4870_p9, %p55_p7  ;;  %s613_s27 = int_to_ptr.vmem [resolvable:$true] %s612_s27 }
  0xc2   : > { %s602_s11 = scalar_lea.sflag [#allocation6], %s601_s12 }
  0xc3   : > { %p5446_p12 = pneg %p5886_p5 }
  0xc6   : > { %s5884_s26 = scalar_lea.hbm %s6380_s24, %s4544_s19  ;;  %s5449_s25 = scalar_lea.hbm %s6380_s24, 256 }
  0xc7   : > { %s5444_s4 = scalar_lea.hbm %s5884_s26, 128  ;;  %p5450_p0 = scmp.lt.s32.totalorder %s5884_s26, %s6380_s24 }
  0xc8   : > { %p5445_p11 = scmp.ne.s32.totalorder %s5884_s26, %s5444_s4  ;;  %p5451_p6 = scmp.lt.s32.totalorder %s5449_s25, %s5444_s4 }
  0xca   : > { %p5447_p3 = pnand %p5446_p12, %p5445_p11  ;;  %p5452_p1 = por %p5451_p6, %p5450_p0 }
  0xcc   : > { %p5448_p13 = pneg %p5447_p3 }
  0xce   : > { %p5453_p2 = pnand %p5452_p1, %p5448_p13 }
  0xd0   : > { %5456 = shalt.err (!%p5453_p2)
}
  0xd1   : > { %s5457_s0 = scalar_lea.vmem %s613_s27, 128  ;;  %s5609_s12 = smov [#allocation5]  }
  0xd2   : > { %p5458_p4 = scmp.ne.s32.totalorder %s613_s27, %s5457_s0  ;;  %s5462_s5 = sshll.u32 %s5609_s12, 4  ;;  %s5463_s5 = int_to_ptr.vmem [resolvable:$false] %s5462_s5 }
  0xd3   : > { %s5464_s6 = scalar_lea.vmem %s5463_s5, 256  ;;  %p5465_p9 = scmp.lt.s32.totalorder %s613_s27, %s5463_s5 }
  0xd4   : > { %p5460_p7 = pnand %p5458_p4, %p5446_p12  ;;  %p5466_p11 = scmp.lt.s32.totalorder %s5464_s6, %s5457_s0 }
  0xd6   : > { %p5461_p8 = pneg %p5460_p7  ;;  %p5467_p3 = por %p5466_p11, %p5465_p9 }
  0xd8   : > { %p5468_p10 = pnand %p5467_p3, %p5461_p8 }
  0xda   : > { %5471 = shalt.err (!%p5468_p10)
}
  0xdb   : > { %4856 = dma.hbm_to_vmem [thread:$0]  (!%p5886_p5), %s5884_s26, 128, %s613_s27, %s602_s11  }
  0xdc   : > { %p6382_p13 = scmp.ne.s32.totalorder %s6371_s23, 0 }
  0xdd   : > { %s623_s4 = sand.u32 (!%p6382_p13), 1, %s5582_s30   ;;  %p6383_p12 = scmp.ne.s32.totalorder (!%p6382_p13), %s6379_s29, 0 }
  0xde   : > { %621 = sbr.rel (%p6382_p13) target bundleno = 2203 (0x89b), region = 88  ;;  %s4546_s21 = sshll.u32 (!%p6382_p13), %s623_s4, 3 }
  0xdf   : > { %s624_s19 = scalar_lea.sflag (!%p6382_p13), [#allocation6], %s623_s4  ;;  %s627_s25 = scalar_lea.vmem (!%p6382_p13), [#allocation5], %s4546_s21 }
  0xe3   : > { %5537 = dma.done.wait (%p6383_p12), %s624_s19, 128  }
  0xe4   : > { %5539 = vsyncadd (%p6383_p12), %s624_s19, 4294967168  ;;  %p6384_p10 = scmp.eq.s32.totalorder %s5737_s2, 0 }
  0xe6   : > { %5541 = dma.done.wait (%p6384_p10), [#allocation8], 2080   ;;  %p6385_p0 = pmov %p6384_p10 }
  0xe8   : > { %5543 = vsyncadd (%p6385_p0), [#allocation8], 4294965216  ;;  %p6386_p5 = pmov %p6385_p0 }
  0xe9   : > { %p6387_p6 = pmov %p6385_p0 }
  0xea   : > { %5545 = dma.done.wait (%p6386_p5), [#allocation11], 64  }
  0xeb   : > { %5547 = vsyncadd (%p6387_p6), [#allocation11], 4294967232  ;;  %p6388_p1 = pmov %p6385_p0 }
  0xec   : > { %p6389_p2 = pmov %p6385_p0 }
  0xed   : > { %5549 = dma.done.wait (%p6388_p1), [#allocation14], 8256  }
  0xee   : > { %5551 = vsyncadd (%p6389_p2), [#allocation14], 4294959040  ;;  %p6390_p4 = pmov %p6385_p0 }
  0xef   : > { %p6391_p7 = pmov %p6385_p0 }
  0xf0   : > { %5553 = dma.done.wait (%p6390_p4), [#allocation17], 128  }
  0xf1   : > { %5555 = vsyncadd (%p6391_p7), [#allocation17], 4294967168  ;;  %p6392_p8 = pmov %p6385_p0 }
  0xf2   : > { %p6393_p9 = pmov %p6385_p0 }
  0xf3   : > { %5557 = dma.done.wait (%p6392_p8), [#allocation20], 256  }
  0xf4   : > { %5559 = vsyncadd (%p6393_p9), [#allocation20], 4294967040  ;;  %p6394_p11 = pmov %p6385_p0 }
  0xf5   : > { %p6395_p3 = pmov %p6385_p0 }
  0xf6   : > { %5561 = dma.done.wait (%p6394_p11), [#allocation23], 240  }
  0xf7   : > { %5563 = vsyncadd (%p6395_p3), [#allocation23], 4294967056  ;;  %p6396_p13 = pmov %p6385_p0 }
  0xf8   : > { %p6397_p12 = pmov %p6385_p0 }
  0xf9   : > { %5565 = dma.done.wait (%p6396_p13), [#allocation26], 112  }
  0xfa   : > { %5567 = vsyncadd (%p6397_p12), [#allocation26], 4294967184  ;;  %v5610_v0 = vmov 0.0   ;;  %vm5611_vm0 = vmmov 0   ;;  %s6398_s23 = sld [smem:[#allocation44_spill]]  ;;  %v763_v3 = vld [vmem:[%s627_s25] sm:$0xff]  ;;  %p6401_p5 = pmov %p6388_p1 }
  0xfb   : > { %4743 = vmatprep.subr.bf16.mxu0 %v5610_v0  ;;  %4747 = vmatprep.mubr.msk.bf16.mxu0 %vm5611_vm0, %v5610_v0  ;;  %v4944_v4 = vld [vmem:[#allocation7 + $0x74] ss:$8 sps:$4 sm:$0xff]   ;;  %v4946_v5 = vld [vmem:[#allocation7 + $0x70] ss:$8 sps:$4 sm:$0xff]   ;;  %v4947_v6 = vld [vmem:[#allocation7 + $0x64] ss:$8 sps:$4 sm:$0xff]   ;;  %v768_v7 = vpack.c.bf16 %v763_v3, %v763_v3 }
  0xfc   : > { %944 = vmatprep.subr.bf16.mxu1 %v4944_v4  ;;  %vm788_vm1 = vcmask 261120   ;;  %v4949_v8 = vld [vmem:[#allocation7 + $0x60] ss:$8 sps:$4 sm:$0xff]   ;;  %v4950_v9 = vld [vmem:[#allocation7 + $0x54] ss:$8 sps:$4 sm:$0xff]   ;;  %v5612_v21 = vmov 0  }
  0xfd   : > { %945 = vmatpush1.bf16.msra.mxu1 %v4946_v5  ;;  %v4952_v10 = vld [vmem:[#allocation7 + $0x50] ss:$8 sps:$4 sm:$0xff]   ;;  %v4953_v11 = vld [vmem:[#allocation7 + $0x44] ss:$8 sps:$4 sm:$0xff]   ;;  %v4955_v12 = vld [vmem:[#allocation7 + $0x40] ss:$8 sps:$4 sm:$0xff]   ;;  %976 = vmatprep.mubr.bf16.mxu1 %v5612_v21 }
  0xfe   : > { %946 = vmatprep.subr.bf16.mxu1 %v4947_v6  ;;  %v4956_v13 = vld [vmem:[#allocation7 + $0x34] ss:$8 sps:$4 sm:$0xff]   ;;  %v4958_v14 = vld [vmem:[#allocation7 + $0x30] ss:$8 sps:$4 sm:$0xff]   ;;  %v4959_v15 = vld [vmem:[#allocation7 + $0x24] ss:$8 sps:$4 sm:$0xff]  }
  0xff   : > { %v4961_v16 = vld [vmem:[#allocation7 + $0x20] ss:$8 sps:$4 sm:$0xff]   ;;  %v4962_v17 = vld [vmem:[#allocation7 + $0x14] ss:$8 sps:$4 sm:$0xff]   ;;  %v4964_v18 = vld [vmem:[#allocation7 + $0x10] ss:$8 sps:$4 sm:$0xff]  }
 0x100   : > { %v4942_v1 = vld [vmem:[%s6398_s23 + $0x8] sm:$0xff]   ;;  %v4943_v2 = vld [vmem:[%s6398_s23] sm:$0xff]   ;;  %v4965_v19 = vld [vmem:[#allocation7 + $0x4] ss:$8 sps:$4 sm:$0xff]   ;;  %s6399_s11 = sld [smem:[#allocation45_spill]]  ;;  %p730_p10 = scmp.lt.s32.totalorder %s5737_s2, 1 }
 0x101   : > { %4744 = vmatpush3.bf16.msra.mxu0 %v4942_v1  ;;  %947 = vmatpush1.bf16.msra.mxu1 %v4949_v8  ;;  %v4967_v20 = vld [vmem:[#allocation7] ss:$8 sps:$4 sm:$0xff]   ;;  %s5614_s0 = smov [#allocation2]   ;;  %s5615_s4 = smov [#allocation3]  }
 0x102   : > { %4745 = vmatprep.subr.bf16.mxu0 %v5610_v0  ;;  %948 = vmatprep.subr.bf16.mxu1 %v4950_v9  ;;  %v4970_v31 = vld [vmem:[#allocation13 + $0xe4] ss:$16 sps:$4 sm:$0xff]   ;;  %v4973_v32 = vld [vmem:[#allocation13 + $0xec] ss:$16 sps:$4 sm:$0xff]   ;;  %v4968_v33 = vld [vmem:[#allocation13 + $0xe0] ss:$16 sps:$4 sm:$0xff]  }
 0x103   : > { %v4971_v34 = vld [vmem:[#allocation13 + $0xe8] ss:$16 sps:$4 sm:$0xff]   ;;  %v4976_v35 = vld [vmem:[#allocation13 + $0xc4] ss:$16 sps:$4 sm:$0xff]   ;;  %v4979_v36 = vld [vmem:[#allocation13 + $0xcc] ss:$16 sps:$4 sm:$0xff]  }
 0x104   : > { %v4974_v37 = vld [vmem:[#allocation13 + $0xc0] ss:$16 sps:$4 sm:$0xff]   ;;  %v4977_v38 = vld [vmem:[#allocation13 + $0xc8] ss:$16 sps:$4 sm:$0xff]   ;;  %v4982_v39 = vld [vmem:[#allocation13 + $0xa4] ss:$16 sps:$4 sm:$0xff]  }
 0x105   : > { %4746 = vmatpush3.bf16.msra.mxu0 %v4943_v2  ;;  %949 = vmatpush1.bf16.msra.mxu1 %v4952_v10  ;;  %v4985_v40 = vld [vmem:[#allocation13 + $0xac] ss:$16 sps:$4 sm:$0xff]   ;;  %v4980_v41 = vld [vmem:[#allocation13 + $0xa0] ss:$16 sps:$4 sm:$0xff]   ;;  %v4983_v42 = vld [vmem:[#allocation13 + $0xa8] ss:$16 sps:$4 sm:$0xff]  }
 0x106   : > { %950 = vmatprep.subr.bf16.mxu1 %v4953_v11  ;;  %v4562_v22 = vld [vmem:[%s6399_s11] ss:$0 sm:$0xff]  ;;  %1483 = vmatprep.subr.bf16.mxu0 %v4970_v31  ;;  %v4988_v43 = vld [vmem:[#allocation13 + $0x84] ss:$16 sps:$4 sm:$0xff]   ;;  %v4991_v44 = vld [vmem:[#allocation13 + $0x8c] ss:$16 sps:$4 sm:$0xff]   ;;  %v854_v31 = vlaneseq }
 0x107   : > { %v4986_v45 = vld [vmem:[#allocation13 + $0x80] ss:$16 sps:$4 sm:$0xff]   ;;  %v4989_v46 = vld [vmem:[#allocation13 + $0x88] ss:$16 sps:$4 sm:$0xff]   ;;  %v4994_v47 = vld [vmem:[#allocation13 + $0x64] ss:$16 sps:$4 sm:$0xff]  }
 0x108   : > { %4748 = vmatmul.mubr.msk.bf16.vlgmr.msra.gmra.mxu0 %vm788_vm1, %v768_v7  ;;  %v4997_v48 = vld [vmem:[#allocation13 + $0x6c] ss:$16 sps:$4 sm:$0xff]   ;;  %v4992_v49 = vld [vmem:[#allocation13 + $0x60] ss:$16 sps:$4 sm:$0xff]   ;;  %v4995_v50 = vld [vmem:[#allocation13 + $0x68] ss:$16 sps:$4 sm:$0xff]  }
 0x109   : > { %951 = vmatpush1.bf16.msra.mxu1 %v4955_v12  ;;  %1484 = vmatpush1.bf16.msra.mxu0 %v4968_v33  ;;  %v5000_v51 = vld [vmem:[#allocation13 + $0x44] ss:$16 sps:$4 sm:$0xff]   ;;  %v5003_v52 = vld [vmem:[#allocation13 + $0x4c] ss:$16 sps:$4 sm:$0xff]   ;;  %v4998_v53 = vld [vmem:[#allocation13 + $0x40] ss:$16 sps:$4 sm:$0xff]  }
 0x10a   : > { %952 = vmatprep.subr.bf16.mxu1 %v4956_v13  ;;  %1485 = vmatprep.subr.bf16.mxu0 %v4976_v35  ;;  %v5001_v54 = vld [vmem:[#allocation13 + $0x48] ss:$16 sps:$4 sm:$0xff]   ;;  %v5006_v55 = vld [vmem:[#allocation13 + $0x24] ss:$16 sps:$4 sm:$0xff]   ;;  %v5009_v56 = vld [vmem:[#allocation13 + $0x2c] ss:$16 sps:$4 sm:$0xff]  }
 0x10b   : > { %v5004_v57 = vld [vmem:[#allocation13 + $0x20] ss:$16 sps:$4 sm:$0xff]   ;;  %v5007_v58 = vld [vmem:[#allocation13 + $0x28] ss:$16 sps:$4 sm:$0xff]   ;;  %v5012_v59 = vld [vmem:[#allocation13 + $0x4] ss:$16 sps:$4 sm:$0xff]  }
 0x10c   : > { %v5015_v60 = vld [vmem:[#allocation13 + $0xc] ss:$16 sps:$4 sm:$0xff]   ;;  %v5010_v61 = vld [vmem:[#allocation13] ss:$16 sps:$4 sm:$0xff]   ;;  %v5013_v62 = vld [vmem:[#allocation13 + $0x8] ss:$16 sps:$4 sm:$0xff]  }
 0x10d   : > { %953 = vmatpush1.bf16.msra.mxu1 %v4958_v14  ;;  %1486 = vmatpush1.bf16.msra.mxu0 %v4974_v37  ;;  %v5018_v63 = vld [vmem:[#allocation13 + $0x1e4] ss:$16 sps:$4 sm:$0xff]   ;;  %v5021_v0 = vld [vmem:[#allocation13 + $0x1ec] ss:$16 sps:$4 sm:$0xff]   ;;  %v5016_v1 = vld [vmem:[#allocation13 + $0x1e0] ss:$16 sps:$4 sm:$0xff]  }
 0x10e   : > { %954 = vmatprep.subr.bf16.mxu1 %v4959_v15  ;;  %1487 = vmatprep.subr.bf16.mxu0 %v4982_v39  ;;  %v5019_v2 = vld [vmem:[#allocation13 + $0x1e8] ss:$16 sps:$4 sm:$0xff]   ;;  %v5024_v3 = vld [vmem:[#allocation13 + $0x1c4] ss:$16 sps:$4 sm:$0xff]   ;;  %v5027_v4 = vld [vmem:[#allocation13 + $0x1cc] ss:$16 sps:$4 sm:$0xff]  }
 0x10f   : > { %v5022_v5 = vld [vmem:[#allocation13 + $0x1c0] ss:$16 sps:$4 sm:$0xff]   ;;  %v5025_v6 = vld [vmem:[#allocation13 + $0x1c8] ss:$16 sps:$4 sm:$0xff]   ;;  %v5030_v7 = vld [vmem:[#allocation13 + $0x1a4] ss:$16 sps:$4 sm:$0xff]  }
 0x110   : > { %v5033_v8 = vld [vmem:[#allocation13 + $0x1ac] ss:$16 sps:$4 sm:$0xff]   ;;  %v5028_v9 = vld [vmem:[#allocation13 + $0x1a0] ss:$16 sps:$4 sm:$0xff]   ;;  %v5031_v10 = vld [vmem:[#allocation13 + $0x1a8] ss:$16 sps:$4 sm:$0xff]  }
 0x111   : > { %955 = vmatpush1.bf16.msra.mxu1 %v4961_v16  ;;  %1488 = vmatpush1.bf16.msra.mxu0 %v4980_v41  ;;  %v5036_v11 = vld [vmem:[#allocation13 + $0x184] ss:$16 sps:$4 sm:$0xff]   ;;  %v5039_v12 = vld [vmem:[#allocation13 + $0x18c] ss:$16 sps:$4 sm:$0xff]   ;;  %v5034_v13 = vld [vmem:[#allocation13 + $0x180] ss:$16 sps:$4 sm:$0xff]  }
 0x112   : > { %956 = vmatprep.subr.bf16.mxu1 %v4962_v17  ;;  %1489 = vmatprep.subr.bf16.mxu0 %v4988_v43  ;;  %v5037_v14 = vld [vmem:[#allocation13 + $0x188] ss:$16 sps:$4 sm:$0xff]   ;;  %v5042_v15 = vld [vmem:[#allocation13 + $0x164] ss:$16 sps:$4 sm:$0xff]   ;;  %v5045_v16 = vld [vmem:[#allocation13 + $0x16c] ss:$16 sps:$4 sm:$0xff]  }
 0x113   : > { %v5040_v17 = vld [vmem:[#allocation13 + $0x160] ss:$16 sps:$4 sm:$0xff]   ;;  %s731_s1 = scalar_select %p730_p10, %s5737_s2, 1 }
 0x114   : > { %v5046_v21 = vld [vmem:[#allocation13 + $0x140] ss:$16 sps:$4 sm:$0xff]   ;;  %s747_s12 = sshll.u32 %s5614_s0, 4  ;;  %s759_s21 = sshll.u32 %s5615_s4, 4  ;;  %s748_s12 = int_to_ptr.vmem [resolvable:$true] %s747_s12  ;;  %s760_s21 = int_to_ptr.vmem [resolvable:$true] %s759_s21 }
 0x115   : > { %957 = vmatpush1.bf16.msra.mxu1 %v4964_v18  ;;  %1490 = vmatpush1.bf16.msra.mxu0 %v4986_v45  ;;  %v5043_v18 = vld [vmem:[#allocation13 + $0x168] ss:$16 sps:$4 sm:$0xff]   ;;  %s4751_s22 = smul.u32 56, %s731_s1  ;;  %s6400_s5 = sld [smem:[#allocation53_spill]] }
 0x116   : > { %958 = vmatprep.subr.bf16.mxu1 %v4965_v19  ;;  %1491 = vmatprep.subr.bf16.mxu0 %v4994_v47  ;;  %v5048_v19 = vld [vmem:[#allocation13 + $0x144] ss:$16 sps:$4 sm:$0xff]   ;;  %s5482_s29 = scalar_lea.vmem %s748_s12, 16384  ;;  %p5489_p2 = scmp.lt.s32.totalorder %s748_s12, %s748_s12 }
 0x117   : > { %p5483_p0 = scmp.ne.s32.totalorder %s748_s12, %s5482_s29  ;;  %p5490_p4 = scmp.lt.s32.totalorder %s5482_s29, %s5482_s29 }
 0x119   : > { %959 = vmatpush1.bf16.msra.mxu1 %v4967_v20  ;;  %1492 = vmatpush1.bf16.msra.mxu0 %v4992_v49  ;;  %v5051_v20 = vld [vmem:[#allocation13 + $0x14c] ss:$16 sps:$4 sm:$0xff]   ;;  %p5484_p6 = pnand %p5483_p0, %p6401_p5  ;;  %p5491_p7 = por %p5490_p4, %p5489_p2 }
 0x11a   : > { %1524 = vmatprep.subr.bf16.mxu1 %v4973_v32  ;;  %1493 = vmatprep.subr.bf16.mxu0 %v5000_v51  ;;  %v5948_v32 = vshrl.u32 %v854_v31, 7 }
 0x11b   : > { %s5972_s6 = scalar_lea.vmem %s6400_s5, %s4751_s22  ;;  %p5485_p1 = pneg %p5484_p6 }
 0x11c   : > { %v5951_v33 = vsub.s32 0, %v5948_v32  ;;  %v5954_v35 = vsub.s32 1, %v5948_v32 }
 0x11d   : > { %1494 = vmatpush1.bf16.msra.mxu0 %v4998_v53  ;;  %p5492_p8 = pnand %p5491_p7, %p5485_p1 }
 0x11e   : > { %1495 = vmatprep.subr.bf16.mxu0 %v5006_v55 }
 0x121   : > { %1496 = vmatpush1.bf16.msra.mxu0 %v5004_v57 }
 0x122   : > { %1497 = vmatprep.subr.bf16.mxu0 %v5012_v59 }
 0x125   : > { %1498 = vmatpush1.bf16.msra.mxu0 %v5010_v61 }
 0x126   : > { %1499 = vmatprep.subr.bf16.mxu0 %v5018_v63 }
 0x129   : > { %1500 = vmatpush2.bf16.msra.mxu0 %v5016_v1 }
 0x12a   : > { %1501 = vmatprep.subr.bf16.mxu0 %v5024_v3 }
 0x12d   : > { %1502 = vmatpush2.bf16.msra.mxu0 %v5022_v5 }
 0x12e   : > { %1503 = vmatprep.subr.bf16.mxu0 %v5030_v7 }
 0x131   : > { %1504 = vmatpush2.bf16.msra.mxu0 %v5028_v9 }
 0x132   : > { %1505 = vmatprep.subr.bf16.mxu0 %v5036_v11 }
 0x135   : > { %1506 = vmatpush2.bf16.msra.mxu0 %v5034_v13 }
 0x136   : > { %1507 = vmatprep.subr.bf16.mxu0 %v5042_v15 }
 0x139   : > { %1508 = vmatpush2.bf16.msra.mxu0 %v5040_v17 }
 0x13a   : > { %1509 = vmatprep.subr.bf16.mxu0 %v5048_v19 }
 0x13d   : > { %1510 = vmatpush2.bf16.msra.mxu0 %v5046_v21 }
 0x1c8   : > { %v826_v23 = vpop.f32.mrf.mxu0 }
 0x1c9   : > { %v827_v24 = vadd.f32 %v4562_v22, %v826_v23  ;;  %v5049_v22 = vld [vmem:[#allocation13 + $0x148] ss:$16 sps:$4 sm:$0xff]   ;;  %v5052_v23 = vld [vmem:[#allocation13 + $0x120] ss:$16 sps:$4 sm:$0xff]  }
 0x1ca   : > { %v4749_v25 = vpop.f32.mrf.mxu0 }
 0x1cb   : > { %vm832_vm2 = vcmp.gt.f32.partialorder %v827_v24, 0.0  ;;  %v833_v26 = vmul.f32 0.2, %v827_v24  ;;  %v5055_v25 = vld [vmem:[#allocation13 + $0x128] ss:$16 sps:$4 sm:$0xff]  }
 0x1cc   : > { %v829_v27 = vpop.f32.mrf.mxu0 }
 0x1cd   : > { %v834_v28 = vsel %vm832_vm2, %v827_v24, %v833_v26  ;;  %v5054_v24 = vld [vmem:[#allocation13 + $0x124] ss:$16 sps:$4 sm:$0xff]   ;;  %v5057_v26 = vld [vmem:[#allocation13 + $0x12c] ss:$16 sps:$4 sm:$0xff]  }
 0x1ce   : > { %v4750_v29 = vpop.f32.mrf.mxu0  ;;  %v851_v30 = vpack.c.bf16 %v834_v28, %v834_v28  ;;  %v5060_v27 = vld [vmem:[#allocation13 + $0x104] ss:$16 sps:$4 sm:$0xff]   ;;  %1511 = vmatprep.subr.bf16.mxu0 %v5054_v24  ;;  %v5063_v28 = vld [vmem:[#allocation13 + $0x10c] ss:$16 sps:$4 sm:$0xff]  }
 0x1cf   : > { %1512 = vmatpush2.bf16.msra.mxu0 %v5052_v23  ;;  %v5058_v29 = vld [vmem:[#allocation13 + $0x100] ss:$16 sps:$4 sm:$0xff]   ;;  %v986_v24 = vld [vmem:[#allocation12] sm:$0x3] }
 0x1d0   : > { %977 = vmatmul.mubr.bf16.vlgmr.msra.gmra.mxu1 %v851_v30  ;;  %1513 = vmatprep.subr.bf16.mxu0 %v5060_v27  ;;  %v5061_v30 = vld [vmem:[#allocation13 + $0x108] ss:$16 sps:$4 sm:$0xff]  }
 0x1d1   : > { %1525 = vmatpush1.bf16.msra.mxu1 %v4971_v34  ;;  %v852_v34 = vld [vmem:[#allocation9] sm:$0x3] }
 0x1d2   : > { %1526 = vmatprep.subr.bf16.mxu1 %v4979_v36  ;;  %v857_v36 = vrot.slane %v852_v34, %v5951_v33  ;;  %v861_v37 = vrot.slane %v852_v34, %v5954_v35 }
 0x1d3   : > { %1514 = vmatpush2.bf16.msra.mxu0 %v5058_v29  ;;  %v1064_v29 = vrot.slane %v986_v24, %v5954_v35 }
 0x1d5   : > { %1527 = vmatpush1.bf16.msra.mxu1 %v4977_v38 }
 0x1d6   : > { %1528 = vmatprep.subr.bf16.mxu1 %v4985_v40 }
 0x1d9   : > { %1529 = vmatpush1.bf16.msra.mxu1 %v4983_v42 }
 0x1da   : > { %1530 = vmatprep.subr.bf16.mxu1 %v4991_v44 }
 0x1dd   : > { %1531 = vmatpush1.bf16.msra.mxu1 %v4989_v46 }
 0x1de   : > { %1532 = vmatprep.subr.bf16.mxu1 %v4997_v48 }
 0x1e1   : > { %1533 = vmatpush1.bf16.msra.mxu1 %v4995_v50 }
 0x1e2   : > { %1534 = vmatprep.subr.bf16.mxu1 %v5003_v52 }
 0x1e5   : > { %1535 = vmatpush1.bf16.msra.mxu1 %v5001_v54 }
 0x1e6   : > { %1536 = vmatprep.subr.bf16.mxu1 %v5009_v56 }
 0x1e9   : > { %1537 = vmatpush1.bf16.msra.mxu1 %v5007_v58 }
 0x1ea   : > { %1538 = vmatprep.subr.bf16.mxu1 %v5015_v60 }
 0x1ed   : > { %1539 = vmatpush1.bf16.msra.mxu1 %v5013_v62 }
 0x1ee   : > { %1540 = vmatprep.subr.bf16.mxu1 %v5021_v0 }
 0x1f1   : > { %1541 = vmatpush2.bf16.msra.mxu1 %v5019_v2 }
 0x1f2   : > { %1542 = vmatprep.subr.bf16.mxu1 %v5027_v4 }
 0x1f5   : > { %1543 = vmatpush2.bf16.msra.mxu1 %v5025_v6 }
 0x1f6   : > { %1544 = vmatprep.subr.bf16.mxu1 %v5033_v8 }
 0x1f9   : > { %1545 = vmatpush2.bf16.msra.mxu1 %v5031_v10 }
 0x1fa   : > { %1546 = vmatprep.subr.bf16.mxu1 %v5039_v12 }
 0x1fd   : > { %1547 = vmatpush2.bf16.msra.mxu1 %v5037_v14  ;;  %v5613_v14 = vmov 1966171168  }
 0x1fe   : > { %1548 = vmatprep.subr.bf16.mxu1 %v5045_v16  ;;  %v1028_v15 = vunpack.c.l.s4 %v5613_v14 }
 0x200   : > { %v1029_v16 = vunpack.c.0.s8 %v1028_v15 }
 0x201   : > { %1549 = vmatpush2.bf16.msra.mxu1 %v5043_v18 }
 0x202   : > { %1550 = vmatprep.subr.bf16.mxu1 %v5051_v20  ;;  %v5959_v18 = vsub.s32 %v1029_v16, %v5948_v32 }
 0x205   : > { %1551 = vmatpush2.bf16.msra.mxu1 %v5049_v22  ;;  %v985_v22 = vld [vmem:[#allocation10] sm:$0x3] }
 0x206   : > { %1552 = vmatprep.subr.bf16.mxu1 %v5057_v26 }
 0x209   : > { %1553 = vmatpush2.bf16.msra.mxu1 %v5055_v25 }
 0x20a   : > { %1554 = vmatprep.subr.bf16.mxu1 %v5063_v28  ;;  %v1060_v28 = vrot.slane %v986_v24, %v5951_v33 }
 0x20d   : > { %1555 = vmatpush2.bf16.msra.mxu1 %v5061_v30 }
 0x290   : > { %v978_v38 = vpop.f32.mrf.mxu1 }
 0x291   : > { %v979_v39 = vadd.f32 %v978_v38, %v857_v36 }
 0x292   : > { %v980_v40 = vpop.f32.mrf.mxu1 }
 0x293   : > { %v987_v41 = vrot.slane %v979_v39, 4  ;;  %v981_v42 = vadd.f32 %v980_v40, %v861_v37 }
 0x294   : > { %v982_v43 = vpop.f32.mrf.mxu1 }
 0x295   : > { %v988_v44 = vadd.f32 %v987_v41, %v979_v39  ;;  %v993_v45 = vrot.slane %v981_v42, 4 }
 0x296   : > { %v983_v46 = vpop.f32.mrf.mxu1 }
 0x297   : > { %v989_v47 = vrot.slane %v988_v44, 2  ;;  %v994_v48 = vadd.f32 %v993_v45, %v981_v42 }
 0x299   : > { %v990_v49 = vadd.f32 %v989_v47, %v988_v44  ;;  %v995_v50 = vrot.slane %v994_v48, 2 }
 0x29b   : > { %v991_v51 = vrot.slane %v990_v49, 1  ;;  %v996_v52 = vadd.f32 %v995_v50, %v994_v48 }
 0x29d   : > { %v992_v53 = vadd.f32 %v991_v51, %v990_v49  ;;  %v997_v54 = vrot.slane %v996_v52, 1 }
 0x29f   : > { %v1000_v55 = vmul.f32 0.125, %v992_v53  ;;  %v998_v56 = vadd.f32 %v997_v54, %v996_v52 }
 0x2a1   : > { %v1002_v57 = vsub.f32 %v979_v39, %v1000_v55  ;;  %v1001_v58 = vmul.f32 0.125, %v998_v56 }
 0x2a3   : > { %v1004_v59 = vmul.f32 %v1002_v57, %v1002_v57  ;;  %v1003_v60 = vsub.f32 %v981_v42, %v1001_v58 }
 0x2a5   : > { %v1006_v61 = vrot.slane %v1004_v59, 4  ;;  %v1005_v62 = vmul.f32 %v1003_v60, %v1003_v60 }
 0x2a7   : > { %v1007_v63 = vadd.f32 %v1006_v61, %v1004_v59  ;;  %v1012_v0 = vrot.slane %v1005_v62, 4 }
 0x2a9   : > { %v1008_v1 = vrot.slane %v1007_v63, 2  ;;  %v1013_v2 = vadd.f32 %v1012_v0, %v1005_v62 }
 0x2ab   : > { %v1009_v3 = vadd.f32 %v1008_v1, %v1007_v63  ;;  %v1014_v4 = vrot.slane %v1013_v2, 2 }
 0x2ad   : > { %v1010_v5 = vrot.slane %v1009_v3, 1  ;;  %v1015_v6 = vadd.f32 %v1014_v4, %v1013_v2 }
 0x2af   : > { %v1011_v7 = vadd.f32 %v1010_v5, %v1009_v3  ;;  %v1016_v8 = vrot.slane %v1015_v6, 1 }
 0x2b1   : > { %v1018_v9 = vmul.f32 0.125, %v1011_v7  ;;  %v1017_v10 = vadd.f32 %v1016_v8, %v1015_v6 }
 0x2b3   : > { %v1020_v11 = vadd.f32 0.8, %v1018_v9  ;;  %v1019_v12 = vmul.f32 0.125, %v1017_v10 }
 0x2b5   : > { %v1021_v13 = vadd.f32 0.8, %v1019_v12  ;;  %5064 = vrsqrt.f32 %v1020_v11 }
 0x2b7   : > { %5066 = vrsqrt.f32 %v1021_v13 }
 0x2c2   : > { %v5065_v17 = vpop.eup %5064 }
 0x2c4   : > { %v5067_v19 = vpop.eup %5066 }
 0x2c5   : > { %v1026_v20 = vcombine.low %v5065_v17, %v5067_v19 }
 0x2c7   : > { %v1033_v21 = vrot.slane %v1026_v20, %v5959_v18 }
 0x2c9   : > { %v1040_v23 = vrot.slane %v1033_v21, %v5959_v18 }
 0x2cb   : > { %v1042_v25 = vmul.f32 %v1040_v23, %v985_v22 }
 0x2cd   : > { %v1047_v26 = vrot.slane %v1042_v25, %v5951_v33  ;;  %v1051_v27 = vrot.slane %v1042_v25, %v5954_v35 }
 0x2cf   : > { %v1055_v30 = vmul.f32 %v1051_v27, %v1003_v60  ;;  %v1054_v31 = vmul.f32 %v1047_v26, %v1002_v57 }
 0x2d1   : > { %v1068_v34 = vadd.f32 %v1064_v29, %v1055_v30  ;;  %v1067_v36 = vadd.f32 %v1060_v28, %v1054_v31 }
 0x2d3   : > { %vm1070_vm3 = vcmp.gt.f32.partialorder %v1068_v34, 0.0  ;;  %v1072_v37 = vmul.f32 0.2, %v1068_v34  ;;  %vm1069_vm4 = vcmp.gt.f32.partialorder %v1067_v36, 0.0  ;;  %v1071_v38 = vmul.f32 0.2, %v1067_v36 }
 0x2d5   : > { %v1074_v39 = vsel %vm1070_vm3, %v1068_v34, %v1072_v37  ;;  %v1073_v40 = vsel %vm1069_vm4, %v1067_v36, %v1071_v38 }
 0x2d6   : > { %v1140_v41 = vpack.c.bf16 %v1074_v39, %v1074_v39  ;;  %v1139_v42 = vpack.c.bf16 %v1073_v40, %v1073_v40 }
 0x2d8   : > { %1515 = vmatprep.mubr.bf16.mxu0 %v1140_v41  ;;  %1556 = vmatprep.mubr.bf16.mxu1 %v1140_v41 }
 0x2d9   : > { %1516 = vmatmul.mubr.bf16.vlgmr.msra.gmra.mxu0 %v1139_v42  ;;  %1557 = vmatmul.mubr.bf16.vlgmr.msra.gmra.mxu1 %v1139_v42 }
 0x2da   : > { %5495 = shalt.err (!%p5492_p8)  }
 0x2db   : > { %p6402_p9 = pmov %p6395_p3  ;;  %s6403_s3 = sld [smem:[#allocation50_spill]] }
 0x2dc   : > { %s5506_s11 = scalar_lea.vmem %s760_s21, 28672  ;;  %p5513_p10 = scmp.lt.s32.totalorder %s760_s21, %s760_s21 }
 0x2dd   : > { %p5507_p11 = scmp.ne.s32.totalorder %s760_s21, %s5506_s11  ;;  %p5514_p0 = scmp.lt.s32.totalorder %s5506_s11, %s5506_s11 }
 0x2df   : > { %p5508_p13 = pnand %p5507_p11, %p6395_p3  ;;  %p5515_p5 = por %p5514_p0, %p5513_p10 }
 0x2e1   : > { %4807 = dma.hbm_to_vmem [thread:$0]  (%p6402_p9), %s6403_s3, 16384, %s748_s12, [#allocation4] }
 0x2e2   : > { %p5509_p12 = pneg %p5508_p13 }
 0x2e4   : > { %p5516_p6 = pnand %p5515_p5, %p5509_p12 }
 0x2e6   : > { %5519 = shalt.err (!%p5516_p6)  }
 0x2e7   : > { %p6404_p1 = pmov %p6395_p3  ;;  %s6405_s0 = sld [smem:[#allocation52_spill]]  ;;  %v5989_v43 = vsub.s32 2, %v5948_v32  ;;  %v1141_v44 = vld [vmem:[#allocation15] sm:$0xf]  ;;  %v5992_v45 = vsub.s32 3, %v5948_v32 }
 0x2e8   : > { %v1146_v46 = vrot.slane %v1141_v44, %v5951_v33  ;;  %v1150_v48 = vrot.slane %v1141_v44, %v5954_v35 }
 0x2e9   : > { %v1154_v47 = vrot.slane %v1141_v44, %v5989_v43  ;;  %v1158_v49 = vrot.slane %v1141_v44, %v5992_v45  ;;  %p6406_p2 = pmov %p6404_p1 }
 0x2ed   : > { %4808 = dma.hbm_to_vmem [thread:$0]  (%p6404_p1), %s6405_s0, 28672, %s760_s21, [#allocation4 + $0x1] }
 0x399   : > { %v1517_v50 = vpop.f32.mrf.mxu0  ;;  %v1558_v51 = vpop.f32.mrf.mxu1 }
 0x39a   : > { %v1518_v52 = vadd.f32 %v1517_v50, %v1146_v46  ;;  %v1559_v53 = vadd.f32 %v1558_v51, %v1154_v47 }
 0x39b   : > { %v1519_v54 = vpop.f32.mrf.mxu0  ;;  %v1560_v55 = vpop.f32.mrf.mxu1 }
 0x39c   : > { %v1567_v56 = vrot.slane %v1518_v52, 4  ;;  %v1579_v57 = vrot.slane %v1559_v53, 4  ;;  %v1520_v58 = vadd.f32 %v1519_v54, %v1150_v48  ;;  %v1561_v59 = vadd.f32 %v1560_v55, %v1158_v49 }
 0x39d   : > { %v1521_v60 = vpop.f32.mrf.mxu0  ;;  %v1562_v61 = vpop.f32.mrf.mxu1 }
 0x39e   : > { %v1568_v62 = vadd.f32 %v1567_v56, %v1518_v52  ;;  %v1580_v63 = vadd.f32 %v1579_v57, %v1559_v53  ;;  %v1573_v0 = vrot.slane %v1520_v58, 4  ;;  %v1585_v1 = vrot.slane %v1561_v59, 4 }
 0x39f   : > { %v1522_v2 = vpop.f32.mrf.mxu0  ;;  %v1563_v3 = vpop.f32.mrf.mxu1 }
 0x3a0   : > { %v1569_v4 = vrot.slane %v1568_v62, 2  ;;  %v1581_v5 = vrot.slane %v1580_v63, 2  ;;  %v1574_v6 = vadd.f32 %v1573_v0, %v1520_v58  ;;  %v1586_v7 = vadd.f32 %v1585_v1, %v1561_v59 }
 0x3a2   : > { %v1570_v8 = vadd.f32 %v1569_v4, %v1568_v62  ;;  %v1582_v9 = vadd.f32 %v1581_v5, %v1580_v63  ;;  %v1575_v10 = vrot.slane %v1574_v6, 2  ;;  %v1587_v11 = vrot.slane %v1586_v7, 2 }
 0x3a4   : > { %v1571_v12 = vrot.slane %v1570_v8, 1  ;;  %v1583_v13 = vrot.slane %v1582_v9, 1  ;;  %v1576_v14 = vadd.f32 %v1575_v10, %v1574_v6  ;;  %v1588_v15 = vadd.f32 %v1587_v11, %v1586_v7 }
 0x3a6   : > { %v1572_v16 = vadd.f32 %v1571_v12, %v1570_v8  ;;  %v1584_v17 = vadd.f32 %v1583_v13, %v1582_v9  ;;  %v1577_v19 = vrot.slane %v1576_v14, 1  ;;  %v1589_v20 = vrot.slane %v1588_v15, 1 }
 0x3a8   : > { %v1591_v21 = vmul.f32 0.125, %v1572_v16  ;;  %v1593_v22 = vmul.f32 0.125, %v1584_v17  ;;  %v1578_v23 = vadd.f32 %v1577_v19, %v1576_v14  ;;  %v1590_v24 = vadd.f32 %v1589_v20, %v1588_v15  ;;  %v1565_v17 = vld [vmem:[#allocation16] sm:$0xf]  ;;  %v1566_v19 = vld [vmem:[#allocation18] sm:$0xf] }
 0x3aa   : > { %v5998_v25 = vsub.f32 %v1518_v52, %v1591_v21  ;;  %v6000_v26 = vsub.f32 %v1559_v53, %v1593_v22  ;;  %v1592_v27 = vmul.f32 0.125, %v1578_v23  ;;  %v1594_v28 = vmul.f32 0.125, %v1590_v24 }
 0x3ab   : > { %v1698_v22 = vrot.slane %v1566_v19, %v5951_v33  ;;  %v1702_v23 = vrot.slane %v1566_v19, %v5954_v35  ;;  %v1706_v24 = vrot.slane %v1566_v19, %v5989_v43 }
 0x3ac   : > { %v1599_v29 = vmul.f32 %v5998_v25, %v5998_v25  ;;  %v1601_v30 = vmul.f32 %v6000_v26, %v6000_v26  ;;  %v1596_v31 = vsub.f32 %v1520_v58, %v1592_v27  ;;  %v6006_v34 = vsub.f32 %v1561_v59, %v1594_v28 }
 0x3ad   : > { %v1710_v27 = vrot.slane %v1566_v19, %v5992_v45 }
 0x3ae   : > { %v1603_v36 = vrot.slane %v1599_v29, 4  ;;  %v1615_v37 = vrot.slane %v1601_v30, 4  ;;  %v1600_v38 = vmul.f32 %v1596_v31, %v1596_v31  ;;  %v1602_v39 = vmul.f32 %v6006_v34, %v6006_v34 }
 0x3b0   : > { %v1604_v40 = vadd.f32 %v1603_v36, %v1599_v29  ;;  %v1616_v41 = vadd.f32 %v1615_v37, %v1601_v30  ;;  %v1609_v42 = vrot.slane %v1600_v38, 4  ;;  %v1621_v44 = vrot.slane %v1602_v39, 4 }
 0x3b2   : > { %v1605_v46 = vrot.slane %v1604_v40, 2  ;;  %v1617_v47 = vrot.slane %v1616_v41, 2  ;;  %v1610_v48 = vadd.f32 %v1609_v42, %v1600_v38  ;;  %v1622_v49 = vadd.f32 %v1621_v44, %v1602_v39 }
 0x3b4   : > { %v1606_v50 = vadd.f32 %v1605_v46, %v1604_v40  ;;  %v1618_v51 = vadd.f32 %v1617_v47, %v1616_v41  ;;  %v1611_v52 = vrot.slane %v1610_v48, 2  ;;  %v1623_v53 = vrot.slane %v1622_v49, 2 }
 0x3b6   : > { %v1607_v54 = vrot.slane %v1606_v50, 1  ;;  %v1619_v55 = vrot.slane %v1618_v51, 1  ;;  %v1612_v56 = vadd.f32 %v1611_v52, %v1610_v48  ;;  %v1624_v57 = vadd.f32 %v1623_v53, %v1622_v49 }
 0x3b8   : > { %v1608_v58 = vadd.f32 %v1607_v54, %v1606_v50  ;;  %v1620_v59 = vadd.f32 %v1619_v55, %v1618_v51  ;;  %v1613_v60 = vrot.slane %v1612_v56, 1  ;;  %v1625_v61 = vrot.slane %v1624_v57, 1 }
 0x3ba   : > { %v1627_v62 = vmul.f32 0.125, %v1608_v58  ;;  %v1629_v63 = vmul.f32 0.125, %v1620_v59  ;;  %v1614_v0 = vadd.f32 %v1613_v60, %v1612_v56  ;;  %v1626_v1 = vadd.f32 %v1625_v61, %v1624_v57 }
 0x3bc   : > { %v1631_v2 = vadd.f32 0.8, %v1627_v62  ;;  %v1633_v3 = vadd.f32 0.8, %v1629_v63  ;;  %v1628_v4 = vmul.f32 0.125, %v1614_v0  ;;  %v1630_v5 = vmul.f32 0.125, %v1626_v1 }
 0x3be   : > { %5068 = vrsqrt.f32 %v1631_v2  ;;  %v1632_v6 = vadd.f32 0.8, %v1628_v4  ;;  %v1634_v7 = vadd.f32 0.8, %v1630_v5 }
 0x3bf   : > { %5070 = vrsqrt.f32 %v1633_v3 }
 0x3c0   : > { %5072 = vrsqrt.f32 %v1632_v6 }
 0x3c1   : > { %5074 = vrsqrt.f32 %v1634_v7 }
 0x3cb   : > { %v5069_v8 = vpop.eup %5068 }
 0x3cc   : > { %v5071_v9 = vpop.eup %5070 }
 0x3cd   : > { %v5073_v10 = vpop.eup %5072 }
 0x3ce   : > { %v5075_v11 = vpop.eup %5074  ;;  %v1643_v12 = vcombine.low %v5069_v8, %v5073_v10 }
 0x3cf   : > { %v1644_v13 = vcombine.low %v5071_v9, %v5075_v11 }
 0x3d0   : > { %v1651_v14 = vrot.slane %v1643_v12, %v5959_v18 }
 0x3d1   : > { %v1658_v15 = vrot.slane %v1644_v13, %v5959_v18 }
 0x3d3   : > { %v1659_v16 = vcombine.low %v1651_v14, %v1658_v15 }
 0x3d5   : > { %v1666_v20 = vrot.slane %v1659_v16, %v5959_v18 }
 0x3d7   : > { %v1668_v21 = vmul.f32 %v1666_v20, %v1565_v17 }
 0x3d9   : > { %v1673_v28 = vrot.slane %v1668_v21, %v5951_v33  ;;  %v1677_v29 = vrot.slane %v1668_v21, %v5954_v35  ;;  %v1681_v30 = vrot.slane %v1668_v21, %v5989_v43  ;;  %v1685_v36 = vrot.slane %v1668_v21, %v5992_v45 }
 0x3db   : > { %v1690_v37 = vmul.f32 %v1673_v28, %v5998_v25  ;;  %v1691_v38 = vmul.f32 %v1677_v29, %v1596_v31  ;;  %v1692_v39 = vmul.f32 %v1681_v30, %v6000_v26  ;;  %v1693_v40 = vmul.f32 %v1685_v36, %v6006_v34 }
 0x3dd   : > { %v1715_v41 = vadd.f32 %v1698_v22, %v1690_v37  ;;  %v1716_v42 = vadd.f32 %v1702_v23, %v1691_v38  ;;  %v1717_v44 = vadd.f32 %v1706_v24, %v1692_v39  ;;  %v1718_v46 = vadd.f32 %v1710_v27, %v1693_v40 }
 0x3df   : > { %vm1719_vm5 = vcmp.gt.f32.partialorder %v1715_v41, 0.0  ;;  %vm1720_vm6 = vcmp.gt.f32.partialorder %v1716_v42, 0.0  ;;  %vm1721_vm7 = vcmp.gt.f32.partialorder %v1717_v44, 0.0  ;;  %vm1722_vm8 = vcmp.gt.f32.partialorder %v1718_v46, 0.0 }
 0x3e0   : > { %v1723_v47 = vmul.f32 0.2, %v1715_v41  ;;  %v1724_v48 = vmul.f32 0.2, %v1716_v42  ;;  %v1725_v49 = vmul.f32 0.2, %v1717_v44 }
 0x3e1   : > { %v1726_v50 = vmul.f32 0.2, %v1718_v46 }
 0x3e2   : > { %v6024_v51 = vsel %vm1719_vm5, %v1715_v41, %v1723_v47  ;;  %v1728_v25 = vsel %vm1720_vm6, %v1716_v42, %v1724_v48  ;;  %v6026_v31 = vsel %vm1721_vm7, %v1717_v44, %v1725_v49 }
 0x3e3   : > { %v1730_v26 = vsel %vm1722_vm8, %v1718_v46, %v1726_v50 }
 0x3e4   : > { %5569 = dma.done.wait (%p6406_p2), [#allocation4], 16384  ;;  %p6407_p4 = pmov %p6404_p1 }
 0x3e5   : > { %v6032_v34 = vpack.c.bf16 %v1728_v25, %v1728_v25  ;;  %v6034_v52 = vpack.c.bf16 %v1730_v26, %v1730_v26  ;;  %v1763_v53 = vld [vmem:[#allocation2 + $0xc8] sm:$0xff]  ;;  %v1762_v55 = vld [vmem:[#allocation2 + $0xc0] sm:$0xff]  ;;  %s6408_s21 = sld [smem:[#allocation51_spill]]  ;;  %p6409_p7 = pmov %p6404_p1 }
 0x3e6   : > { %5571 = vsyncadd (%p6407_p4), [#allocation4], 4294950912  ;;  %v1827_v54 = vld [vmem:[#allocation2 + $0x2c8] sm:$0xff]  ;;  %v1916_v56 = vunpack.c.l.s8.bf16 %v1763_v53  ;;  %v1924_v57 = vunpack.c.h.s8.bf16 %v1763_v53  ;;  %v1826_v60 = vld [vmem:[#allocation2 + $0x2c0] sm:$0xff]  ;;  %v1923_v61 = vunpack.c.h.s8.bf16 %v1762_v55  ;;  %v1915_v1 = vunpack.c.l.s8.bf16 %v1762_v55 }
 0x3e7   : > { %2159 = vmatprep.mubr.bf16.mxu0 %v6032_v34  ;;  %2200 = vmatprep.mubr.bf16.mxu1 %v6034_v52  ;;  %v2044_v58 = vunpack.c.l.s8.bf16 %v1827_v54  ;;  %v2052_v59 = vunpack.c.h.s8.bf16 %v1827_v54  ;;  %v2051_v62 = vunpack.c.h.s8.bf16 %v1826_v60  ;;  %v1755_v63 = vld [vmem:[#allocation2 + $0x88] sm:$0xff]  ;;  %v2043_v2 = vunpack.c.l.s8.bf16 %v1826_v60  ;;  %v1754_v5 = vld [vmem:[#allocation2 + $0x80] sm:$0xff] }
 0x3e8   : > { %v1819_v0 = vld [vmem:[#allocation2 + $0x288] sm:$0xff]  ;;  %2127 = vmatprep.subr.bf16.mxu0 %v1924_v57  ;;  %v1908_v3 = vunpack.c.h.s8.bf16 %v1755_v63  ;;  %v1818_v6 = vld [vmem:[#allocation2 + $0x280] sm:$0xff]  ;;  %v1907_v7 = vunpack.c.h.s8.bf16 %v1754_v5  ;;  %v1900_v9 = vunpack.c.l.s8.bf16 %v1755_v63  ;;  %v1899_v13 = vunpack.c.l.s8.bf16 %v1754_v5 }
 0x3e9   : > { %2168 = vmatprep.subr.bf16.mxu1 %v2052_v59  ;;  %2128 = vmatpush1.bf16.msra.mxu0 %v1923_v61  ;;  %v2036_v4 = vunpack.c.h.s8.bf16 %v1819_v0  ;;  %v2035_v8 = vunpack.c.h.s8.bf16 %v1818_v6  ;;  %v2028_v10 = vunpack.c.l.s8.bf16 %v1819_v0  ;;  %v1747_v11 = vld [vmem:[#allocation2 + $0x48] sm:$0xff]  ;;  %v2027_v14 = vunpack.c.l.s8.bf16 %v1818_v6  ;;  %v1746_v17 = vld [vmem:[#allocation2 + $0x40] sm:$0xff] }
 0x3ea   : > { %2169 = vmatpush1.bf16.msra.mxu1 %v2051_v62  ;;  %2129 = vmatprep.subr.bf16.mxu0 %v1916_v56  ;;  %v1811_v12 = vld [vmem:[#allocation2 + $0x248] sm:$0xff]  ;;  %v1892_v15 = vunpack.c.h.s8.bf16 %v1747_v11  ;;  %v1810_v19 = vld [vmem:[#allocation2 + $0x240] sm:$0xff]  ;;  %v1891_v20 = vunpack.c.h.s8.bf16 %v1746_v17  ;;  %v1884_v22 = vunpack.c.l.s8.bf16 %v1747_v11  ;;  %v1883_v28 = vunpack.c.l.s8.bf16 %v1746_v17 }
 0x3eb   : > { %2170 = vmatprep.subr.bf16.mxu1 %v2044_v58  ;;  %v2020_v16 = vunpack.c.h.s8.bf16 %v1811_v12  ;;  %v2019_v21 = vunpack.c.h.s8.bf16 %v1810_v19  ;;  %v2012_v23 = vunpack.c.l.s8.bf16 %v1811_v12  ;;  %v1739_v24 = vld [vmem:[#allocation2 + $0x8] sm:$0xff]  ;;  %v2011_v29 = vunpack.c.l.s8.bf16 %v1810_v19  ;;  %v1738_v37 = vld [vmem:[#allocation2] sm:$0xff] }
 0x3ec   : > { %v1803_v27 = vld [vmem:[#allocation2 + $0x208] sm:$0xff]  ;;  %v1876_v30 = vunpack.c.h.s8.bf16 %v1739_v24  ;;  %v1802_v38 = vld [vmem:[#allocation2 + $0x200] sm:$0xff]  ;;  %v1875_v39 = vunpack.c.h.s8.bf16 %v1738_v37  ;;  %v1868_v41 = vunpack.c.l.s8.bf16 %v1739_v24  ;;  %v1867_v47 = vunpack.c.l.s8.bf16 %v1738_v37  ;;  %v1765_v37 = vld [vmem:[#allocation2 + $0xd8] sm:$0xff] }
 0x3ed   : > { %2130 = vmatpush1.bf16.msra.mxu0 %v1915_v1  ;;  %v2004_v36 = vunpack.c.h.s8.bf16 %v1803_v27  ;;  %v2003_v40 = vunpack.c.h.s8.bf16 %v1802_v38  ;;  %v1996_v42 = vunpack.c.l.s8.bf16 %v1803_v27  ;;  %v1795_v44 = vld [vmem:[#allocation2 + $0x1c8] sm:$0xff]  ;;  %v1995_v48 = vunpack.c.l.s8.bf16 %v1802_v38  ;;  %v1794_v25 = vld [vmem:[#allocation2 + $0x1c0] sm:$0xff]  ;;  %v1829_v38 = vld [vmem:[#allocation2 + $0x2d8] sm:$0xff] }
 0x3ee   : > { %2171 = vmatpush1.bf16.msra.mxu1 %v2043_v2  ;;  %2131 = vmatprep.subr.bf16.mxu0 %v1908_v3  ;;  %v1859_v46 = vld [vmem:[#allocation2 + $0x3c8] sm:$0xff]  ;;  %v1988_v49 = vunpack.c.h.s8.bf16 %v1795_v44  ;;  %v1858_v26 = vld [vmem:[#allocation2 + $0x3c0] sm:$0xff]  ;;  %v1987_v53 = vunpack.c.h.s8.bf16 %v1794_v25  ;;  %v1980_v55 = vunpack.c.l.s8.bf16 %v1795_v44  ;;  %v1979_v59 = vunpack.c.l.s8.bf16 %v1794_v25  ;;  %v1764_v44 = vld [vmem:[#allocation2 + $0xd0] sm:$0xff] }
 0x3ef   : > { %2172 = vmatprep.subr.bf16.mxu1 %v2036_v4  ;;  %v2116_v50 = vunpack.c.h.s8.bf16 %v1859_v46  ;;  %v2115_v54 = vunpack.c.h.s8.bf16 %v1858_v26  ;;  %v2108_v56 = vunpack.c.l.s8.bf16 %v1859_v46  ;;  %v1787_v57 = vld [vmem:[#allocation2 + $0x188] sm:$0xff]  ;;  %v2107_v60 = vunpack.c.l.s8.bf16 %v1858_v26  ;;  %v1786_v63 = vld [vmem:[#allocation2 + $0x180] sm:$0xff]  ;;  %v1828_v46 = vld [vmem:[#allocation2 + $0x2d0] sm:$0xff] }
 0x3f0   : > { %v1851_v58 = vld [vmem:[#allocation2 + $0x388] sm:$0xff]  ;;  %v1972_v61 = vunpack.c.h.s8.bf16 %v1787_v57  ;;  %v1850_v0 = vld [vmem:[#allocation2 + $0x380] sm:$0xff]  ;;  %v1971_v1 = vunpack.c.h.s8.bf16 %v1786_v63  ;;  %v1964_v3 = vunpack.c.l.s8.bf16 %v1787_v57  ;;  %v1918_v25 = vunpack.c.l.s8.bf16 %v1765_v37  ;;  %v1756_v57 = vld [vmem:[#allocation2 + $0x90] sm:$0xff] }
 0x3f1   : > { %2132 = vmatpush1.bf16.msra.mxu0 %v1907_v7  ;;  %v2100_v62 = vunpack.c.h.s8.bf16 %v1851_v58  ;;  %v2099_v2 = vunpack.c.h.s8.bf16 %v1850_v0  ;;  %v2092_v4 = vunpack.c.l.s8.bf16 %v1851_v58  ;;  %v1779_v5 = vld [vmem:[#allocation2 + $0x148] sm:$0xff]  ;;  %v1963_v7 = vunpack.c.l.s8.bf16 %v1786_v63  ;;  %v1778_v11 = vld [vmem:[#allocation2 + $0x140] sm:$0xff]  ;;  %v1820_v58 = vld [vmem:[#allocation2 + $0x290] sm:$0xff] }
 0x3f2   : > { %2173 = vmatpush1.bf16.msra.mxu1 %v2035_v8  ;;  %2133 = vmatprep.subr.bf16.mxu0 %v1900_v9  ;;  %v1843_v6 = vld [vmem:[#allocation2 + $0x348] sm:$0xff]  ;;  %v2091_v8 = vunpack.c.l.s8.bf16 %v1850_v0  ;;  %v1956_v9 = vunpack.c.h.s8.bf16 %v1779_v5  ;;  %v1842_v12 = vld [vmem:[#allocation2 + $0x340] sm:$0xff]  ;;  %v2046_v26 = vunpack.c.l.s8.bf16 %v1829_v38  ;;  %v1749_v63 = vld [vmem:[#allocation2 + $0x58] sm:$0xff] }
 0x3f3   : > { %2174 = vmatprep.subr.bf16.mxu1 %v2028_v10  ;;  %v2084_v10 = vunpack.c.h.s8.bf16 %v1843_v6  ;;  %v1771_v17 = vld [vmem:[#allocation2 + $0x108] sm:$0xff]  ;;  %v1770_v24 = vld [vmem:[#allocation2 + $0x100] sm:$0xff]  ;;  %v1813_v0 = vld [vmem:[#allocation2 + $0x258] sm:$0xff] }
 0x3f4   : > { %v1835_v19 = vld [vmem:[#allocation2 + $0x308] sm:$0xff]  ;;  %v1834_v27 = vld [vmem:[#allocation2 + $0x300] sm:$0xff] }
 0x3f5   : > { %2134 = vmatpush1.bf16.msra.mxu0 %v1899_v13  ;;  %v1955_v13 = vunpack.c.h.s8.bf16 %v1778_v11 }
 0x3f6   : > { %2175 = vmatpush1.bf16.msra.mxu1 %v2027_v14  ;;  %2135 = vmatprep.subr.bf16.mxu0 %v1892_v15  ;;  %v2083_v14 = vunpack.c.h.s8.bf16 %v1842_v12  ;;  %v1948_v15 = vunpack.c.l.s8.bf16 %v1779_v5  ;;  %v1748_v5 = vld [vmem:[#allocation2 + $0x50] sm:$0xff] }
 0x3f7   : > { %2176 = vmatprep.subr.bf16.mxu1 %v2020_v16  ;;  %v2076_v16 = vunpack.c.l.s8.bf16 %v1843_v6  ;;  %v1812_v6 = vld [vmem:[#allocation2 + $0x250] sm:$0xff] }
 0x3f9   : > { %2136 = vmatpush1.bf16.msra.mxu0 %v1891_v20  ;;  %v1947_v20 = vunpack.c.l.s8.bf16 %v1778_v11  ;;  %v1741_v11 = vld [vmem:[#allocation2 + $0x18] sm:$0xff] }
 0x3fa   : > { %2177 = vmatpush1.bf16.msra.mxu1 %v2019_v21  ;;  %2137 = vmatprep.subr.bf16.mxu0 %v1884_v22  ;;  %v2075_v21 = vunpack.c.l.s8.bf16 %v1842_v12  ;;  %v1940_v22 = vunpack.c.h.s8.bf16 %v1771_v17  ;;  %v1805_v12 = vld [vmem:[#allocation2 + $0x218] sm:$0xff] }
 0x3fb   : > { %2178 = vmatprep.subr.bf16.mxu1 %v2012_v23  ;;  %v2068_v23 = vunpack.c.h.s8.bf16 %v1835_v19 }
 0x3fd   : > { %2138 = vmatpush1.bf16.msra.mxu0 %v1883_v28  ;;  %v1939_v28 = vunpack.c.h.s8.bf16 %v1770_v24 }
 0x3fe   : > { %2179 = vmatpush1.bf16.msra.mxu1 %v2011_v29  ;;  %2139 = vmatprep.subr.bf16.mxu0 %v1876_v30  ;;  %v2067_v29 = vunpack.c.h.s8.bf16 %v1834_v27  ;;  %v1932_v30 = vunpack.c.l.s8.bf16 %v1771_v17  ;;  %v1740_v17 = vld [vmem:[#allocation2 + $0x10] sm:$0xff] }
 0x3ff   : > { %2180 = vmatprep.subr.bf16.mxu1 %v2004_v36  ;;  %v2060_v36 = vunpack.c.l.s8.bf16 %v1835_v19  ;;  %v1804_v19 = vld [vmem:[#allocation2 + $0x210] sm:$0xff] }
 0x401   : > { %2140 = vmatpush1.bf16.msra.mxu0 %v1875_v39  ;;  %v1931_v39 = vunpack.c.l.s8.bf16 %v1770_v24  ;;  %v1797_v24 = vld [vmem:[#allocation2 + $0x1d8] sm:$0xff] }
 0x402   : > { %2181 = vmatpush1.bf16.msra.mxu1 %v2003_v40  ;;  %2141 = vmatprep.subr.bf16.mxu0 %v1868_v41  ;;  %v2059_v40 = vunpack.c.l.s8.bf16 %v1834_v27  ;;  %v1926_v41 = vunpack.c.h.s8.bf16 %v1765_v37  ;;  %v1861_v27 = vld [vmem:[#allocation2 + $0x3d8] sm:$0xff]  ;;  %v1796_v37 = vld [vmem:[#allocation2 + $0x1d0] sm:$0xff] }
 0x403   : > { %2182 = vmatprep.subr.bf16.mxu1 %v1996_v42  ;;  %v2054_v42 = vunpack.c.h.s8.bf16 %v1829_v38  ;;  %v1860_v38 = vld [vmem:[#allocation2 + $0x3d0] sm:$0xff] }
 0x405   : > { %2142 = vmatpush1.bf16.msra.mxu0 %v1867_v47  ;;  %v6040_v47 = vpack.c.bf16 %v6024_v51, %v6024_v51  ;;  %v1917_v51 = vunpack.c.l.s8.bf16 %v1764_v44 }
 0x406   : > { %2183 = vmatpush1.bf16.msra.mxu1 %v1995_v48  ;;  %2143 = vmatprep.subr.bf16.mxu0 %v1988_v49  ;;  %v6044_v48 = vpack.c.bf16 %v6026_v31, %v6026_v31  ;;  %v1925_v49 = vunpack.c.h.s8.bf16 %v1764_v44  ;;  %v1789_v44 = vld [vmem:[#allocation2 + $0x198] sm:$0xff] }
 0x407   : > { %2184 = vmatprep.subr.bf16.mxu1 %v2116_v50  ;;  %v2053_v50 = vunpack.c.h.s8.bf16 %v1828_v46 }
 0x409   : > { %2144 = vmatpush2.bf16.msra.mxu0 %v1987_v53  ;;  %v1757_v53 = vld [vmem:[#allocation2 + $0x98] sm:$0xff] }
 0x40a   : > { %2185 = vmatpush2.bf16.msra.mxu1 %v2115_v54  ;;  %2145 = vmatprep.subr.bf16.mxu0 %v1980_v55  ;;  %v1821_v54 = vld [vmem:[#allocation2 + $0x298] sm:$0xff]  ;;  %v2045_v55 = vunpack.c.l.s8.bf16 %v1828_v46  ;;  %v1910_v31 = vunpack.c.h.s8.bf16 %v1757_v53 }
 0x40b   : > { %2186 = vmatprep.subr.bf16.mxu1 %v2108_v56  ;;  %v2038_v56 = vunpack.c.h.s8.bf16 %v1821_v54  ;;  %v1853_v46 = vld [vmem:[#allocation2 + $0x398] sm:$0xff] }
 0x40d   : > { %2146 = vmatpush2.bf16.msra.mxu0 %v1979_v59  ;;  %v1909_v59 = vunpack.c.h.s8.bf16 %v1756_v57 }
 0x40e   : > { %2187 = vmatpush2.bf16.msra.mxu1 %v2107_v60  ;;  %2147 = vmatprep.subr.bf16.mxu0 %v1972_v61  ;;  %v2037_v60 = vunpack.c.h.s8.bf16 %v1820_v58  ;;  %v1902_v61 = vunpack.c.l.s8.bf16 %v1757_v53  ;;  %v1788_v53 = vld [vmem:[#allocation2 + $0x190] sm:$0xff] }
 0x40f   : > { %2188 = vmatprep.subr.bf16.mxu1 %v2100_v62  ;;  %v2030_v62 = vunpack.c.l.s8.bf16 %v1821_v54  ;;  %v1852_v54 = vld [vmem:[#allocation2 + $0x390] sm:$0xff] }
 0x411   : > { %2148 = vmatpush2.bf16.msra.mxu0 %v1971_v1  ;;  %v1901_v1 = vunpack.c.l.s8.bf16 %v1756_v57  ;;  %v1781_v57 = vld [vmem:[#allocation2 + $0x158] sm:$0xff] }
 0x412   : > { %2189 = vmatpush2.bf16.msra.mxu1 %v2099_v2  ;;  %2149 = vmatprep.subr.bf16.mxu0 %v1964_v3  ;;  %v2029_v2 = vunpack.c.l.s8.bf16 %v1820_v58  ;;  %v1894_v3 = vunpack.c.h.s8.bf16 %v1749_v63  ;;  %v1845_v58 = vld [vmem:[#allocation2 + $0x358] sm:$0xff] }
 0x413   : > { %2190 = vmatprep.subr.bf16.mxu1 %v2092_v4  ;;  %v2022_v4 = vunpack.c.h.s8.bf16 %v1813_v0 }
 0x415   : > { %2150 = vmatpush2.bf16.msra.mxu0 %v1963_v7  ;;  %v1893_v7 = vunpack.c.h.s8.bf16 %v1748_v5 }
 0x416   : > { %2191 = vmatpush2.bf16.msra.mxu1 %v2091_v8  ;;  %2151 = vmatprep.subr.bf16.mxu0 %v1956_v9  ;;  %v2021_v8 = vunpack.c.h.s8.bf16 %v1812_v6  ;;  %v1886_v9 = vunpack.c.l.s8.bf16 %v1749_v63  ;;  %v1780_v63 = vld [vmem:[#allocation2 + $0x150] sm:$0xff] }
 0x417   : > { %2192 = vmatprep.subr.bf16.mxu1 %v2084_v10  ;;  %v2014_v10 = vunpack.c.l.s8.bf16 %v1813_v0  ;;  %v1844_v0 = vld [vmem:[#allocation2 + $0x350] sm:$0xff] }
 0x419   : > { %2152 = vmatpush2.bf16.msra.mxu0 %v1955_v13  ;;  %v1885_v13 = vunpack.c.l.s8.bf16 %v1748_v5  ;;  %v1773_v5 = vld [vmem:[#allocation2 + $0x118] sm:$0xff] }
 0x41a   : > { %2193 = vmatpush2.bf16.msra.mxu1 %v2083_v14  ;;  %2153 = vmatprep.subr.bf16.mxu0 %v1948_v15  ;;  %v2013_v14 = vunpack.c.l.s8.bf16 %v1812_v6  ;;  %v1878_v15 = vunpack.c.h.s8.bf16 %v1741_v11  ;;  %v1837_v6 = vld [vmem:[#allocation2 + $0x318] sm:$0xff] }
 0x41b   : > { %2194 = vmatprep.subr.bf16.mxu1 %v2076_v16  ;;  %v2006_v16 = vunpack.c.h.s8.bf16 %v1805_v12 }
 0x41d   : > { %2154 = vmatpush2.bf16.msra.mxu0 %v1947_v20  ;;  %v1877_v20 = vunpack.c.h.s8.bf16 %v1740_v17 }
 0x41e   : > { %2195 = vmatpush2.bf16.msra.mxu1 %v2075_v21  ;;  %2155 = vmatprep.subr.bf16.mxu0 %v1940_v22  ;;  %v2005_v21 = vunpack.c.h.s8.bf16 %v1804_v19  ;;  %v1870_v22 = vunpack.c.l.s8.bf16 %v1741_v11  ;;  %v1772_v11 = vld [vmem:[#allocation2 + $0x110] sm:$0xff] }
 0x41f   : > { %2196 = vmatprep.subr.bf16.mxu1 %v2068_v23  ;;  %v1998_v23 = vunpack.c.l.s8.bf16 %v1805_v12  ;;  %v1836_v12 = vld [vmem:[#allocation2 + $0x310] sm:$0xff] }
 0x421   : > { %2156 = vmatpush2.bf16.msra.mxu0 %v1939_v28  ;;  %v1869_v28 = vunpack.c.l.s8.bf16 %v1740_v17  ;;  %v1767_v17 = vld [vmem:[#allocation2 + $0xe8] sm:$0xff] }
 0x422   : > { %2197 = vmatpush2.bf16.msra.mxu1 %v2067_v29  ;;  %2157 = vmatprep.subr.bf16.mxu0 %v1932_v30  ;;  %v1997_v29 = vunpack.c.l.s8.bf16 %v1804_v19  ;;  %v1990_v30 = vunpack.c.h.s8.bf16 %v1797_v24  ;;  %v1831_v19 = vld [vmem:[#allocation2 + $0x2e8] sm:$0xff] }
 0x423   : > { %2198 = vmatprep.subr.bf16.mxu1 %v2060_v36  ;;  %v2118_v36 = vunpack.c.h.s8.bf16 %v1861_v27 }
 0x425   : > { %2158 = vmatpush2.bf16.msra.mxu0 %v1931_v39  ;;  %v1989_v39 = vunpack.c.h.s8.bf16 %v1796_v37 }
 0x426   : > { %2199 = vmatpush2.bf16.msra.mxu1 %v2059_v40  ;;  %2209 = vmatprep.subr.bf16.mxu0 %v1926_v41  ;;  %v2117_v40 = vunpack.c.h.s8.bf16 %v1860_v38  ;;  %v1982_v41 = vunpack.c.l.s8.bf16 %v1797_v24  ;;  %v1766_v24 = vld [vmem:[#allocation2 + $0xe0] sm:$0xff] }
 0x427   : > { %2250 = vmatprep.subr.bf16.mxu1 %v2054_v42  ;;  %v2110_v42 = vunpack.c.l.s8.bf16 %v1861_v27  ;;  %v1830_v27 = vld [vmem:[#allocation2 + $0x2e0] sm:$0xff] }
 0x428   : > { %2160 = vmatmul.mubr.bf16.vlgmr.msra.gmra.mxu0 %v6040_v47 }
 0x429   : > { %2201 = vmatmul.mubr.bf16.vlgmr.msra.gmra.mxu1 %v6044_v48  ;;  %2210 = vmatpush1.bf16.msra.mxu0 %v1925_v49  ;;  %v1981_v49 = vunpack.c.l.s8.bf16 %v1796_v37  ;;  %v1759_v37 = vld [vmem:[#allocation2 + $0xa8] sm:$0xff] }
 0x42a   : > { %2251 = vmatpush1.bf16.msra.mxu1 %v2053_v50  ;;  %2211 = vmatprep.subr.bf16.mxu0 %v1918_v25  ;;  %v2109_v50 = vunpack.c.l.s8.bf16 %v1860_v38  ;;  %v1974_v25 = vunpack.c.h.s8.bf16 %v1789_v44  ;;  %v1823_v38 = vld [vmem:[#allocation2 + $0x2a8] sm:$0xff] }
 0x42b   : > { %2252 = vmatprep.subr.bf16.mxu1 %v2046_v26  ;;  %2241 = vmatprep.mubr.bf16.mxu0 %v6032_v34  ;;  %v2102_v26 = vunpack.c.h.s8.bf16 %v1853_v46 }
 0x42c   : > { %2282 = vmatprep.mubr.bf16.mxu1 %v6034_v52 }
 0x42d   : > { %2212 = vmatpush1.bf16.msra.mxu0 %v1917_v51  ;;  %v1973_v51 = vunpack.c.h.s8.bf16 %v1788_v53 }
 0x42e   : > { %2253 = vmatpush1.bf16.msra.mxu1 %v2045_v55  ;;  %2213 = vmatprep.subr.bf16.mxu0 %v1910_v31  ;;  %v2101_v55 = vunpack.c.h.s8.bf16 %v1852_v54  ;;  %v1966_v31 = vunpack.c.l.s8.bf16 %v1789_v44  ;;  %v1758_v44 = vld [vmem:[#allocation2 + $0xa0] sm:$0xff] }
 0x42f   : > { %2254 = vmatprep.subr.bf16.mxu1 %v2038_v56  ;;  %v2094_v56 = vunpack.c.l.s8.bf16 %v1853_v46  ;;  %v1822_v46 = vld [vmem:[#allocation2 + $0x2a0] sm:$0xff] }
 0x431   : > { %2214 = vmatpush1.bf16.msra.mxu0 %v1909_v59  ;;  %v1965_v59 = vunpack.c.l.s8.bf16 %v1788_v53  ;;  %v1751_v53 = vld [vmem:[#allocation2 + $0x68] sm:$0xff] }
 0x432   : > { %2255 = vmatpush1.bf16.msra.mxu1 %v2037_v60  ;;  %2215 = vmatprep.subr.bf16.mxu0 %v1902_v61  ;;  %v2093_v60 = vunpack.c.l.s8.bf16 %v1852_v54  ;;  %v1958_v61 = vunpack.c.h.s8.bf16 %v1781_v57  ;;  %v1815_v54 = vld [vmem:[#allocation2 + $0x268] sm:$0xff] }
 0x433   : > { %2256 = vmatprep.subr.bf16.mxu1 %v2030_v62  ;;  %v2086_v62 = vunpack.c.h.s8.bf16 %v1845_v58 }
 0x435   : > { %2216 = vmatpush1.bf16.msra.mxu0 %v1901_v1  ;;  %v1957_v1 = vunpack.c.h.s8.bf16 %v1780_v63 }
 0x436   : > { %2257 = vmatpush1.bf16.msra.mxu1 %v2029_v2  ;;  %2217 = vmatprep.subr.bf16.mxu0 %v1894_v3  ;;  %v2085_v2 = vunpack.c.h.s8.bf16 %v1844_v0  ;;  %v1950_v3 = vunpack.c.l.s8.bf16 %v1781_v57  ;;  %v1750_v57 = vld [vmem:[#allocation2 + $0x60] sm:$0xff] }
 0x437   : > { %2258 = vmatprep.subr.bf16.mxu1 %v2022_v4  ;;  %v2078_v4 = vunpack.c.l.s8.bf16 %v1845_v58  ;;  %v1814_v58 = vld [vmem:[#allocation2 + $0x260] sm:$0xff] }
 0x439   : > { %2218 = vmatpush1.bf16.msra.mxu0 %v1893_v7  ;;  %v1949_v7 = vunpack.c.l.s8.bf16 %v1780_v63  ;;  %v1743_v63 = vld [vmem:[#allocation2 + $0x28] sm:$0xff] }
 0x43a   : > { %2259 = vmatpush1.bf16.msra.mxu1 %v2021_v8  ;;  %2219 = vmatprep.subr.bf16.mxu0 %v1886_v9  ;;  %v2077_v8 = vunpack.c.l.s8.bf16 %v1844_v0  ;;  %v1942_v9 = vunpack.c.h.s8.bf16 %v1773_v5  ;;  %v1807_v0 = vld [vmem:[#allocation2 + $0x228] sm:$0xff] }
 0x43b   : > { %2260 = vmatprep.subr.bf16.mxu1 %v2014_v10  ;;  %v2070_v10 = vunpack.c.h.s8.bf16 %v1837_v6 }
 0x43d   : > { %2220 = vmatpush1.bf16.msra.mxu0 %v1885_v13  ;;  %v1941_v13 = vunpack.c.h.s8.bf16 %v1772_v11 }
 0x43e   : > { %2261 = vmatpush1.bf16.msra.mxu1 %v2013_v14  ;;  %2221 = vmatprep.subr.bf16.mxu0 %v1878_v15  ;;  %v2069_v14 = vunpack.c.h.s8.bf16 %v1836_v12  ;;  %v1934_v15 = vunpack.c.l.s8.bf16 %v1773_v5  ;;  %v1742_v5 = vld [vmem:[#allocation2 + $0x20] sm:$0xff] }
 0x43f   : > { %2262 = vmatprep.subr.bf16.mxu1 %v2006_v16  ;;  %v2062_v16 = vunpack.c.l.s8.bf16 %v1837_v6  ;;  %v1806_v6 = vld [vmem:[#allocation2 + $0x220] sm:$0xff] }
 0x441   : > { %2222 = vmatpush1.bf16.msra.mxu0 %v1877_v20  ;;  %v1933_v20 = vunpack.c.l.s8.bf16 %v1772_v11  ;;  %v1799_v11 = vld [vmem:[#allocation2 + $0x1e8] sm:$0xff] }
 0x442   : > { %2263 = vmatpush1.bf16.msra.mxu1 %v2005_v21  ;;  %2223 = vmatprep.subr.bf16.mxu0 %v1870_v22  ;;  %v2061_v21 = vunpack.c.l.s8.bf16 %v1836_v12  ;;  %v1928_v22 = vunpack.c.h.s8.bf16 %v1767_v17  ;;  %v1863_v12 = vld [vmem:[#allocation2 + $0x3e8] sm:$0xff] }
 0x443   : > { %2264 = vmatprep.subr.bf16.mxu1 %v1998_v23  ;;  %v2056_v23 = vunpack.c.h.s8.bf16 %v1831_v19 }
 0x445   : > { %2224 = vmatpush1.bf16.msra.mxu0 %v1869_v28  ;;  %v1927_v28 = vunpack.c.h.s8.bf16 %v1766_v24 }
 0x446   : > { %2265 = vmatpush1.bf16.msra.mxu1 %v1997_v29  ;;  %2225 = vmatprep.subr.bf16.mxu0 %v1990_v30  ;;  %v2055_v29 = vunpack.c.h.s8.bf16 %v1830_v27  ;;  %v1920_v30 = vunpack.c.l.s8.bf16 %v1767_v17  ;;  %v1798_v17 = vld [vmem:[#allocation2 + $0x1e0] sm:$0xff] }
 0x447   : > { %2266 = vmatprep.subr.bf16.mxu1 %v2118_v36  ;;  %v2048_v36 = vunpack.c.l.s8.bf16 %v1831_v19  ;;  %v1862_v19 = vld [vmem:[#allocation2 + $0x3e0] sm:$0xff] }
 0x449   : > { %2226 = vmatpush2.bf16.msra.mxu0 %v1989_v39  ;;  %v1919_v39 = vunpack.c.l.s8.bf16 %v1766_v24  ;;  %v1791_v24 = vld [vmem:[#allocation2 + $0x1a8] sm:$0xff] }
 0x44a   : > { %2267 = vmatpush2.bf16.msra.mxu1 %v2117_v40  ;;  %2227 = vmatprep.subr.bf16.mxu0 %v1982_v41  ;;  %v2047_v40 = vunpack.c.l.s8.bf16 %v1830_v27  ;;  %v1912_v41 = vunpack.c.h.s8.bf16 %v1759_v37  ;;  %v1855_v27 = vld [vmem:[#allocation2 + $0x3a8] sm:$0xff] }
 0x44b   : > { %2268 = vmatprep.subr.bf16.mxu1 %v2110_v42  ;;  %v2040_v42 = vunpack.c.h.s8.bf16 %v1823_v38 }
 0x44d   : > { %2228 = vmatpush2.bf16.msra.mxu0 %v1981_v49  ;;  %v1911_v49 = vunpack.c.h.s8.bf16 %v1758_v44 }
 0x44e   : > { %2269 = vmatpush2.bf16.msra.mxu1 %v2109_v50  ;;  %2229 = vmatprep.subr.bf16.mxu0 %v1974_v25  ;;  %v2039_v50 = vunpack.c.h.s8.bf16 %v1822_v46  ;;  %v1904_v25 = vunpack.c.l.s8.bf16 %v1759_v37  ;;  %v1790_v37 = vld [vmem:[#allocation2 + $0x1a0] sm:$0xff] }
 0x44f   : > { %2270 = vmatprep.subr.bf16.mxu1 %v2102_v26  ;;  %v2032_v26 = vunpack.c.l.s8.bf16 %v1823_v38  ;;  %v1854_v38 = vld [vmem:[#allocation2 + $0x3a0] sm:$0xff] }
 0x451   : > { %2230 = vmatpush2.bf16.msra.mxu0 %v1973_v51  ;;  %v1903_v51 = vunpack.c.l.s8.bf16 %v1758_v44  ;;  %v1783_v44 = vld [vmem:[#allocation2 + $0x168] sm:$0xff] }
 0x452   : > { %2271 = vmatpush2.bf16.msra.mxu1 %v2101_v55  ;;  %2231 = vmatprep.subr.bf16.mxu0 %v1966_v31  ;;  %v2031_v55 = vunpack.c.l.s8.bf16 %v1822_v46  ;;  %v1896_v31 = vunpack.c.h.s8.bf16 %v1751_v53  ;;  %v1847_v46 = vld [vmem:[#allocation2 + $0x368] sm:$0xff] }
 0x453   : > { %2272 = vmatprep.subr.bf16.mxu1 %v2094_v56  ;;  %v2024_v56 = vunpack.c.h.s8.bf16 %v1815_v54 }
 0x455   : > { %2232 = vmatpush2.bf16.msra.mxu0 %v1965_v59  ;;  %v1895_v59 = vunpack.c.h.s8.bf16 %v1750_v57 }
 0x456   : > { %2273 = vmatpush2.bf16.msra.mxu1 %v2093_v60  ;;  %2233 = vmatprep.subr.bf16.mxu0 %v1958_v61  ;;  %v2023_v60 = vunpack.c.h.s8.bf16 %v1814_v58  ;;  %v1888_v61 = vunpack.c.l.s8.bf16 %v1751_v53  ;;  %v1782_v53 = vld [vmem:[#allocation2 + $0x160] sm:$0xff] }
 0x457   : > { %2274 = vmatprep.subr.bf16.mxu1 %v2086_v62  ;;  %v2016_v62 = vunpack.c.l.s8.bf16 %v1815_v54  ;;  %v1846_v54 = vld [vmem:[#allocation2 + $0x360] sm:$0xff] }
 0x459   : > { %2234 = vmatpush2.bf16.msra.mxu0 %v1957_v1  ;;  %v1887_v1 = vunpack.c.l.s8.bf16 %v1750_v57  ;;  %v1775_v57 = vld [vmem:[#allocation2 + $0x128] sm:$0xff] }
 0x45a   : > { %2275 = vmatpush2.bf16.msra.mxu1 %v2085_v2  ;;  %2235 = vmatprep.subr.bf16.mxu0 %v1950_v3  ;;  %v2015_v2 = vunpack.c.l.s8.bf16 %v1814_v58  ;;  %v1880_v3 = vunpack.c.h.s8.bf16 %v1743_v63  ;;  %v1839_v58 = vld [vmem:[#allocation2 + $0x328] sm:$0xff] }
 0x45b   : > { %2276 = vmatprep.subr.bf16.mxu1 %v2078_v4  ;;  %v2008_v4 = vunpack.c.h.s8.bf16 %v1807_v0 }
 0x45d   : > { %2236 = vmatpush2.bf16.msra.mxu0 %v1949_v7  ;;  %v1879_v7 = vunpack.c.h.s8.bf16 %v1742_v5 }
 0x45e   : > { %2277 = vmatpush2.bf16.msra.mxu1 %v2077_v8  ;;  %2237 = vmatprep.subr.bf16.mxu0 %v1942_v9  ;;  %v2007_v8 = vunpack.c.h.s8.bf16 %v1806_v6  ;;  %v1872_v9 = vunpack.c.l.s8.bf16 %v1743_v63  ;;  %v1774_v63 = vld [vmem:[#allocation2 + $0x120] sm:$0xff] }
 0x45f   : > { %2278 = vmatprep.subr.bf16.mxu1 %v2070_v10  ;;  %v2000_v10 = vunpack.c.l.s8.bf16 %v1807_v0  ;;  %v1838_v0 = vld [vmem:[#allocation2 + $0x320] sm:$0xff] }
 0x461   : > { %2238 = vmatpush2.bf16.msra.mxu0 %v1941_v13  ;;  %v1871_v13 = vunpack.c.l.s8.bf16 %v1742_v5  ;;  %v1769_v5 = vld [vmem:[#allocation2 + $0xf8] sm:$0xff] }
 0x462   : > { %2279 = vmatpush2.bf16.msra.mxu1 %v2069_v14  ;;  %2239 = vmatprep.subr.bf16.mxu0 %v1934_v15  ;;  %v1999_v14 = vunpack.c.l.s8.bf16 %v1806_v6  ;;  %v1992_v15 = vunpack.c.h.s8.bf16 %v1799_v11  ;;  %v1833_v6 = vld [vmem:[#allocation2 + $0x2f8] sm:$0xff] }
 0x463   : > { %2280 = vmatprep.subr.bf16.mxu1 %v2062_v16  ;;  %v2120_v16 = vunpack.c.h.s8.bf16 %v1863_v12 }
 0x465   : > { %2240 = vmatpush2.bf16.msra.mxu0 %v1933_v20  ;;  %v1991_v20 = vunpack.c.h.s8.bf16 %v1798_v17 }
 0x466   : > { %2281 = vmatpush2.bf16.msra.mxu1 %v2061_v21  ;;  %2291 = vmatprep.subr.bf16.mxu0 %v1928_v22  ;;  %v2119_v21 = vunpack.c.h.s8.bf16 %v1862_v19  ;;  %v1984_v22 = vunpack.c.l.s8.bf16 %v1799_v11  ;;  %v1768_v11 = vld [vmem:[#allocation2 + $0xf0] sm:$0xff] }
 0x467   : > { %2332 = vmatprep.subr.bf16.mxu1 %v2056_v23  ;;  %v2112_v23 = vunpack.c.l.s8.bf16 %v1863_v12  ;;  %v1832_v12 = vld [vmem:[#allocation2 + $0x2f0] sm:$0xff] }
 0x468   : > { %2242 = vmatmul.mubr.bf16.vlgmr.msra.gmra.mxu0 %v6040_v47 }
 0x469   : > { %2283 = vmatmul.mubr.bf16.vlgmr.msra.gmra.mxu1 %v6044_v48  ;;  %2292 = vmatpush1.bf16.msra.mxu0 %v1927_v28  ;;  %v1983_v28 = vunpack.c.l.s8.bf16 %v1798_v17  ;;  %v1761_v17 = vld [vmem:[#allocation2 + $0xb8] sm:$0xff] }
 0x46a   : > { %2333 = vmatpush1.bf16.msra.mxu1 %v2055_v29  ;;  %2293 = vmatprep.subr.bf16.mxu0 %v1920_v30  ;;  %v2111_v29 = vunpack.c.l.s8.bf16 %v1862_v19  ;;  %v1976_v30 = vunpack.c.h.s8.bf16 %v1791_v24  ;;  %v1825_v19 = vld [vmem:[#allocation2 + $0x2b8] sm:$0xff] }
 0x46b   : > { %2334 = vmatprep.subr.bf16.mxu1 %v2048_v36  ;;  %2323 = vmatprep.mubr.bf16.mxu0 %v6032_v34  ;;  %v2104_v36 = vunpack.c.h.s8.bf16 %v1855_v27 }
 0x46c   : > { %2364 = vmatprep.mubr.bf16.mxu1 %v6034_v52 }
 0x46d   : > { %2294 = vmatpush1.bf16.msra.mxu0 %v1919_v39  ;;  %v1975_v39 = vunpack.c.h.s8.bf16 %v1790_v37 }
 0x46e   : > { %2335 = vmatpush1.bf16.msra.mxu1 %v2047_v40  ;;  %2295 = vmatprep.subr.bf16.mxu0 %v1912_v41  ;;  %v2103_v40 = vunpack.c.h.s8.bf16 %v1854_v38  ;;  %v1968_v41 = vunpack.c.l.s8.bf16 %v1791_v24  ;;  %v1760_v24 = vld [vmem:[#allocation2 + $0xb0] sm:$0xff] }
 0x46f   : > { %2336 = vmatprep.subr.bf16.mxu1 %v2040_v42  ;;  %v2096_v42 = vunpack.c.l.s8.bf16 %v1855_v27  ;;  %v1824_v27 = vld [vmem:[#allocation2 + $0x2b0] sm:$0xff] }
 0x471   : > { %2296 = vmatpush1.bf16.msra.mxu0 %v1911_v49  ;;  %v1967_v49 = vunpack.c.l.s8.bf16 %v1790_v37  ;;  %v1753_v37 = vld [vmem:[#allocation2 + $0x78] sm:$0xff] }
 0x472   : > { %2337 = vmatpush1.bf16.msra.mxu1 %v2039_v50  ;;  %2297 = vmatprep.subr.bf16.mxu0 %v1904_v25  ;;  %v2095_v50 = vunpack.c.l.s8.bf16 %v1854_v38  ;;  %v1960_v25 = vunpack.c.h.s8.bf16 %v1783_v44  ;;  %v1817_v38 = vld [vmem:[#allocation2 + $0x278] sm:$0xff] }
 0x473   : > { %2338 = vmatprep.subr.bf16.mxu1 %v2032_v26  ;;  %v2088_v26 = vunpack.c.h.s8.bf16 %v1847_v46 }
 0x475   : > { %2298 = vmatpush1.bf16.msra.mxu0 %v1903_v51  ;;  %v1959_v51 = vunpack.c.h.s8.bf16 %v1782_v53 }
 0x476   : > { %2339 = vmatpush1.bf16.msra.mxu1 %v2031_v55  ;;  %2299 = vmatprep.subr.bf16.mxu0 %v1896_v31  ;;  %v2087_v55 = vunpack.c.h.s8.bf16 %v1846_v54  ;;  %v1952_v31 = vunpack.c.l.s8.bf16 %v1783_v44 }
 0x477   : > { %2340 = vmatprep.subr.bf16.mxu1 %v2024_v56  ;;  %v2080_v56 = vunpack.c.l.s8.bf16 %v1847_v46 }
 0x479   : > { %2300 = vmatpush1.bf16.msra.mxu0 %v1895_v59  ;;  %v1951_v59 = vunpack.c.l.s8.bf16 %v1782_v53 }
 0x47a   : > { %2341 = vmatpush1.bf16.msra.mxu1 %v2023_v60  ;;  %2301 = vmatprep.subr.bf16.mxu0 %v1888_v61  ;;  %v2079_v60 = vunpack.c.l.s8.bf16 %v1846_v54  ;;  %v1944_v61 = vunpack.c.h.s8.bf16 %v1775_v57 }
 0x47b   : > { %2342 = vmatprep.subr.bf16.mxu1 %v2016_v62  ;;  %v2072_v62 = vunpack.c.h.s8.bf16 %v1839_v58 }
 0x47d   : > { %2302 = vmatpush1.bf16.msra.mxu0 %v1887_v1  ;;  %v1943_v1 = vunpack.c.h.s8.bf16 %v1774_v63 }
 0x47e   : > { %2343 = vmatpush1.bf16.msra.mxu1 %v2015_v2  ;;  %2303 = vmatprep.subr.bf16.mxu0 %v1880_v3  ;;  %v2071_v2 = vunpack.c.h.s8.bf16 %v1838_v0  ;;  %v1936_v3 = vunpack.c.l.s8.bf16 %v1775_v57 }
 0x47f   : > { %2344 = vmatprep.subr.bf16.mxu1 %v2008_v4  ;;  %v2064_v4 = vunpack.c.l.s8.bf16 %v1839_v58 }
 0x481   : > { %2304 = vmatpush1.bf16.msra.mxu0 %v1879_v7  ;;  %v1935_v7 = vunpack.c.l.s8.bf16 %v1774_v63 }
 0x482   : > { %2345 = vmatpush1.bf16.msra.mxu1 %v2007_v8  ;;  %2305 = vmatprep.subr.bf16.mxu0 %v1872_v9  ;;  %v2063_v8 = vunpack.c.l.s8.bf16 %v1838_v0  ;;  %v1930_v9 = vunpack.c.h.s8.bf16 %v1769_v5 }
 0x483   : > { %2346 = vmatprep.subr.bf16.mxu1 %v2000_v10  ;;  %v2058_v10 = vunpack.c.h.s8.bf16 %v1833_v6 }
 0x485   : > { %2306 = vmatpush1.bf16.msra.mxu0 %v1871_v13  ;;  %v1929_v13 = vunpack.c.h.s8.bf16 %v1768_v11 }
 0x486   : > { %2347 = vmatpush1.bf16.msra.mxu1 %v1999_v14  ;;  %2307 = vmatprep.subr.bf16.mxu0 %v1992_v15  ;;  %v2057_v14 = vunpack.c.h.s8.bf16 %v1832_v12  ;;  %v1922_v15 = vunpack.c.l.s8.bf16 %v1769_v5 }
 0x487   : > { %2348 = vmatprep.subr.bf16.mxu1 %v2120_v16  ;;  %v2050_v16 = vunpack.c.l.s8.bf16 %v1833_v6 }
 0x489   : > { %2308 = vmatpush2.bf16.msra.mxu0 %v1991_v20  ;;  %v1921_v20 = vunpack.c.l.s8.bf16 %v1768_v11 }
 0x48a   : > { %2349 = vmatpush2.bf16.msra.mxu1 %v2119_v21  ;;  %2309 = vmatprep.subr.bf16.mxu0 %v1984_v22  ;;  %v2049_v21 = vunpack.c.l.s8.bf16 %v1832_v12  ;;  %v1914_v22 = vunpack.c.h.s8.bf16 %v1761_v17 }
 0x48b   : > { %2350 = vmatprep.subr.bf16.mxu1 %v2112_v23  ;;  %v2042_v23 = vunpack.c.h.s8.bf16 %v1825_v19 }
 0x48d   : > { %2310 = vmatpush2.bf16.msra.mxu0 %v1983_v28  ;;  %v1913_v28 = vunpack.c.h.s8.bf16 %v1760_v24 }
 0x48e   : > { %2351 = vmatpush2.bf16.msra.mxu1 %v2111_v29  ;;  %2311 = vmatprep.subr.bf16.mxu0 %v1976_v30  ;;  %v2041_v29 = vunpack.c.h.s8.bf16 %v1824_v27  ;;  %v1906_v30 = vunpack.c.l.s8.bf16 %v1761_v17 }
 0x48f   : > { %2352 = vmatprep.subr.bf16.mxu1 %v2104_v36  ;;  %v2034_v36 = vunpack.c.l.s8.bf16 %v1825_v19 }
 0x491   : > { %2312 = vmatpush2.bf16.msra.mxu0 %v1975_v39  ;;  %v1905_v39 = vunpack.c.l.s8.bf16 %v1760_v24 }
 0x492   : > { %2353 = vmatpush2.bf16.msra.mxu1 %v2103_v40  ;;  %2313 = vmatprep.subr.bf16.mxu0 %v1968_v41  ;;  %v2033_v40 = vunpack.c.l.s8.bf16 %v1824_v27  ;;  %v1898_v41 = vunpack.c.h.s8.bf16 %v1753_v37 }
 0x493   : > { %2354 = vmatprep.subr.bf16.mxu1 %v2096_v42  ;;  %v1752_v42 = vld [vmem:[#allocation2 + $0x70] sm:$0xff] }
 0x494   : > { %v1897_v44 = vunpack.c.h.s8.bf16 %v1752_v42  ;;  %v1889_v53 = vunpack.c.l.s8.bf16 %v1752_v42 }
 0x495   : > { %2314 = vmatpush2.bf16.msra.mxu0 %v1967_v49  ;;  %v1890_v49 = vunpack.c.l.s8.bf16 %v1753_v37 }
 0x496   : > { %2355 = vmatpush2.bf16.msra.mxu1 %v2095_v50  ;;  %2315 = vmatprep.subr.bf16.mxu0 %v1960_v25  ;;  %v2018_v50 = vunpack.c.l.s8.bf16 %v1817_v38  ;;  %v1745_v25 = vld [vmem:[#allocation2 + $0x38] sm:$0xff] }
 0x497   : > { %2356 = vmatprep.subr.bf16.mxu1 %v2088_v26  ;;  %v1809_v26 = vld [vmem:[#allocation2 + $0x238] sm:$0xff] }
 0x499   : > { %2316 = vmatpush2.bf16.msra.mxu0 %v1959_v51  ;;  %v1882_v51 = vunpack.c.h.s8.bf16 %v1745_v25 }
 0x49a   : > { %2357 = vmatpush2.bf16.msra.mxu1 %v2087_v55  ;;  %2317 = vmatprep.subr.bf16.mxu0 %v1952_v31  ;;  %v2010_v55 = vunpack.c.h.s8.bf16 %v1809_v26  ;;  %v1744_v31 = vld [vmem:[#allocation2 + $0x30] sm:$0xff] }
 0x49b   : > { %2358 = vmatprep.subr.bf16.mxu1 %v2080_v56  ;;  %v1808_v56 = vld [vmem:[#allocation2 + $0x230] sm:$0xff]  ;;  %v1881_v57 = vunpack.c.h.s8.bf16 %v1744_v31  ;;  %v1873_v63 = vunpack.c.l.s8.bf16 %v1744_v31  ;;  %v6061_v31 = vld [vmem:[%s6408_s21] sm:$0xff] }
 0x49c   : > { %v2009_v58 = vunpack.c.h.s8.bf16 %v1808_v56  ;;  %v2001_v0 = vunpack.c.l.s8.bf16 %v1808_v56  ;;  %v6063_v56 = vld [vmem:[#allocation19] sm:$0xff] }
 0x49d   : > { %2318 = vmatpush2.bf16.msra.mxu0 %v1951_v59  ;;  %v1874_v59 = vunpack.c.l.s8.bf16 %v1745_v25 }
 0x49e   : > { %2359 = vmatpush2.bf16.msra.mxu1 %v2079_v60  ;;  %2319 = vmatprep.subr.bf16.mxu0 %v1944_v61  ;;  %v2002_v60 = vunpack.c.l.s8.bf16 %v1809_v26  ;;  %v1801_v61 = vld [vmem:[#allocation2 + $0x1f8] sm:$0xff] }
 0x49f   : > { %2360 = vmatprep.subr.bf16.mxu1 %v2072_v62  ;;  %v1865_v62 = vld [vmem:[#allocation2 + $0x3f8] sm:$0xff] }
 0x4a1   : > { %2320 = vmatpush2.bf16.msra.mxu0 %v1943_v1  ;;  %v1994_v1 = vunpack.c.h.s8.bf16 %v1801_v61 }
 0x4a2   : > { %2361 = vmatpush2.bf16.msra.mxu1 %v2071_v2  ;;  %2321 = vmatprep.subr.bf16.mxu0 %v1936_v3  ;;  %v2122_v2 = vunpack.c.h.s8.bf16 %v1865_v62  ;;  %v1800_v3 = vld [vmem:[#allocation2 + $0x1f0] sm:$0xff] }
 0x4a3   : > { %2362 = vmatprep.subr.bf16.mxu1 %v2064_v4  ;;  %v1864_v4 = vld [vmem:[#allocation2 + $0x3f0] sm:$0xff]  ;;  %v1993_v5 = vunpack.c.h.s8.bf16 %v1800_v3  ;;  %v1985_v11 = vunpack.c.l.s8.bf16 %v1800_v3  ;;  %v2513_v3 = vrot.slane %v6063_v56, %v5954_v35 }
 0x4a4   : > { %v2121_v6 = vunpack.c.h.s8.bf16 %v1864_v4  ;;  %v2113_v12 = vunpack.c.l.s8.bf16 %v1864_v4 }
 0x4a5   : > { %2322 = vmatpush2.bf16.msra.mxu0 %v1935_v7  ;;  %v1986_v7 = vunpack.c.l.s8.bf16 %v1801_v61  ;;  %v2509_v61 = vrot.slane %v6063_v56, %v5951_v33 }
 0x4a6   : > { %2363 = vmatpush2.bf16.msra.mxu1 %v2063_v8  ;;  %2373 = vmatprep.subr.bf16.mxu0 %v1930_v9  ;;  %v2114_v8 = vunpack.c.l.s8.bf16 %v1865_v62  ;;  %v1793_v9 = vld [vmem:[#allocation2 + $0x1b8] sm:$0xff]  ;;  %v2463_v62 = vrot.slane %v6061_v31, %v5954_v35 }
 0x4a7   : > { %2414 = vmatprep.subr.bf16.mxu1 %v2058_v10  ;;  %v1857_v10 = vld [vmem:[#allocation2 + $0x3b8] sm:$0xff] }
 0x4a8   : > { %2324 = vmatmul.mubr.bf16.vlgmr.msra.gmra.mxu0 %v6040_v47 }
 0x4a9   : > { %2365 = vmatmul.mubr.bf16.vlgmr.msra.gmra.mxu1 %v6044_v48  ;;  %2374 = vmatpush1.bf16.msra.mxu0 %v1929_v13  ;;  %v1978_v13 = vunpack.c.h.s8.bf16 %v1793_v9 }
 0x4aa   : > { %2415 = vmatpush1.bf16.msra.mxu1 %v2057_v14  ;;  %2375 = vmatprep.subr.bf16.mxu0 %v1922_v15  ;;  %v2106_v14 = vunpack.c.h.s8.bf16 %v1857_v10  ;;  %v1792_v15 = vld [vmem:[#allocation2 + $0x1b0] sm:$0xff] }
 0x4ab   : > { %2416 = vmatprep.subr.bf16.mxu1 %v2050_v16  ;;  %2405 = vmatprep.mubr.bf16.mxu0 %v6032_v34  ;;  %v2026_v34 = vunpack.c.h.s8.bf16 %v1817_v38  ;;  %v1856_v16 = vld [vmem:[#allocation2 + $0x3b0] sm:$0xff]  ;;  %v1977_v17 = vunpack.c.h.s8.bf16 %v1792_v15  ;;  %v1969_v24 = vunpack.c.l.s8.bf16 %v1792_v15 }
 0x4ac   : > { %2446 = vmatprep.mubr.bf16.mxu1 %v6034_v52  ;;  %v1816_v52 = vld [vmem:[#allocation2 + $0x270] sm:$0xff]  ;;  %v2105_v19 = vunpack.c.h.s8.bf16 %v1856_v16  ;;  %v2097_v27 = vunpack.c.l.s8.bf16 %v1856_v16 }
 0x4ad   : > { %2376 = vmatpush1.bf16.msra.mxu0 %v1921_v20  ;;  %v2025_v46 = vunpack.c.h.s8.bf16 %v1816_v52  ;;  %v2017_v54 = vunpack.c.l.s8.bf16 %v1816_v52  ;;  %v1970_v20 = vunpack.c.l.s8.bf16 %v1793_v9 }
 0x4ae   : > { %2417 = vmatpush1.bf16.msra.mxu1 %v2049_v21  ;;  %2377 = vmatprep.subr.bf16.mxu0 %v1914_v22  ;;  %v2098_v21 = vunpack.c.l.s8.bf16 %v1857_v10  ;;  %v1785_v22 = vld [vmem:[#allocation2 + $0x178] sm:$0xff] }
 0x4af   : > { %2418 = vmatprep.subr.bf16.mxu1 %v2042_v23  ;;  %v1849_v23 = vld [vmem:[#allocation2 + $0x378] sm:$0xff] }
 0x4b1   : > { %2378 = vmatpush1.bf16.msra.mxu0 %v1913_v28  ;;  %v1962_v28 = vunpack.c.h.s8.bf16 %v1785_v22 }
 0x4b2   : > { %2419 = vmatpush1.bf16.msra.mxu1 %v2041_v29  ;;  %2379 = vmatprep.subr.bf16.mxu0 %v1906_v30  ;;  %v2090_v29 = vunpack.c.h.s8.bf16 %v1849_v23  ;;  %v1784_v30 = vld [vmem:[#allocation2 + $0x170] sm:$0xff] }
 0x4b3   : > { %2420 = vmatprep.subr.bf16.mxu1 %v2034_v36  ;;  %v1848_v36 = vld [vmem:[#allocation2 + $0x370] sm:$0xff]  ;;  %v1961_v37 = vunpack.c.h.s8.bf16 %v1784_v30  ;;  %v1953_v42 = vunpack.c.l.s8.bf16 %v1784_v30 }
 0x4b4   : > { %v2089_v38 = vunpack.c.h.s8.bf16 %v1848_v36  ;;  %v2081_v52 = vunpack.c.l.s8.bf16 %v1848_v36 }
 0x4b5   : > { %2380 = vmatpush1.bf16.msra.mxu0 %v1905_v39  ;;  %v1954_v39 = vunpack.c.l.s8.bf16 %v1785_v22 }
 0x4b6   : > { %2421 = vmatpush1.bf16.msra.mxu1 %v2033_v40  ;;  %2381 = vmatprep.subr.bf16.mxu0 %v1898_v41  ;;  %v2082_v40 = vunpack.c.l.s8.bf16 %v1849_v23  ;;  %v1777_v41 = vld [vmem:[#allocation2 + $0x138] sm:$0xff] }
 0x4b7   : > { %2422 = vmatprep.subr.bf16.mxu1 %v2026_v34  ;;  %v1841_v34 = vld [vmem:[#allocation2 + $0x338] sm:$0xff] }
 0x4b9   : > { %2382 = vmatpush1.bf16.msra.mxu0 %v1897_v44  ;;  %v1946_v44 = vunpack.c.h.s8.bf16 %v1777_v41 }
 0x4ba   : > { %2423 = vmatpush1.bf16.msra.mxu1 %v2025_v46  ;;  %2383 = vmatprep.subr.bf16.mxu0 %v1890_v49  ;;  %v2074_v46 = vunpack.c.h.s8.bf16 %v1841_v34  ;;  %v1776_v49 = vld [vmem:[#allocation2 + $0x130] sm:$0xff] }
 0x4bb   : > { %2424 = vmatprep.subr.bf16.mxu1 %v2018_v50  ;;  %v1840_v50 = vld [vmem:[#allocation2 + $0x330] sm:$0xff]  ;;  %v1945_v25 = vunpack.c.h.s8.bf16 %v1776_v49 }
 0x4bc   : > { %v2073_v26 = vunpack.c.h.s8.bf16 %v1840_v50 }
 0x4bd   : > { %2384 = vmatpush1.bf16.msra.mxu0 %v1889_v53  ;;  %v1938_v53 = vunpack.c.l.s8.bf16 %v1777_v41 }
 0x4be   : > { %2425 = vmatpush1.bf16.msra.mxu1 %v2017_v54  ;;  %2385 = vmatprep.subr.bf16.mxu0 %v1882_v51  ;;  %v2066_v54 = vunpack.c.l.s8.bf16 %v1841_v34  ;;  %v1937_v51 = vunpack.c.l.s8.bf16 %v1776_v49 }
 0x4bf   : > { %2426 = vmatprep.subr.bf16.mxu1 %v2010_v55  ;;  %v2065_v55 = vunpack.c.l.s8.bf16 %v1840_v50 }
 0x4c1   : > { %2386 = vmatpush1.bf16.msra.mxu0 %v1881_v57  ;;  %v2459_v57 = vrot.slane %v6061_v31, %v5951_v33 }
 0x4c2   : > { %2427 = vmatpush1.bf16.msra.mxu1 %v2009_v58  ;;  %2387 = vmatprep.subr.bf16.mxu0 %v1874_v59 }
 0x4c3   : > { %2428 = vmatprep.subr.bf16.mxu1 %v2002_v60 }
 0x4c5   : > { %2388 = vmatpush1.bf16.msra.mxu0 %v1873_v63 }
 0x4c6   : > { %2429 = vmatpush1.bf16.msra.mxu1 %v2001_v0  ;;  %2389 = vmatprep.subr.bf16.mxu0 %v1994_v1 }
 0x4c7   : > { %2430 = vmatprep.subr.bf16.mxu1 %v2122_v2 }
 0x4c9   : > { %2390 = vmatpush2.bf16.msra.mxu0 %v1993_v5 }
 0x4ca   : > { %2431 = vmatpush2.bf16.msra.mxu1 %v2121_v6  ;;  %2391 = vmatprep.subr.bf16.mxu0 %v1986_v7 }
 0x4cb   : > { %2432 = vmatprep.subr.bf16.mxu1 %v2114_v8 }
 0x4cd   : > { %2392 = vmatpush2.bf16.msra.mxu0 %v1985_v11 }
 0x4ce   : > { %2433 = vmatpush2.bf16.msra.mxu1 %v2113_v12  ;;  %2393 = vmatprep.subr.bf16.mxu0 %v1978_v13 }
 0x4cf   : > { %2434 = vmatprep.subr.bf16.mxu1 %v2106_v14 }
 0x4d1   : > { %2394 = vmatpush2.bf16.msra.mxu0 %v1977_v17 }
 0x4d2   : > { %2435 = vmatpush2.bf16.msra.mxu1 %v2105_v19  ;;  %2395 = vmatprep.subr.bf16.mxu0 %v1970_v20 }
 0x4d3   : > { %2436 = vmatprep.subr.bf16.mxu1 %v2098_v21 }
 0x4d5   : > { %2396 = vmatpush2.bf16.msra.mxu0 %v1969_v24 }
 0x4d6   : > { %2437 = vmatpush2.bf16.msra.mxu1 %v2097_v27  ;;  %2397 = vmatprep.subr.bf16.mxu0 %v1962_v28 }
 0x4d7   : > { %2438 = vmatprep.subr.bf16.mxu1 %v2090_v29 }
 0x4d9   : > { %2398 = vmatpush2.bf16.msra.mxu0 %v1961_v37 }
 0x4da   : > { %2439 = vmatpush2.bf16.msra.mxu1 %v2089_v38  ;;  %2399 = vmatprep.subr.bf16.mxu0 %v1954_v39 }
 0x4db   : > { %2440 = vmatprep.subr.bf16.mxu1 %v2082_v40 }
 0x4dd   : > { %2400 = vmatpush2.bf16.msra.mxu0 %v1953_v42 }
 0x4de   : > { %2441 = vmatpush2.bf16.msra.mxu1 %v2081_v52  ;;  %2401 = vmatprep.subr.bf16.mxu0 %v1946_v44 }
 0x4df   : > { %2442 = vmatprep.subr.bf16.mxu1 %v2074_v46 }
 0x4e1   : > { %2402 = vmatpush2.bf16.msra.mxu0 %v1945_v25 }
 0x4e2   : > { %2443 = vmatpush2.bf16.msra.mxu1 %v2073_v26  ;;  %2403 = vmatprep.subr.bf16.mxu0 %v1938_v53 }
 0x4e3   : > { %2444 = vmatprep.subr.bf16.mxu1 %v2066_v54 }
 0x4e5   : > { %2404 = vmatpush2.bf16.msra.mxu0 %v1937_v51 }
 0x4e6   : > { %2445 = vmatpush2.bf16.msra.mxu1 %v2065_v55  ;;  %v2467_v55 = vrot.slane %v6061_v31, %v5989_v43 }
 0x4e8   : > { %v2161_v58 = vpop.f32.mrf.mxu0  ;;  %2406 = vmatmul.mubr.bf16.vlgmr.msra.gmra.mxu0 %v6040_v47 }
 0x4e9   : > { %v2202_v59 = vpop.f32.mrf.mxu1  ;;  %2447 = vmatmul.mubr.bf16.vlgmr.msra.gmra.mxu1 %v6044_v48 }
 0x4ea   : > { %v2203_v60 = vadd.f32 %v2202_v59, %v2161_v58  ;;  %v2163_v63 = vpop.f32.mrf.mxu0 }
 0x4eb   : > { %v2204_v0 = vpop.f32.mrf.mxu1 }
 0x4ec   : > { %v2496_v1 = vmul.f32 %v2459_v57, %v2203_v60  ;;  %v2205_v2 = vadd.f32 %v2204_v0, %v2163_v63  ;;  %v2165_v4 = vpop.f32.mrf.mxu0  ;;  %v2517_v60 = vrot.slane %v6063_v56, %v5989_v43 }
 0x4ed   : > { %v2206_v5 = vpop.f32.mrf.mxu1 }
 0x4ee   : > { %v2546_v6 = vadd.f32 %v2509_v61, %v2496_v1  ;;  %v2497_v47 = vmul.f32 %v2463_v62, %v2205_v2  ;;  %v2166_v7 = vpop.f32.mrf.mxu0  ;;  %v2471_v61 = vrot.slane %v6061_v31, %v5992_v45  ;;  %v2521_v2 = vrot.slane %v6063_v56, %v5992_v45 }
 0x4ef   : > { %v2207_v48 = vpop.f32.mrf.mxu1 }
 0x4f0   : > { %v2556_v8 = vrot.slane %v2546_v6, 4  ;;  %v2547_v9 = vadd.f32 %v2513_v3, %v2497_v47 }
 0x4f2   : > { %v2557_v10 = vadd.f32 %v2556_v8, %v2546_v6  ;;  %v2562_v11 = vrot.slane %v2547_v9, 4 }
 0x4f4   : > { %v2558_v12 = vrot.slane %v2557_v10, 2  ;;  %v2563_v13 = vadd.f32 %v2562_v11, %v2547_v9 }
 0x4f6   : > { %v2559_v14 = vadd.f32 %v2558_v12, %v2557_v10  ;;  %v2564_v15 = vrot.slane %v2563_v13, 2 }
 0x4f8   : > { %v2560_v16 = vrot.slane %v2559_v14, 1  ;;  %v2565_v17 = vadd.f32 %v2564_v15, %v2563_v13 }
 0x4fa   : > { %v2561_v19 = vadd.f32 %v2560_v16, %v2559_v14  ;;  %v2566_v20 = vrot.slane %v2565_v17, 1 }
 0x4fc   : > { %v2604_v21 = vmul.f32 0.125, %v2561_v19  ;;  %v2567_v22 = vadd.f32 %v2566_v20, %v2565_v17 }
 0x4fe   : > { %v6075_v23 = vsub.f32 %v2546_v6, %v2604_v21  ;;  %v2605_v24 = vmul.f32 0.125, %v2567_v22 }
 0x500   : > { %v2620_v27 = vmul.f32 %v6075_v23, %v6075_v23  ;;  %v6079_v28 = vsub.f32 %v2547_v9, %v2605_v24 }
 0x502   : > { %v2628_v29 = vrot.slane %v2620_v27, 4  ;;  %v2621_v30 = vmul.f32 %v6079_v28, %v6079_v28 }
 0x504   : > { %v2629_v36 = vadd.f32 %v2628_v29, %v2620_v27  ;;  %v2634_v37 = vrot.slane %v2621_v30, 4 }
 0x506   : > { %v2630_v38 = vrot.slane %v2629_v36, 2  ;;  %v2635_v39 = vadd.f32 %v2634_v37, %v2621_v30 }
 0x508   : > { %v2631_v40 = vadd.f32 %v2630_v38, %v2629_v36  ;;  %v2636_v41 = vrot.slane %v2635_v39, 2 }
 0x50a   : > { %v2632_v34 = vrot.slane %v2631_v40, 1  ;;  %v2637_v42 = vadd.f32 %v2636_v41, %v2635_v39 }
 0x50c   : > { %v2633_v52 = vadd.f32 %v2632_v34, %v2631_v40  ;;  %v2638_v44 = vrot.slane %v2637_v42, 1 }
 0x50e   : > { %v2676_v46 = vmul.f32 0.125, %v2633_v52  ;;  %v2639_v49 = vadd.f32 %v2638_v44, %v2637_v42 }
 0x510   : > { %v2684_v50 = vadd.f32 0.8, %v2676_v46  ;;  %v2677_v25 = vmul.f32 0.125, %v2639_v49 }
 0x512   : > { %v2685_v26 = vadd.f32 0.8, %v2677_v25  ;;  %5076 = vrsqrt.f32 %v2684_v50 }
 0x514   : > { %5078 = vrsqrt.f32 %v2685_v26 }
 0x51f   : > { %v5077_v53 = vpop.eup %5076 }
 0x521   : > { %v5079_v54 = vpop.eup %5078 }
 0x522   : > { %v2708_v51 = vcombine.low %v5077_v53, %v5079_v54 }
 0x528   : > { %v2243_v57 = vpop.f32.mrf.mxu0 }
 0x529   : > { %v2284_v58 = vpop.f32.mrf.mxu1 }
 0x52a   : > { %v2285_v59 = vadd.f32 %v2284_v58, %v2243_v57  ;;  %v2245_v62 = vpop.f32.mrf.mxu0  ;;  %v6100_v58 = vrot.slane %v2708_v51, %v5959_v18 }
 0x52b   : > { %v2286_v63 = vpop.f32.mrf.mxu1 }
 0x52c   : > { %v2498_v0 = vmul.f32 %v2467_v55, %v2285_v59  ;;  %v2287_v1 = vadd.f32 %v2286_v63, %v2245_v62  ;;  %v2247_v3 = vpop.f32.mrf.mxu0  ;;  %v6111_v62 = vsub.s32 5, %v5948_v32 }
 0x52d   : > { %v2288_v4 = vpop.f32.mrf.mxu1 }
 0x52e   : > { %v2548_v5 = vadd.f32 %v2517_v60, %v2498_v0  ;;  %v2499_v6 = vmul.f32 %v2471_v61, %v2287_v1  ;;  %v2248_v47 = vpop.f32.mrf.mxu0  ;;  %v6106_v60 = vsub.s32 4, %v5948_v32  ;;  %v2479_v3 = vrot.slane %v6061_v31, %v6111_v62 }
 0x52f   : > { %v2289_v7 = vpop.f32.mrf.mxu1 }
 0x530   : > { %v2568_v48 = vrot.slane %v2548_v5, 4  ;;  %v2549_v8 = vadd.f32 %v2521_v2, %v2499_v6  ;;  %v2475_v63 = vrot.slane %v6061_v31, %v6106_v60  ;;  %v2525_v51 = vrot.slane %v6063_v56, %v6106_v60 }
 0x531   : > { %v2529_v7 = vrot.slane %v6063_v56, %v6111_v62 }
 0x532   : > { %v2569_v9 = vadd.f32 %v2568_v48, %v2548_v5  ;;  %v2574_v10 = vrot.slane %v2549_v8, 4 }
 0x534   : > { %v2570_v11 = vrot.slane %v2569_v9, 2  ;;  %v2575_v12 = vadd.f32 %v2574_v10, %v2549_v8 }
 0x536   : > { %v2571_v13 = vadd.f32 %v2570_v11, %v2569_v9  ;;  %v2576_v14 = vrot.slane %v2575_v12, 2 }
 0x538   : > { %v2572_v15 = vrot.slane %v2571_v13, 1  ;;  %v2577_v16 = vadd.f32 %v2576_v14, %v2575_v12 }
 0x53a   : > { %v2573_v17 = vadd.f32 %v2572_v15, %v2571_v13  ;;  %v2578_v19 = vrot.slane %v2577_v16, 1 }
 0x53c   : > { %v2606_v20 = vmul.f32 0.125, %v2573_v17  ;;  %v2579_v21 = vadd.f32 %v2578_v19, %v2577_v16 }
 0x53e   : > { %v6091_v22 = vsub.f32 %v2548_v5, %v2606_v20  ;;  %v2607_v24 = vmul.f32 0.125, %v2579_v21 }
 0x540   : > { %v2622_v27 = vmul.f32 %v6091_v22, %v6091_v22  ;;  %v6095_v29 = vsub.f32 %v2549_v8, %v2607_v24 }
 0x542   : > { %v2640_v30 = vrot.slane %v2622_v27, 4  ;;  %v2623_v36 = vmul.f32 %v6095_v29, %v6095_v29 }
 0x544   : > { %v2641_v37 = vadd.f32 %v2640_v30, %v2622_v27  ;;  %v2646_v38 = vrot.slane %v2623_v36, 4 }
 0x546   : > { %v2642_v39 = vrot.slane %v2641_v37, 2  ;;  %v2647_v40 = vadd.f32 %v2646_v38, %v2623_v36 }
 0x548   : > { %v2643_v41 = vadd.f32 %v2642_v39, %v2641_v37  ;;  %v2648_v34 = vrot.slane %v2647_v40, 2 }
 0x54a   : > { %v2644_v42 = vrot.slane %v2643_v41, 1  ;;  %v2649_v52 = vadd.f32 %v2648_v34, %v2647_v40 }
 0x54c   : > { %v2645_v44 = vadd.f32 %v2644_v42, %v2643_v41  ;;  %v2650_v46 = vrot.slane %v2649_v52, 1 }
 0x54e   : > { %v2678_v49 = vmul.f32 0.125, %v2645_v44  ;;  %v2651_v50 = vadd.f32 %v2650_v46, %v2649_v52 }
 0x550   : > { %v2686_v25 = vadd.f32 0.8, %v2678_v49  ;;  %v2679_v26 = vmul.f32 0.125, %v2651_v50 }
 0x552   : > { %v2687_v53 = vadd.f32 0.8, %v2679_v26  ;;  %5080 = vrsqrt.f32 %v2686_v25 }
 0x554   : > { %5082 = vrsqrt.f32 %v2687_v53 }
 0x55f   : > { %v5081_v54 = vpop.eup %5080 }
 0x561   : > { %v5083_v55 = vpop.eup %5082 }
 0x562   : > { %v2709_v57 = vcombine.low %v5081_v54, %v5083_v55 }
 0x564   : > { %v6103_v59 = vrot.slane %v2709_v57, %v5959_v18 }
 0x566   : > { %v2740_v61 = vcombine.low %v6100_v58, %v6103_v59 }
 0x568   : > { %v2325_v0 = vpop.f32.mrf.mxu0 }
 0x569   : > { %v2366_v1 = vpop.f32.mrf.mxu1 }
 0x56a   : > { %v2367_v2 = vadd.f32 %v2366_v1, %v2325_v0  ;;  %v2327_v4 = vpop.f32.mrf.mxu0 }
 0x56b   : > { %v2368_v5 = vpop.f32.mrf.mxu1 }
 0x56c   : > { %v2500_v6 = vmul.f32 %v2475_v63, %v2367_v2  ;;  %v2369_v47 = vadd.f32 %v2368_v5, %v2327_v4  ;;  %v2329_v48 = vpop.f32.mrf.mxu0 }
 0x56d   : > { %v2370_v8 = vpop.f32.mrf.mxu1 }
 0x56e   : > { %v2550_v9 = vadd.f32 %v2525_v51, %v2500_v6  ;;  %v2501_v10 = vmul.f32 %v2479_v3, %v2369_v47  ;;  %v2330_v11 = vpop.f32.mrf.mxu0  ;;  %v6133_v6 = vsub.s32 6, %v5948_v32  ;;  %v6136_v47 = vsub.s32 7, %v5948_v32 }
 0x56f   : > { %v2371_v12 = vpop.f32.mrf.mxu1 }
 0x570   : > { %v2580_v13 = vrot.slane %v2550_v9, 4  ;;  %v2551_v14 = vadd.f32 %v2529_v7, %v2501_v10  ;;  %v2483_v7 = vrot.slane %v6061_v31, %v6133_v6  ;;  %v2533_v10 = vrot.slane %v6063_v56, %v6133_v6 }
 0x571   : > { %v2487_v11 = vrot.slane %v6061_v31, %v6136_v47  ;;  %v2537_v32 = vrot.slane %v6063_v56, %v6136_v47 }
 0x572   : > { %v2581_v15 = vadd.f32 %v2580_v13, %v2550_v9  ;;  %v2586_v16 = vrot.slane %v2551_v14, 4 }
 0x574   : > { %v2582_v17 = vrot.slane %v2581_v15, 2  ;;  %v2587_v19 = vadd.f32 %v2586_v16, %v2551_v14 }
 0x576   : > { %v2583_v20 = vadd.f32 %v2582_v17, %v2581_v15  ;;  %v2588_v21 = vrot.slane %v2587_v19, 2 }
 0x578   : > { %v2584_v24 = vrot.slane %v2583_v20, 1  ;;  %v2589_v27 = vadd.f32 %v2588_v21, %v2587_v19 }
 0x57a   : > { %v2585_v30 = vadd.f32 %v2584_v24, %v2583_v20  ;;  %v2590_v36 = vrot.slane %v2589_v27, 1 }
 0x57c   : > { %v2608_v37 = vmul.f32 0.125, %v2585_v30  ;;  %v2591_v38 = vadd.f32 %v2590_v36, %v2589_v27 }
 0x57e   : > { %v6121_v39 = vsub.f32 %v2550_v9, %v2608_v37  ;;  %v2609_v40 = vmul.f32 0.125, %v2591_v38 }
 0x580   : > { %v2624_v41 = vmul.f32 %v6121_v39, %v6121_v39  ;;  %v6125_v34 = vsub.f32 %v2551_v14, %v2609_v40 }
 0x582   : > { %v2652_v42 = vrot.slane %v2624_v41, 4  ;;  %v2625_v52 = vmul.f32 %v6125_v34, %v6125_v34 }
 0x584   : > { %v2653_v44 = vadd.f32 %v2652_v42, %v2624_v41  ;;  %v2658_v46 = vrot.slane %v2625_v52, 4 }
 0x586   : > { %v2654_v49 = vrot.slane %v2653_v44, 2  ;;  %v2659_v50 = vadd.f32 %v2658_v46, %v2625_v52 }
 0x588   : > { %v2655_v25 = vadd.f32 %v2654_v49, %v2653_v44  ;;  %v2660_v26 = vrot.slane %v2659_v50, 2 }
 0x58a   : > { %v2656_v53 = vrot.slane %v2655_v25, 1  ;;  %v2661_v54 = vadd.f32 %v2660_v26, %v2659_v50 }
 0x58c   : > { %v2657_v55 = vadd.f32 %v2656_v53, %v2655_v25  ;;  %v2662_v57 = vrot.slane %v2661_v54, 1 }
 0x58e   : > { %v2680_v63 = vmul.f32 0.125, %v2657_v55  ;;  %v2663_v0 = vadd.f32 %v2662_v57, %v2661_v54 }
 0x590   : > { %v2688_v1 = vadd.f32 0.8, %v2680_v63  ;;  %v2681_v2 = vmul.f32 0.125, %v2663_v0 }
 0x592   : > { %v2689_v51 = vadd.f32 0.8, %v2681_v2  ;;  %5084 = vrsqrt.f32 %v2688_v1 }
 0x594   : > { %5086 = vrsqrt.f32 %v2689_v51 }
 0x59f   : > { %v6129_v3 = vpop.eup %5084 }
 0x5a1   : > { %v5087_v4 = vpop.eup %5086 }
 0x5a2   : > { %v2710_v5 = vcombine.low %v6129_v3, %v5087_v4 }
 0x5a8   : > { %v2407_v48 = vpop.f32.mrf.mxu0 }
 0x5a9   : > { %v2448_v8 = vpop.f32.mrf.mxu1 }
 0x5aa   : > { %v2449_v9 = vadd.f32 %v2448_v8, %v2407_v48  ;;  %v2409_v12 = vpop.f32.mrf.mxu0 }
 0x5ab   : > { %v2450_v13 = vpop.f32.mrf.mxu1 }
 0x5ac   : > { %v2502_v14 = vmul.f32 %v2483_v7, %v2449_v9  ;;  %v2451_v15 = vadd.f32 %v2450_v13, %v2409_v12  ;;  %v2411_v16 = vpop.f32.mrf.mxu0 }
 0x5ad   : > { %v2452_v17 = vpop.f32.mrf.mxu1 }
 0x5ae   : > { %v2552_v19 = vadd.f32 %v2533_v10, %v2502_v14  ;;  %v2503_v20 = vmul.f32 %v2487_v11, %v2451_v15  ;;  %v2412_v21 = vpop.f32.mrf.mxu0 }
 0x5af   : > { %v2453_v24 = vpop.f32.mrf.mxu1 }
 0x5b0   : > { %v2592_v27 = vrot.slane %v2552_v19, 4  ;;  %v2553_v30 = vadd.f32 %v2537_v32, %v2503_v20  ;;  %v2732_v32 = vrot.slane %v2710_v5, %v5959_v18  ;;  %v2555_v20 = vld [vmem:[#allocation22] sm:$0xff]  ;;  %v2554_v24 = vld [vmem:[#allocation21] sm:$0xff] }
 0x5b1   : > { %v2824_v5 = vrot.slane %v2555_v20, %v5992_v45  ;;  %v2836_v58 = vrot.slane %v2555_v20, %v6133_v6  ;;  %v2840_v59 = vrot.slane %v2555_v20, %v6136_v47 }
 0x5b2   : > { %v2593_v36 = vadd.f32 %v2592_v27, %v2552_v19  ;;  %v2598_v37 = vrot.slane %v2553_v30, 4 }
 0x5b4   : > { %v2594_v38 = vrot.slane %v2593_v36, 2  ;;  %v2599_v40 = vadd.f32 %v2598_v37, %v2553_v30  ;;  %v2820_v37 = vrot.slane %v2555_v20, %v5989_v43 }
 0x5b6   : > { %v2595_v31 = vadd.f32 %v2594_v38, %v2593_v36  ;;  %v2600_v41 = vrot.slane %v2599_v40, 2  ;;  %v2816_v36 = vrot.slane %v2555_v20, %v5954_v35 }
 0x5b8   : > { %v2596_v42 = vrot.slane %v2595_v31, 1  ;;  %v2601_v52 = vadd.f32 %v2600_v41, %v2599_v40  ;;  %v2828_v40 = vrot.slane %v2555_v20, %v6106_v60 }
 0x5ba   : > { %v2597_v44 = vadd.f32 %v2596_v42, %v2595_v31  ;;  %v2602_v46 = vrot.slane %v2601_v52, 1  ;;  %v2832_v31 = vrot.slane %v2555_v20, %v6111_v62 }
 0x5bc   : > { %v2610_v49 = vmul.f32 0.125, %v2597_v44  ;;  %v2603_v56 = vadd.f32 %v2602_v46, %v2601_v52 }
 0x5be   : > { %v2618_v50 = vsub.f32 %v2552_v19, %v2610_v49  ;;  %v2611_v25 = vmul.f32 0.125, %v2603_v56  ;;  %v2748_v19 = vrot.slane %v2740_v61, %v5959_v18 }
 0x5c0   : > { %v2626_v26 = vmul.f32 %v2618_v50, %v2618_v50  ;;  %v2619_v53 = vsub.f32 %v2553_v30, %v2611_v25  ;;  %v2812_v30 = vrot.slane %v2555_v20, %v5951_v33 }
 0x5c2   : > { %v2664_v54 = vrot.slane %v2626_v26, 4  ;;  %v2627_v55 = vmul.f32 %v2619_v53, %v2619_v53 }
 0x5c4   : > { %v2665_v57 = vadd.f32 %v2664_v54, %v2626_v26  ;;  %v2670_v63 = vrot.slane %v2627_v55, 4 }
 0x5c6   : > { %v2666_v0 = vrot.slane %v2665_v57, 2  ;;  %v2671_v1 = vadd.f32 %v2670_v63, %v2627_v55 }
 0x5c8   : > { %v2667_v2 = vadd.f32 %v2666_v0, %v2665_v57  ;;  %v2672_v51 = vrot.slane %v2671_v1, 2 }
 0x5ca   : > { %v2668_v3 = vrot.slane %v2667_v2, 1  ;;  %v2673_v4 = vadd.f32 %v2672_v51, %v2671_v1 }
 0x5cc   : > { %v2669_v7 = vadd.f32 %v2668_v3, %v2667_v2  ;;  %v2674_v48 = vrot.slane %v2673_v4, 1 }
 0x5ce   : > { %v2682_v8 = vmul.f32 0.125, %v2669_v7  ;;  %v2675_v9 = vadd.f32 %v2674_v48, %v2673_v4 }
 0x5d0   : > { %v2690_v10 = vadd.f32 0.8, %v2682_v8  ;;  %v2683_v11 = vmul.f32 0.125, %v2675_v9 }
 0x5d2   : > { %v2691_v12 = vadd.f32 0.8, %v2683_v11  ;;  %5088 = vrsqrt.f32 %v2690_v10 }
 0x5d4   : > { %5090 = vrsqrt.f32 %v2691_v12 }
 0x5df   : > { %v5089_v13 = vpop.eup %5088 }
 0x5e1   : > { %v5091_v14 = vpop.eup %5090 }
 0x5e2   : > { %v2711_v15 = vcombine.low %v5089_v13, %v5091_v14 }
 0x5e4   : > { %v2739_v16 = vrot.slane %v2711_v15, %v5959_v18 }
 0x5e6   : > { %v2741_v17 = vcombine.low %v2732_v32, %v2739_v16 }
 0x5e8   : > { %v2755_v21 = vrot.slane %v2741_v17, %v5959_v18 }
 0x5ea   : > { %v2756_v27 = vcombine.low %v2748_v19, %v2755_v21 }
 0x5ec   : > { %v2758_v38 = vmul.f32 %v2756_v27, %v2554_v24 }
 0x5ee   : > { %v2763_v18 = vrot.slane %v2758_v38, %v5951_v33  ;;  %v2767_v61 = vrot.slane %v2758_v38, %v5954_v35  ;;  %v2771_v41 = vrot.slane %v2758_v38, %v5989_v43  ;;  %v2775_v42 = vrot.slane %v2758_v38, %v5992_v45 }
 0x5ef   : > { %v2779_v52 = vrot.slane %v2758_v38, %v6106_v60  ;;  %v2783_v44 = vrot.slane %v2758_v38, %v6111_v62  ;;  %v2787_v46 = vrot.slane %v2758_v38, %v6133_v6  ;;  %v2791_v49 = vrot.slane %v2758_v38, %v6136_v47 }
 0x5f0   : > { %v2800_v56 = vmul.f32 %v2763_v18, %v6075_v23  ;;  %v2801_v25 = vmul.f32 %v2767_v61, %v6079_v28  ;;  %v2802_v26 = vmul.f32 %v2771_v41, %v6091_v22  ;;  %v2803_v54 = vmul.f32 %v2775_v42, %v6095_v29 }
 0x5f1   : > { %v2804_v55 = vmul.f32 %v2779_v52, %v6121_v39  ;;  %v2805_v57 = vmul.f32 %v2783_v44, %v6125_v34  ;;  %v2806_v63 = vmul.f32 %v2787_v46, %v2618_v50  ;;  %v2807_v0 = vmul.f32 %v2791_v49, %v2619_v53 }
 0x5f2   : > { %v2849_v1 = vadd.f32 %v2812_v30, %v2800_v56  ;;  %v2850_v2 = vadd.f32 %v2816_v36, %v2801_v25  ;;  %v2851_v51 = vadd.f32 %v2820_v37, %v2802_v26  ;;  %v2852_v3 = vadd.f32 %v2824_v5, %v2803_v54 }
 0x5f3   : > { %v2853_v4 = vadd.f32 %v2828_v40, %v2804_v55  ;;  %v2854_v47 = vadd.f32 %v2832_v31, %v2805_v57  ;;  %v2855_v7 = vadd.f32 %v2836_v58, %v2806_v63  ;;  %v2856_v23 = vadd.f32 %v2840_v59, %v2807_v0 }
 0x5f4   : > { %vm2857_vm9 = vcmp.gt.f32.partialorder %v2849_v1, 0.0  ;;  %vm2858_vm10 = vcmp.gt.f32.partialorder %v2850_v2, 0.0  ;;  %vm2859_vm11 = vcmp.gt.f32.partialorder %v2851_v51, 0.0  ;;  %vm2860_vm12 = vcmp.gt.f32.partialorder %v2852_v3, 0.0 }
 0x5f5   : > { %vm2861_vm13 = vcmp.gt.f32.partialorder %v2853_v4, 0.0  ;;  %vm2862_vm14 = vcmp.gt.f32.partialorder %v2854_v47, 0.0  ;;  %vm2863_vm15 = vcmp.gt.f32.partialorder %v2855_v7, 0.0  ;;  %vm2864_vm0 = vcmp.gt.f32.partialorder %v2856_v23, 0.0 }
 0x5f6   : > { %v2865_v28 = vmul.f32 0.2, %v2849_v1  ;;  %v2866_v22 = vmul.f32 0.2, %v2850_v2  ;;  %v2867_v29 = vmul.f32 0.2, %v2851_v51 }
 0x5f7   : > { %v2868_v39 = vmul.f32 0.2, %v2852_v3  ;;  %v2869_v34 = vmul.f32 0.2, %v2853_v4  ;;  %v2870_v50 = vmul.f32 0.2, %v2854_v47 }
 0x5f8   : > { %v2871_v53 = vmul.f32 0.2, %v2855_v7  ;;  %v2872_v48 = vmul.f32 0.2, %v2856_v23  ;;  %v6176_v8 = vsel %vm2857_vm9, %v2849_v1, %v2865_v28  ;;  %v2874_v9 = vsel %vm2858_vm10, %v2850_v2, %v2866_v22 }
 0x5f9   : > { %v6180_v10 = vsel %vm2859_vm11, %v2851_v51, %v2867_v29  ;;  %v2876_v11 = vsel %vm2860_vm12, %v2852_v3, %v2868_v39  ;;  %v6184_v12 = vsel %vm2861_vm13, %v2853_v4, %v2869_v34  ;;  %v6187_v13 = vsel %vm2862_vm14, %v2854_v47, %v2870_v50 }
 0x5fa   : > { %v6190_v14 = vsel %vm2863_vm15, %v2855_v7, %v2871_v53  ;;  %v6193_v15 = vsel %vm2864_vm0, %v2856_v23, %v2872_v48 }
 0x5fb   : > { %5573 = dma.done.wait (%p6409_p7), [#allocation4 + $0x1], 28672  ;;  %p6410_p8 = pmov %p6404_p1 }
 0x5fc   : > { %v6199_v32 = vpack.c.bf16 %v2874_v9, %v2874_v9  ;;  %v6201_v16 = vpack.c.bf16 %v2876_v11, %v2876_v11  ;;  %v2911_v17 = vld [vmem:[#allocation3 + $0xb0] sm:$0xff]  ;;  %v2910_v20 = vld [vmem:[#allocation3 + $0xa8] sm:$0xff]  ;;  %v2904_v38 = vld [vmem:[#allocation3 + $0x78] sm:$0xff] }
 0x5fd   : > { %5575 = vsyncadd (%p6410_p8), [#allocation4 + $0x1], 4294938624  ;;  %v2967_v19 = vld [vmem:[#allocation3 + $0x270] sm:$0xff]  ;;  %v3157_v21 = vunpack.c.l.s8.bf16 %v2911_v17  ;;  %v3164_v24 = vunpack.c.h.s8.bf16 %v2911_v17  ;;  %v2966_v36 = vld [vmem:[#allocation3 + $0x268] sm:$0xff]  ;;  %v3163_v37 = vunpack.c.h.s8.bf16 %v2910_v20  ;;  %v3156_v31 = vunpack.c.l.s8.bf16 %v2910_v20 }
 0x5fe   : > { %3602 = vmatprep.mubr.bf16.mxu0 %v6199_v32  ;;  %3643 = vmatprep.mubr.bf16.mxu1 %v6201_v16  ;;  %v3269_v27 = vunpack.c.l.s8.bf16 %v2967_v19  ;;  %v3276_v30 = vunpack.c.h.s8.bf16 %v2967_v19  ;;  %v3275_v5 = vunpack.c.h.s8.bf16 %v2966_v36  ;;  %v2960_v40 = vld [vmem:[#allocation3 + $0x238] sm:$0xff]  ;;  %v3268_v58 = vunpack.c.l.s8.bf16 %v2966_v36  ;;  %v2903_v61 = vld [vmem:[#allocation3 + $0x70] sm:$0xff]  ;;  %v2897_v49 = vld [vmem:[#allocation3 + $0x40] sm:$0xff] }
 0x5ff   : > { %3570 = vmatprep.subr.bf16.mxu0 %v3164_v24  ;;  %v3150_v59 = vunpack.c.h.s8.bf16 %v2904_v38  ;;  %v3262_v18 = vunpack.c.h.s8.bf16 %v2960_v40  ;;  %v2959_v41 = vld [vmem:[#allocation3 + $0x230] sm:$0xff]  ;;  %v3149_v42 = vunpack.c.h.s8.bf16 %v2903_v61  ;;  %v3143_v44 = vunpack.c.l.s8.bf16 %v2904_v38  ;;  %v2953_v56 = vld [vmem:[#allocation3 + $0x200] sm:$0xff]  ;;  %v2896_v57 = vld [vmem:[#allocation3 + $0x38] sm:$0xff] }
 0x600   : > { %3611 = vmatprep.subr.bf16.mxu1 %v3276_v30  ;;  %3571 = vmatpush1.bf16.msra.mxu0 %v3163_v37  ;;  %v3261_v52 = vunpack.c.h.s8.bf16 %v2959_v41  ;;  %v3255_v46 = vunpack.c.l.s8.bf16 %v2960_v40  ;;  %v3142_v25 = vunpack.c.l.s8.bf16 %v2903_v61  ;;  %v3254_v26 = vunpack.c.l.s8.bf16 %v2959_v41  ;;  %v2952_v63 = vld [vmem:[#allocation3 + $0x1f8] sm:$0xff]  ;;  %v2890_v3 = vld [vmem:[#allocation3 + $0x8] sm:$0xff]  ;;  %v2889_v22 = vld [vmem:[#allocation3] sm:$0xff] }
 0x601   : > { %3612 = vmatpush1.bf16.msra.mxu1 %v3275_v5  ;;  %3572 = vmatprep.subr.bf16.mxu0 %v3157_v21  ;;  %v3136_v54 = vunpack.c.h.s8.bf16 %v2897_v49  ;;  %v3248_v55 = vunpack.c.h.s8.bf16 %v2953_v56  ;;  %v3135_v0 = vunpack.c.h.s8.bf16 %v2896_v57  ;;  %v3247_v1 = vunpack.c.h.s8.bf16 %v2952_v63  ;;  %v2946_v4 = vld [vmem:[#allocation3 + $0x1c8] sm:$0xff]  ;;  %v2945_v29 = vld [vmem:[#allocation3 + $0x1c0] sm:$0xff]  ;;  %v2939_v48 = vld [vmem:[#allocation3 + $0x190] sm:$0xff] }
 0x602   : > { %3613 = vmatprep.subr.bf16.mxu1 %v3269_v27  ;;  %v3129_v2 = vunpack.c.l.s8.bf16 %v2897_v49  ;;  %v3241_v51 = vunpack.c.l.s8.bf16 %v2953_v56  ;;  %v3128_v47 = vunpack.c.l.s8.bf16 %v2896_v57  ;;  %v3240_v7 = vunpack.c.l.s8.bf16 %v2952_v63  ;;  %v2995_v9 = vld [vmem:[#allocation3 + $0x350] sm:$0xff]  ;;  %v2938_v21 = vld [vmem:[#allocation3 + $0x188] sm:$0xff]  ;;  %v2932_v5 = vld [vmem:[#allocation3 + $0x158] sm:$0xff] }
 0x603   : > { %v3122_v23 = vunpack.c.h.s8.bf16 %v2890_v3  ;;  %v3234_v28 = vunpack.c.h.s8.bf16 %v2946_v4  ;;  %v3121_v39 = vunpack.c.h.s8.bf16 %v2889_v22  ;;  %v3233_v34 = vunpack.c.h.s8.bf16 %v2945_v29  ;;  %v2994_v24 = vld [vmem:[#allocation3 + $0x348] sm:$0xff]  ;;  %v2988_v38 = vld [vmem:[#allocation3 + $0x318] sm:$0xff]  ;;  %v2987_v61 = vld [vmem:[#allocation3 + $0x310] sm:$0xff] }
 0x604   : > { %3573 = vmatpush1.bf16.msra.mxu0 %v3156_v31  ;;  %v3115_v50 = vunpack.c.l.s8.bf16 %v2890_v3  ;;  %v3227_v53 = vunpack.c.l.s8.bf16 %v2946_v4  ;;  %v3114_v11 = vunpack.c.l.s8.bf16 %v2889_v22  ;;  %v3226_v17 = vunpack.c.l.s8.bf16 %v2945_v29  ;;  %v2981_v49 = vld [vmem:[#allocation3 + $0x2e0] sm:$0xff]  ;;  %v2980_v57 = vld [vmem:[#allocation3 + $0x2d8] sm:$0xff]  ;;  %v2974_v3 = vld [vmem:[#allocation3 + $0x2a8] sm:$0xff] }
 0x605   : > { %3614 = vmatpush1.bf16.msra.mxu1 %v3268_v58  ;;  %3574 = vmatprep.subr.bf16.mxu0 %v3150_v59  ;;  %v3220_v19 = vunpack.c.h.s8.bf16 %v2939_v48  ;;  %v3332_v20 = vunpack.c.h.s8.bf16 %v2995_v9  ;;  %v3219_v27 = vunpack.c.h.s8.bf16 %v2938_v21  ;;  %v3331_v30 = vunpack.c.h.s8.bf16 %v2994_v24  ;;  %v2973_v22 = vld [vmem:[#allocation3 + $0x2a0] sm:$0xff] }
 0x606   : > { %3615 = vmatprep.subr.bf16.mxu1 %v3262_v18  ;;  %v3213_v36 = vunpack.c.l.s8.bf16 %v2939_v48  ;;  %v3325_v37 = vunpack.c.l.s8.bf16 %v2995_v9  ;;  %v3212_v40 = vunpack.c.l.s8.bf16 %v2938_v21  ;;  %v3324_v31 = vunpack.c.l.s8.bf16 %v2994_v24  ;;  %v2931_v18 = vld [vmem:[#allocation3 + $0x150] sm:$0xff]  ;;  %v3078_v21 = vld [vmem:[#allocation3 + $0x5e8] sm:$0xff] }
 0x607   : > { %v3206_v58 = vunpack.c.h.s8.bf16 %v2932_v5  ;;  %v3318_v59 = vunpack.c.h.s8.bf16 %v2988_v38  ;;  %v3205_v41 = vunpack.c.h.s8.bf16 %v2931_v18  ;;  %v3198_v56 = vunpack.c.l.s8.bf16 %v2931_v18  ;;  %v3079_v48 = vld [vmem:[#allocation3 + $0x5f0] sm:$0xff] }
 0x608   : > { %3575 = vmatpush1.bf16.msra.mxu0 %v3149_v42  ;;  %v3317_v42 = vunpack.c.h.s8.bf16 %v2987_v61  ;;  %v6207_v24 = vpack.c.bf16 %v6176_v8, %v6176_v8  ;;  %v6219_v8 = vpack.c.bf16 %v6193_v15, %v6193_v15 }
 0x609   : > { %3616 = vmatpush1.bf16.msra.mxu1 %v3261_v52  ;;  %3576 = vmatprep.subr.bf16.mxu0 %v3143_v44  ;;  %v3199_v52 = vunpack.c.l.s8.bf16 %v2932_v5  ;;  %v3311_v44 = vunpack.c.l.s8.bf16 %v2988_v38  ;;  %v3493_v5 = vunpack.c.l.s8.bf16 %v3079_v48  ;;  %v3016_v38 = vld [vmem:[#allocation3 + $0x3f8] sm:$0xff] }
 0x60a   : > { %3617 = vmatprep.subr.bf16.mxu1 %v3255_v46  ;;  %v2925_v46 = vld [vmem:[#allocation3 + $0x120] sm:$0xff] }
 0x60c   : > { %3577 = vmatpush1.bf16.msra.mxu0 %v3142_v25  ;;  %v3310_v25 = vunpack.c.l.s8.bf16 %v2987_v61  ;;  %v3015_v61 = vld [vmem:[#allocation3 + $0x3f0] sm:$0xff] }
 0x60d   : > { %3618 = vmatpush1.bf16.msra.mxu1 %v3254_v26  ;;  %3578 = vmatprep.subr.bf16.mxu0 %v3136_v54  ;;  %v3192_v26 = vunpack.c.h.s8.bf16 %v2925_v46  ;;  %v3304_v54 = vunpack.c.h.s8.bf16 %v2981_v49 }
 0x60e   : > { %3619 = vmatprep.subr.bf16.mxu1 %v3248_v55  ;;  %v2924_v55 = vld [vmem:[#allocation3 + $0x118] sm:$0xff] }
 0x60f   : > { %v3191_v63 = vunpack.c.h.s8.bf16 %v2924_v55  ;;  %v3184_v4 = vunpack.c.l.s8.bf16 %v2924_v55  ;;  %v3064_v55 = vld [vmem:[#allocation3 + $0x578] sm:$0xff] }
 0x610   : > { %3579 = vmatpush1.bf16.msra.mxu0 %v3135_v0  ;;  %v3303_v0 = vunpack.c.h.s8.bf16 %v2980_v57 }
 0x611   : > { %3620 = vmatpush1.bf16.msra.mxu1 %v3247_v1  ;;  %3580 = vmatprep.subr.bf16.mxu0 %v3129_v2  ;;  %v3185_v1 = vunpack.c.l.s8.bf16 %v2925_v46  ;;  %v3297_v2 = vunpack.c.l.s8.bf16 %v2981_v49  ;;  %v3065_v46 = vld [vmem:[#allocation3 + $0x580] sm:$0xff]  ;;  %v3366_v49 = vunpack.c.l.s8.bf16 %v3015_v61 }
 0x612   : > { %3621 = vmatprep.subr.bf16.mxu1 %v3241_v51  ;;  %v2918_v51 = vld [vmem:[#allocation3 + $0xe8] sm:$0xff] }
 0x614   : > { %3581 = vmatpush1.bf16.msra.mxu0 %v3128_v47  ;;  %v3296_v47 = vunpack.c.l.s8.bf16 %v2980_v57 }
 0x615   : > { %3622 = vmatpush1.bf16.msra.mxu1 %v3240_v7  ;;  %3582 = vmatprep.subr.bf16.mxu0 %v3122_v23  ;;  %v3178_v7 = vunpack.c.h.s8.bf16 %v2918_v51  ;;  %v3290_v23 = vunpack.c.h.s8.bf16 %v2974_v3 }
 0x616   : > { %3623 = vmatprep.subr.bf16.mxu1 %v3234_v28  ;;  %v2917_v28 = vld [vmem:[#allocation3 + $0xe0] sm:$0xff] }
 0x617   : > { %v3177_v29 = vunpack.c.h.s8.bf16 %v2917_v28  ;;  %v3170_v9 = vunpack.c.l.s8.bf16 %v2917_v28  ;;  %v3057_v28 = vld [vmem:[#allocation3 + $0x540] sm:$0xff] }
 0x618   : > { %3583 = vmatpush1.bf16.msra.mxu0 %v3121_v39  ;;  %v3289_v39 = vunpack.c.h.s8.bf16 %v2973_v22 }
 0x619   : > { %3624 = vmatpush1.bf16.msra.mxu1 %v3233_v34  ;;  %3584 = vmatprep.subr.bf16.mxu0 %v3115_v50  ;;  %v3171_v34 = vunpack.c.l.s8.bf16 %v2918_v51  ;;  %v3283_v50 = vunpack.c.l.s8.bf16 %v2974_v3  ;;  %v3058_v51 = vld [vmem:[#allocation3 + $0x548] sm:$0xff] }
 0x61a   : > { %3625 = vmatprep.subr.bf16.mxu1 %v3227_v53  ;;  %v3023_v53 = vld [vmem:[#allocation3 + $0x430] sm:$0xff] }
 0x61c   : > { %3585 = vmatpush1.bf16.msra.mxu0 %v3114_v11  ;;  %v3282_v11 = vunpack.c.l.s8.bf16 %v2973_v22 }
 0x61d   : > { %3626 = vmatpush1.bf16.msra.mxu1 %v3226_v17  ;;  %3586 = vmatprep.subr.bf16.mxu0 %v3220_v19  ;;  %v3388_v17 = vunpack.c.h.s8.bf16 %v3023_v53  ;;  %v3500_v19 = vunpack.c.h.s8.bf16 %v3079_v48 }
 0x61e   : > { %3627 = vmatprep.subr.bf16.mxu1 %v3332_v20  ;;  %v3022_v20 = vld [vmem:[#allocation3 + $0x428] sm:$0xff] }
 0x620   : > { %3587 = vmatpush2.bf16.msra.mxu0 %v3219_v27  ;;  %v6211_v27 = vpack.c.bf16 %v6180_v10, %v6180_v10  ;;  %v3380_v10 = vunpack.c.l.s8.bf16 %v3022_v20 }
 0x621   : > { %3628 = vmatpush2.bf16.msra.mxu1 %v3331_v30  ;;  %3588 = vmatprep.subr.bf16.mxu0 %v3213_v36  ;;  %v3387_v30 = vunpack.c.h.s8.bf16 %v3022_v20  ;;  %v3499_v36 = vunpack.c.h.s8.bf16 %v3078_v21  ;;  %v3106_v20 = vld [vmem:[#allocation3 + $0x6c8] sm:$0xff] }
 0x622   : > { %3629 = vmatprep.subr.bf16.mxu1 %v3325_v37  ;;  %v3381_v37 = vunpack.c.l.s8.bf16 %v3023_v53  ;;  %v3107_v53 = vld [vmem:[#allocation3 + $0x6d0] sm:$0xff] }
 0x624   : > { %3589 = vmatpush2.bf16.msra.mxu0 %v3212_v40  ;;  %v3072_v40 = vld [vmem:[#allocation3 + $0x5b8] sm:$0xff] }
 0x625   : > { %3630 = vmatpush2.bf16.msra.mxu1 %v3324_v31  ;;  %3590 = vmatprep.subr.bf16.mxu0 %v3206_v58  ;;  %v6215_v31 = vpack.c.bf16 %v6187_v13, %v6187_v13  ;;  %v3492_v58 = vunpack.c.l.s8.bf16 %v3078_v21  ;;  %v3486_v18 = vunpack.c.h.s8.bf16 %v3072_v40  ;;  %v3373_v13 = vunpack.c.h.s8.bf16 %v3015_v61  ;;  %v3099_v61 = vld [vmem:[#allocation3 + $0x690] sm:$0xff] }
 0x626   : > { %3631 = vmatprep.subr.bf16.mxu1 %v3318_v59  ;;  %v3374_v59 = vunpack.c.h.s8.bf16 %v3016_v38 }
 0x628   : > { %3591 = vmatpush2.bf16.msra.mxu0 %v3205_v41  ;;  %v3071_v41 = vld [vmem:[#allocation3 + $0x5b0] sm:$0xff] }
 0x629   : > { %3632 = vmatpush2.bf16.msra.mxu1 %v3317_v42  ;;  %3592 = vmatprep.subr.bf16.mxu0 %v3199_v52  ;;  %v3485_v15 = vunpack.c.h.s8.bf16 %v3071_v41  ;;  %v3367_v42 = vunpack.c.l.s8.bf16 %v3016_v38  ;;  %v3479_v52 = vunpack.c.l.s8.bf16 %v3072_v40  ;;  %v3100_v38 = vld [vmem:[#allocation3 + $0x698] sm:$0xff] }
 0x62a   : > { %3633 = vmatprep.subr.bf16.mxu1 %v3311_v44  ;;  %v3009_v44 = vld [vmem:[#allocation3 + $0x3c0] sm:$0xff] }
 0x62c   : > { %3593 = vmatpush2.bf16.msra.mxu0 %v3198_v56  ;;  %v3478_v56 = vunpack.c.l.s8.bf16 %v3071_v41 }
 0x62d   : > { %3634 = vmatpush2.bf16.msra.mxu1 %v3310_v25  ;;  %3594 = vmatprep.subr.bf16.mxu0 %v3192_v26  ;;  %v3360_v25 = vunpack.c.h.s8.bf16 %v3009_v44  ;;  %v3472_v26 = vunpack.c.h.s8.bf16 %v3065_v46 }
 0x62e   : > { %3635 = vmatprep.subr.bf16.mxu1 %v3304_v54  ;;  %v3008_v54 = vld [vmem:[#allocation3 + $0x3b8] sm:$0xff] }
 0x62f   : > { %v3359_v57 = vunpack.c.h.s8.bf16 %v3008_v54  ;;  %v3352_v3 = vunpack.c.l.s8.bf16 %v3008_v54  ;;  %v3092_v54 = vld [vmem:[#allocation3 + $0x658] sm:$0xff] }
 0x630   : > { %3595 = vmatpush2.bf16.msra.mxu0 %v3191_v63  ;;  %v3471_v63 = vunpack.c.h.s8.bf16 %v3064_v55 }
 0x631   : > { %3636 = vmatpush2.bf16.msra.mxu1 %v3303_v0  ;;  %3596 = vmatprep.subr.bf16.mxu0 %v3185_v1  ;;  %v3353_v0 = vunpack.c.l.s8.bf16 %v3009_v44  ;;  %v3465_v1 = vunpack.c.l.s8.bf16 %v3065_v46  ;;  %v3093_v44 = vld [vmem:[#allocation3 + $0x660] sm:$0xff] }
 0x632   : > { %3637 = vmatprep.subr.bf16.mxu1 %v3297_v2  ;;  %v3002_v2 = vld [vmem:[#allocation3 + $0x388] sm:$0xff] }
 0x634   : > { %3597 = vmatpush2.bf16.msra.mxu0 %v3184_v4  ;;  %v3464_v4 = vunpack.c.l.s8.bf16 %v3064_v55 }
 0x635   : > { %3638 = vmatpush2.bf16.msra.mxu1 %v3296_v47  ;;  %3598 = vmatprep.subr.bf16.mxu0 %v3178_v7  ;;  %v3346_v47 = vunpack.c.h.s8.bf16 %v3002_v2  ;;  %v3458_v7 = vunpack.c.h.s8.bf16 %v3058_v51 }
 0x636   : > { %3639 = vmatprep.subr.bf16.mxu1 %v3290_v23  ;;  %v3001_v23 = vld [vmem:[#allocation3 + $0x380] sm:$0xff] }
 0x637   : > { %v3345_v22 = vunpack.c.h.s8.bf16 %v3001_v23  ;;  %v3338_v48 = vunpack.c.l.s8.bf16 %v3001_v23  ;;  %v3085_v23 = vld [vmem:[#allocation3 + $0x620] sm:$0xff] }
 0x638   : > { %3599 = vmatpush2.bf16.msra.mxu0 %v3177_v29  ;;  %v3457_v29 = vunpack.c.h.s8.bf16 %v3057_v28 }
 0x639   : > { %3640 = vmatpush2.bf16.msra.mxu1 %v3289_v39  ;;  %3600 = vmatprep.subr.bf16.mxu0 %v3171_v34  ;;  %v3339_v39 = vunpack.c.l.s8.bf16 %v3002_v2  ;;  %v3451_v34 = vunpack.c.l.s8.bf16 %v3058_v51  ;;  %v3086_v2 = vld [vmem:[#allocation3 + $0x628] sm:$0xff] }
 0x63a   : > { %3641 = vmatprep.subr.bf16.mxu1 %v3283_v50  ;;  %v3051_v50 = vld [vmem:[#allocation3 + $0x510] sm:$0xff] }
 0x63c   : > { %3601 = vmatpush2.bf16.msra.mxu0 %v3170_v9  ;;  %v3450_v9 = vunpack.c.l.s8.bf16 %v3057_v28 }
 0x63d   : > { %3642 = vmatpush2.bf16.msra.mxu1 %v3282_v11  ;;  %3652 = vmatprep.subr.bf16.mxu0 %v3388_v17  ;;  %v3444_v11 = vunpack.c.h.s8.bf16 %v3051_v50  ;;  %v3556_v17 = vunpack.c.h.s8.bf16 %v3107_v53 }
 0x63e   : > { %3693 = vmatprep.subr.bf16.mxu1 %v3500_v19  ;;  %v3050_v19 = vld [vmem:[#allocation3 + $0x508] sm:$0xff] }
 0x63f   : > { %3603 = vmatmul.mubr.bf16.vlgmr.msra.gmra.mxu0 %v6207_v24  ;;  %v3443_v21 = vunpack.c.h.s8.bf16 %v3050_v19  ;;  %v3436_v40 = vunpack.c.l.s8.bf16 %v3050_v19  ;;  %v2968_v19 = vld [vmem:[#allocation3 + $0x278] sm:$0xff] }
 0x640   : > { %3644 = vmatmul.mubr.bf16.vlgmr.msra.gmra.mxu1 %v6211_v27  ;;  %3653 = vmatpush1.bf16.msra.mxu0 %v3387_v30  ;;  %v3555_v30 = vunpack.c.h.s8.bf16 %v3106_v20 }
 0x641   : > { %3694 = vmatpush1.bf16.msra.mxu1 %v3499_v36  ;;  %3654 = vmatprep.subr.bf16.mxu0 %v3381_v37  ;;  %v3437_v36 = vunpack.c.l.s8.bf16 %v3051_v50  ;;  %v3549_v37 = vunpack.c.l.s8.bf16 %v3107_v53  ;;  %v2969_v50 = vld [vmem:[#allocation3 + $0x280] sm:$0xff] }
 0x642   : > { %3695 = vmatprep.subr.bf16.mxu1 %v3493_v5  ;;  %3684 = vmatprep.mubr.bf16.mxu0 %v6215_v31  ;;  %v3044_v5 = vld [vmem:[#allocation3 + $0x4d8] sm:$0xff] }
 0x643   : > { %3725 = vmatprep.mubr.bf16.mxu1 %v6219_v8 }
 0x644   : > { %3655 = vmatpush1.bf16.msra.mxu0 %v3380_v10  ;;  %v3548_v10 = vunpack.c.l.s8.bf16 %v3106_v20  ;;  %v6227_v20 = vpack.c.bf16 %v6184_v12, %v6184_v12 }
 0x645   : > { %3696 = vmatpush1.bf16.msra.mxu1 %v3492_v58  ;;  %3656 = vmatprep.subr.bf16.mxu0 %v3374_v59  ;;  %v3430_v58 = vunpack.c.h.s8.bf16 %v3044_v5  ;;  %v3542_v59 = vunpack.c.h.s8.bf16 %v3100_v38 }
 0x646   : > { %3697 = vmatprep.subr.bf16.mxu1 %v3486_v18  ;;  %v3043_v18 = vld [vmem:[#allocation3 + $0x4d0] sm:$0xff] }
 0x647   : > { %v3429_v41 = vunpack.c.h.s8.bf16 %v3043_v18  ;;  %v3422_v46 = vunpack.c.l.s8.bf16 %v3043_v18  ;;  %v2961_v18 = vld [vmem:[#allocation3 + $0x240] sm:$0xff] }
 0x648   : > { %3657 = vmatpush1.bf16.msra.mxu0 %v3373_v13  ;;  %v3541_v13 = vunpack.c.h.s8.bf16 %v3099_v61 }
 0x649   : > { %3698 = vmatpush1.bf16.msra.mxu1 %v3485_v15  ;;  %3658 = vmatprep.subr.bf16.mxu0 %v3367_v42  ;;  %v3423_v15 = vunpack.c.l.s8.bf16 %v3044_v5  ;;  %v3535_v42 = vunpack.c.l.s8.bf16 %v3100_v38  ;;  %v3271_v5 = vunpack.c.l.s8.bf16 %v2969_v50  ;;  %v2906_v38 = vld [vmem:[#allocation3 + $0x88] sm:$0xff] }
 0x64a   : > { %3699 = vmatprep.subr.bf16.mxu1 %v3479_v52  ;;  %v3037_v52 = vld [vmem:[#allocation3 + $0x4a0] sm:$0xff] }
 0x64c   : > { %3659 = vmatpush1.bf16.msra.mxu0 %v3366_v49  ;;  %v3534_v49 = vunpack.c.l.s8.bf16 %v3099_v61 }
 0x64d   : > { %3700 = vmatpush1.bf16.msra.mxu1 %v3478_v56  ;;  %3660 = vmatprep.subr.bf16.mxu0 %v3360_v25  ;;  %v3416_v56 = vunpack.c.h.s8.bf16 %v3037_v52  ;;  %v3528_v25 = vunpack.c.h.s8.bf16 %v3093_v44 }
 0x64e   : > { %3701 = vmatprep.subr.bf16.mxu1 %v3472_v26  ;;  %v3036_v26 = vld [vmem:[#allocation3 + $0x498] sm:$0xff] }
 0x64f   : > { %v3415_v55 = vunpack.c.h.s8.bf16 %v3036_v26  ;;  %v3408_v51 = vunpack.c.l.s8.bf16 %v3036_v26  ;;  %v2954_v26 = vld [vmem:[#allocation3 + $0x208] sm:$0xff] }
 0x650   : > { %3661 = vmatpush1.bf16.msra.mxu0 %v3359_v57  ;;  %v3527_v57 = vunpack.c.h.s8.bf16 %v3092_v54 }
 0x651   : > { %3702 = vmatpush1.bf16.msra.mxu1 %v3471_v63  ;;  %3662 = vmatprep.subr.bf16.mxu0 %v3353_v0  ;;  %v3409_v63 = vunpack.c.l.s8.bf16 %v3037_v52  ;;  %v3521_v0 = vunpack.c.l.s8.bf16 %v3093_v44  ;;  %v2955_v52 = vld [vmem:[#allocation3 + $0x210] sm:$0xff] }
 0x652   : > { %3703 = vmatprep.subr.bf16.mxu1 %v3465_v1  ;;  %v3030_v1 = vld [vmem:[#allocation3 + $0x468] sm:$0xff] }
 0x654   : > { %3663 = vmatpush1.bf16.msra.mxu0 %v3352_v3  ;;  %v3520_v3 = vunpack.c.l.s8.bf16 %v3092_v54 }
 0x655   : > { %3704 = vmatpush1.bf16.msra.mxu1 %v3464_v4  ;;  %3664 = vmatprep.subr.bf16.mxu0 %v3346_v47  ;;  %v3402_v4 = vunpack.c.h.s8.bf16 %v3030_v1  ;;  %v3514_v47 = vunpack.c.h.s8.bf16 %v3086_v2 }
 0x656   : > { %3705 = vmatprep.subr.bf16.mxu1 %v3458_v7  ;;  %v3029_v7 = vld [vmem:[#allocation3 + $0x460] sm:$0xff] }
 0x657   : > { %v3401_v28 = vunpack.c.h.s8.bf16 %v3029_v7  ;;  %v3394_v53 = vunpack.c.l.s8.bf16 %v3029_v7  ;;  %v2947_v7 = vld [vmem:[#allocation3 + $0x1d0] sm:$0xff] }
 0x658   : > { %3665 = vmatpush1.bf16.msra.mxu0 %v3345_v22  ;;  %v3513_v22 = vunpack.c.h.s8.bf16 %v3085_v23 }
 0x659   : > { %3706 = vmatpush1.bf16.msra.mxu1 %v3457_v29  ;;  %3666 = vmatprep.subr.bf16.mxu0 %v3339_v39  ;;  %v3395_v29 = vunpack.c.l.s8.bf16 %v3030_v1  ;;  %v3507_v39 = vunpack.c.l.s8.bf16 %v3086_v2  ;;  %v2948_v1 = vld [vmem:[#allocation3 + $0x1d8] sm:$0xff] }
 0x65a   : > { %3707 = vmatprep.subr.bf16.mxu1 %v3451_v34  ;;  %v2913_v34 = vld [vmem:[#allocation3 + $0xc0] sm:$0xff] }
 0x65c   : > { %3667 = vmatpush1.bf16.msra.mxu0 %v3338_v48  ;;  %v3506_v48 = vunpack.c.l.s8.bf16 %v3085_v23 }
 0x65d   : > { %3708 = vmatpush1.bf16.msra.mxu1 %v3450_v9  ;;  %3668 = vmatprep.subr.bf16.mxu0 %v3444_v11  ;;  %v3166_v9 = vunpack.c.h.s8.bf16 %v2913_v34  ;;  %v3278_v11 = vunpack.c.h.s8.bf16 %v2969_v50 }
 0x65e   : > { %3709 = vmatprep.subr.bf16.mxu1 %v3556_v17  ;;  %v2912_v17 = vld [vmem:[#allocation3 + $0xb8] sm:$0xff] }
 0x65f   : > { %v3158_v12 = vunpack.c.l.s8.bf16 %v2912_v17 }
 0x660   : > { %3669 = vmatpush2.bf16.msra.mxu0 %v3443_v21  ;;  %v6231_v21 = vpack.c.bf16 %v6190_v14, %v6190_v14  ;;  %v3152_v14 = vunpack.c.h.s8.bf16 %v2906_v38 }
 0x661   : > { %3710 = vmatpush2.bf16.msra.mxu1 %v3555_v30  ;;  %3670 = vmatprep.subr.bf16.mxu0 %v3437_v36  ;;  %v3165_v30 = vunpack.c.h.s8.bf16 %v2912_v17  ;;  %v3277_v36 = vunpack.c.h.s8.bf16 %v2968_v19  ;;  %v2996_v17 = vld [vmem:[#allocation3 + $0x358] sm:$0xff] }
 0x662   : > { %3711 = vmatprep.subr.bf16.mxu1 %v3549_v37  ;;  %v3159_v37 = vunpack.c.l.s8.bf16 %v2913_v34  ;;  %v2997_v34 = vld [vmem:[#allocation3 + $0x360] sm:$0xff] }
 0x664   : > { %3671 = vmatpush2.bf16.msra.mxu0 %v3436_v40  ;;  %v2962_v40 = vld [vmem:[#allocation3 + $0x248] sm:$0xff] }
 0x665   : > { %3712 = vmatpush2.bf16.msra.mxu1 %v3548_v10  ;;  %3672 = vmatprep.subr.bf16.mxu0 %v3430_v58  ;;  %v3270_v10 = vunpack.c.l.s8.bf16 %v2968_v19  ;;  %v3264_v58 = vunpack.c.h.s8.bf16 %v2962_v40 }
 0x666   : > { %3713 = vmatprep.subr.bf16.mxu1 %v3542_v59  ;;  %v2905_v59 = vld [vmem:[#allocation3 + $0x80] sm:$0xff] }
 0x667   : > { %v3151_v61 = vunpack.c.h.s8.bf16 %v2905_v59  ;;  %v3144_v44 = vunpack.c.l.s8.bf16 %v2905_v59  ;;  %v2989_v59 = vld [vmem:[#allocation3 + $0x320] sm:$0xff] }
 0x668   : > { %3673 = vmatpush2.bf16.msra.mxu0 %v3429_v41  ;;  %v3263_v41 = vunpack.c.h.s8.bf16 %v2961_v18 }
 0x669   : > { %3714 = vmatpush2.bf16.msra.mxu1 %v3541_v13  ;;  %3674 = vmatprep.subr.bf16.mxu0 %v3423_v15  ;;  %v3145_v13 = vunpack.c.l.s8.bf16 %v2906_v38  ;;  %v3257_v15 = vunpack.c.l.s8.bf16 %v2962_v40  ;;  %v2990_v38 = vld [vmem:[#allocation3 + $0x328] sm:$0xff] }
 0x66a   : > { %3715 = vmatprep.subr.bf16.mxu1 %v3535_v42  ;;  %v2899_v42 = vld [vmem:[#allocation3 + $0x50] sm:$0xff] }
 0x66c   : > { %3675 = vmatpush2.bf16.msra.mxu0 %v3422_v46  ;;  %v3256_v46 = vunpack.c.l.s8.bf16 %v2961_v18 }
 0x66d   : > { %3716 = vmatpush2.bf16.msra.mxu1 %v3534_v49  ;;  %3676 = vmatprep.subr.bf16.mxu0 %v3416_v56  ;;  %v3138_v49 = vunpack.c.h.s8.bf16 %v2899_v42  ;;  %v3250_v56 = vunpack.c.h.s8.bf16 %v2955_v52 }
 0x66e   : > { %3717 = vmatprep.subr.bf16.mxu1 %v3528_v25  ;;  %v2898_v25 = vld [vmem:[#allocation3 + $0x48] sm:$0xff] }
 0x66f   : > { %v3137_v54 = vunpack.c.h.s8.bf16 %v2898_v25  ;;  %v3130_v2 = vunpack.c.l.s8.bf16 %v2898_v25  ;;  %v2982_v25 = vld [vmem:[#allocation3 + $0x2e8] sm:$0xff] }
 0x670   : > { %3677 = vmatpush2.bf16.msra.mxu0 %v3415_v55  ;;  %v3249_v55 = vunpack.c.h.s8.bf16 %v2954_v26 }
 0x671   : > { %3718 = vmatpush2.bf16.msra.mxu1 %v3527_v57  ;;  %3678 = vmatprep.subr.bf16.mxu0 %v3409_v63  ;;  %v3131_v57 = vunpack.c.l.s8.bf16 %v2899_v42  ;;  %v3243_v63 = vunpack.c.l.s8.bf16 %v2955_v52  ;;  %v2983_v42 = vld [vmem:[#allocation3 + $0x2f0] sm:$0xff] }
 0x672   : > { %3719 = vmatprep.subr.bf16.mxu1 %v3521_v0  ;;  %v2892_v0 = vld [vmem:[#allocation3 + $0x18] sm:$0xff] }
 0x674   : > { %3679 = vmatpush2.bf16.msra.mxu0 %v3408_v51  ;;  %v3242_v51 = vunpack.c.l.s8.bf16 %v2954_v26 }
 0x675   : > { %3720 = vmatpush2.bf16.msra.mxu1 %v3520_v3  ;;  %3680 = vmatprep.subr.bf16.mxu0 %v3402_v4  ;;  %v3124_v3 = vunpack.c.h.s8.bf16 %v2892_v0  ;;  %v3236_v4 = vunpack.c.h.s8.bf16 %v2948_v1 }
 0x676   : > { %3721 = vmatprep.subr.bf16.mxu1 %v3514_v47  ;;  %v2891_v47 = vld [vmem:[#allocation3 + $0x10] sm:$0xff] }
 0x677   : > { %v3123_v23 = vunpack.c.h.s8.bf16 %v2891_v47  ;;  %v3116_v50 = vunpack.c.l.s8.bf16 %v2891_v47  ;;  %v2975_v47 = vld [vmem:[#allocation3 + $0x2b0] sm:$0xff] }
 0x678   : > { %3681 = vmatpush2.bf16.msra.mxu0 %v3401_v28  ;;  %v3235_v28 = vunpack.c.h.s8.bf16 %v2947_v7 }
 0x679   : > { %3722 = vmatpush2.bf16.msra.mxu1 %v3513_v22  ;;  %3682 = vmatprep.subr.bf16.mxu0 %v3395_v29  ;;  %v3117_v22 = vunpack.c.l.s8.bf16 %v2892_v0  ;;  %v3229_v29 = vunpack.c.l.s8.bf16 %v2948_v1  ;;  %v2976_v0 = vld [vmem:[#allocation3 + $0x2b8] sm:$0xff] }
 0x67a   : > { %3723 = vmatprep.subr.bf16.mxu1 %v3507_v39  ;;  %v2941_v39 = vld [vmem:[#allocation3 + $0x1a0] sm:$0xff] }
 0x67c   : > { %3683 = vmatpush2.bf16.msra.mxu0 %v3394_v53  ;;  %v3228_v53 = vunpack.c.l.s8.bf16 %v2947_v7 }
 0x67d   : > { %3724 = vmatpush2.bf16.msra.mxu1 %v3506_v48  ;;  %3734 = vmatprep.subr.bf16.mxu0 %v3166_v9  ;;  %v3222_v48 = vunpack.c.h.s8.bf16 %v2941_v39  ;;  %v3334_v9 = vunpack.c.h.s8.bf16 %v2997_v34 }
 0x67e   : > { %3775 = vmatprep.subr.bf16.mxu1 %v3278_v11  ;;  %v2940_v11 = vld [vmem:[#allocation3 + $0x198] sm:$0xff] }
 0x67f   : > { %3685 = vmatmul.mubr.bf16.vlgmr.msra.gmra.mxu0 %v6227_v20  ;;  %v3221_v19 = vunpack.c.h.s8.bf16 %v2940_v11  ;;  %v3214_v40 = vunpack.c.l.s8.bf16 %v2940_v11  ;;  %v3080_v11 = vld [vmem:[#allocation3 + $0x5f8] sm:$0xff] }
 0x680   : > { %3726 = vmatmul.mubr.bf16.vlgmr.msra.gmra.mxu1 %v6231_v21  ;;  %3735 = vmatpush1.bf16.msra.mxu0 %v3165_v30  ;;  %v3333_v30 = vunpack.c.h.s8.bf16 %v2996_v17 }
 0x681   : > { %3776 = vmatpush1.bf16.msra.mxu1 %v3277_v36  ;;  %3736 = vmatprep.subr.bf16.mxu0 %v3159_v37  ;;  %v3215_v36 = vunpack.c.l.s8.bf16 %v2941_v39  ;;  %v3327_v37 = vunpack.c.l.s8.bf16 %v2997_v34  ;;  %v3081_v39 = vld [vmem:[#allocation3 + $0x600] sm:$0xff] }
 0x682   : > { %3777 = vmatprep.subr.bf16.mxu1 %v3271_v5  ;;  %3766 = vmatprep.mubr.bf16.mxu0 %v6199_v32  ;;  %v2934_v5 = vld [vmem:[#allocation3 + $0x168] sm:$0xff] }
 0x683   : > { %3807 = vmatprep.mubr.bf16.mxu1 %v6201_v16 }
 0x684   : > { %3737 = vmatpush1.bf16.msra.mxu0 %v3158_v12  ;;  %v3326_v12 = vunpack.c.l.s8.bf16 %v2996_v17 }
 0x685   : > { %3778 = vmatpush1.bf16.msra.mxu1 %v3270_v10  ;;  %3738 = vmatprep.subr.bf16.mxu0 %v3152_v14  ;;  %v3208_v10 = vunpack.c.h.s8.bf16 %v2934_v5  ;;  %v3320_v14 = vunpack.c.h.s8.bf16 %v2990_v38 }
 0x686   : > { %3779 = vmatprep.subr.bf16.mxu1 %v3264_v58  ;;  %v2933_v58 = vld [vmem:[#allocation3 + $0x160] sm:$0xff] }
 0x687   : > { %v3207_v18 = vunpack.c.h.s8.bf16 %v2933_v58  ;;  %v3200_v52 = vunpack.c.l.s8.bf16 %v2933_v58  ;;  %v3073_v58 = vld [vmem:[#allocation3 + $0x5c0] sm:$0xff] }
 0x688   : > { %3739 = vmatpush1.bf16.msra.mxu0 %v3151_v61  ;;  %v3319_v61 = vunpack.c.h.s8.bf16 %v2989_v59 }
 0x689   : > { %3780 = vmatpush1.bf16.msra.mxu1 %v3263_v41  ;;  %3740 = vmatprep.subr.bf16.mxu0 %v3145_v13  ;;  %v3201_v41 = vunpack.c.l.s8.bf16 %v2934_v5  ;;  %v3313_v13 = vunpack.c.l.s8.bf16 %v2990_v38  ;;  %v3074_v5 = vld [vmem:[#allocation3 + $0x5c8] sm:$0xff] }
 0x68a   : > { %3781 = vmatprep.subr.bf16.mxu1 %v3257_v15  ;;  %v2927_v15 = vld [vmem:[#allocation3 + $0x130] sm:$0xff] }
 0x68c   : > { %3741 = vmatpush1.bf16.msra.mxu0 %v3144_v44  ;;  %v3312_v44 = vunpack.c.l.s8.bf16 %v2989_v59 }
 0x68d   : > { %3782 = vmatpush1.bf16.msra.mxu1 %v3256_v46  ;;  %3742 = vmatprep.subr.bf16.mxu0 %v3138_v49  ;;  %v3194_v46 = vunpack.c.h.s8.bf16 %v2927_v15  ;;  %v3306_v49 = vunpack.c.h.s8.bf16 %v2983_v42 }
 0x68e   : > { %3783 = vmatprep.subr.bf16.mxu1 %v3250_v56  ;;  %v2926_v56 = vld [vmem:[#allocation3 + $0x128] sm:$0xff] }
 0x68f   : > { %v3193_v26 = vunpack.c.h.s8.bf16 %v2926_v56  ;;  %v3186_v1 = vunpack.c.l.s8.bf16 %v2926_v56  ;;  %v3066_v56 = vld [vmem:[#allocation3 + $0x588] sm:$0xff] }
 0x690   : > { %3743 = vmatpush1.bf16.msra.mxu0 %v3137_v54  ;;  %v3305_v54 = vunpack.c.h.s8.bf16 %v2982_v25 }
 0x691   : > { %3784 = vmatpush1.bf16.msra.mxu1 %v3249_v55  ;;  %3744 = vmatprep.subr.bf16.mxu0 %v3131_v57  ;;  %v3187_v55 = vunpack.c.l.s8.bf16 %v2927_v15  ;;  %v3299_v57 = vunpack.c.l.s8.bf16 %v2983_v42  ;;  %v3067_v15 = vld [vmem:[#allocation3 + $0x590] sm:$0xff] }
 0x692   : > { %3785 = vmatprep.subr.bf16.mxu1 %v3243_v63  ;;  %v2920_v63 = vld [vmem:[#allocation3 + $0xf8] sm:$0xff] }
 0x694   : > { %3745 = vmatpush1.bf16.msra.mxu0 %v3130_v2  ;;  %v3298_v2 = vunpack.c.l.s8.bf16 %v2982_v25 }
 0x695   : > { %3786 = vmatpush1.bf16.msra.mxu1 %v3242_v51  ;;  %3746 = vmatprep.subr.bf16.mxu0 %v3124_v3  ;;  %v3180_v51 = vunpack.c.h.s8.bf16 %v2920_v63  ;;  %v3292_v3 = vunpack.c.h.s8.bf16 %v2976_v0 }
 0x696   : > { %3787 = vmatprep.subr.bf16.mxu1 %v3236_v4  ;;  %v2919_v4 = vld [vmem:[#allocation3 + $0xf0] sm:$0xff] }
 0x697   : > { %v3179_v7 = vunpack.c.h.s8.bf16 %v2919_v4  ;;  %v3172_v34 = vunpack.c.l.s8.bf16 %v2919_v4  ;;  %v3059_v4 = vld [vmem:[#allocation3 + $0x550] sm:$0xff] }
 0x698   : > { %3747 = vmatpush1.bf16.msra.mxu0 %v3123_v23  ;;  %v3291_v23 = vunpack.c.h.s8.bf16 %v2975_v47 }
 0x699   : > { %3788 = vmatpush1.bf16.msra.mxu1 %v3235_v28  ;;  %3748 = vmatprep.subr.bf16.mxu0 %v3117_v22  ;;  %v3173_v28 = vunpack.c.l.s8.bf16 %v2920_v63  ;;  %v3285_v22 = vunpack.c.l.s8.bf16 %v2976_v0  ;;  %v3060_v63 = vld [vmem:[#allocation3 + $0x558] sm:$0xff] }
 0x69a   : > { %3789 = vmatprep.subr.bf16.mxu1 %v3229_v29  ;;  %v3025_v29 = vld [vmem:[#allocation3 + $0x440] sm:$0xff] }
 0x69c   : > { %3749 = vmatpush1.bf16.msra.mxu0 %v3116_v50  ;;  %v3284_v50 = vunpack.c.l.s8.bf16 %v2975_v47 }
 0x69d   : > { %3790 = vmatpush1.bf16.msra.mxu1 %v3228_v53  ;;  %3750 = vmatprep.subr.bf16.mxu0 %v3222_v48  ;;  %v3390_v53 = vunpack.c.h.s8.bf16 %v3025_v29  ;;  %v3502_v48 = vunpack.c.h.s8.bf16 %v3081_v39 }
 0x69e   : > { %3791 = vmatprep.subr.bf16.mxu1 %v3334_v9  ;;  %v3024_v9 = vld [vmem:[#allocation3 + $0x438] sm:$0xff] }
 0x69f   : > { %v3389_v17 = vunpack.c.h.s8.bf16 %v3024_v9  ;;  %v3382_v38 = vunpack.c.l.s8.bf16 %v3024_v9  ;;  %v3108_v9 = vld [vmem:[#allocation3 + $0x6d8] sm:$0xff] }
 0x6a0   : > { %3751 = vmatpush2.bf16.msra.mxu0 %v3221_v19  ;;  %v3501_v19 = vunpack.c.h.s8.bf16 %v3080_v11 }
 0x6a1   : > { %3792 = vmatpush2.bf16.msra.mxu1 %v3333_v30  ;;  %3752 = vmatprep.subr.bf16.mxu0 %v3215_v36  ;;  %v3383_v30 = vunpack.c.l.s8.bf16 %v3025_v29  ;;  %v3495_v36 = vunpack.c.l.s8.bf16 %v3081_v39  ;;  %v3109_v29 = vld [vmem:[#allocation3 + $0x6e0] sm:$0xff] }
 0x6a2   : > { %3793 = vmatprep.subr.bf16.mxu1 %v3327_v37  ;;  %v3018_v37 = vld [vmem:[#allocation3 + $0x408] sm:$0xff] }
 0x6a4   : > { %3753 = vmatpush2.bf16.msra.mxu0 %v3214_v40  ;;  %v3494_v40 = vunpack.c.l.s8.bf16 %v3080_v11 }
 0x6a5   : > { %3794 = vmatpush2.bf16.msra.mxu1 %v3326_v12  ;;  %3754 = vmatprep.subr.bf16.mxu0 %v3208_v10  ;;  %v3376_v12 = vunpack.c.h.s8.bf16 %v3018_v37  ;;  %v3488_v10 = vunpack.c.h.s8.bf16 %v3074_v5 }
 0x6a6   : > { %3795 = vmatprep.subr.bf16.mxu1 %v3320_v14  ;;  %v3017_v14 = vld [vmem:[#allocation3 + $0x400] sm:$0xff] }
 0x6a7   : > { %v3375_v59 = vunpack.c.h.s8.bf16 %v3017_v14  ;;  %v3368_v42 = vunpack.c.l.s8.bf16 %v3017_v14  ;;  %v3101_v14 = vld [vmem:[#allocation3 + $0x6a0] sm:$0xff] }
 0x6a8   : > { %3755 = vmatpush2.bf16.msra.mxu0 %v3207_v18  ;;  %v3487_v18 = vunpack.c.h.s8.bf16 %v3073_v58 }
 0x6a9   : > { %3796 = vmatpush2.bf16.msra.mxu1 %v3319_v61  ;;  %3756 = vmatprep.subr.bf16.mxu0 %v3201_v41  ;;  %v3369_v61 = vunpack.c.l.s8.bf16 %v3018_v37  ;;  %v3481_v41 = vunpack.c.l.s8.bf16 %v3074_v5  ;;  %v3102_v37 = vld [vmem:[#allocation3 + $0x6a8] sm:$0xff] }
 0x6aa   : > { %3797 = vmatprep.subr.bf16.mxu1 %v3313_v13  ;;  %v3011_v13 = vld [vmem:[#allocation3 + $0x3d0] sm:$0xff] }
 0x6ac   : > { %3757 = vmatpush2.bf16.msra.mxu0 %v3200_v52  ;;  %v3480_v52 = vunpack.c.l.s8.bf16 %v3073_v58 }
 0x6ad   : > { %3798 = vmatpush2.bf16.msra.mxu1 %v3312_v44  ;;  %3758 = vmatprep.subr.bf16.mxu0 %v3194_v46  ;;  %v3362_v44 = vunpack.c.h.s8.bf16 %v3011_v13  ;;  %v3474_v46 = vunpack.c.h.s8.bf16 %v3067_v15 }
 0x6ae   : > { %3799 = vmatprep.subr.bf16.mxu1 %v3306_v49  ;;  %v3010_v49 = vld [vmem:[#allocation3 + $0x3c8] sm:$0xff] }
 0x6af   : > { %v3361_v25 = vunpack.c.h.s8.bf16 %v3010_v49  ;;  %v3354_v0 = vunpack.c.l.s8.bf16 %v3010_v49  ;;  %v3094_v49 = vld [vmem:[#allocation3 + $0x668] sm:$0xff] }
 0x6b0   : > { %3759 = vmatpush2.bf16.msra.mxu0 %v3193_v26  ;;  %v3473_v26 = vunpack.c.h.s8.bf16 %v3066_v56 }
 0x6b1   : > { %3800 = vmatpush2.bf16.msra.mxu1 %v3305_v54  ;;  %3760 = vmatprep.subr.bf16.mxu0 %v3187_v55  ;;  %v3355_v54 = vunpack.c.l.s8.bf16 %v3011_v13  ;;  %v3467_v55 = vunpack.c.l.s8.bf16 %v3067_v15  ;;  %v3095_v13 = vld [vmem:[#allocation3 + $0x670] sm:$0xff] }
 0x6b2   : > { %3801 = vmatprep.subr.bf16.mxu1 %v3299_v57  ;;  %v3004_v57 = vld [vmem:[#allocation3 + $0x398] sm:$0xff] }
 0x6b4   : > { %3761 = vmatpush2.bf16.msra.mxu0 %v3186_v1  ;;  %v3466_v1 = vunpack.c.l.s8.bf16 %v3066_v56 }
 0x6b5   : > { %3802 = vmatpush2.bf16.msra.mxu1 %v3298_v2  ;;  %3762 = vmatprep.subr.bf16.mxu0 %v3180_v51  ;;  %v3348_v2 = vunpack.c.h.s8.bf16 %v3004_v57  ;;  %v3460_v51 = vunpack.c.h.s8.bf16 %v3060_v63 }
 0x6b6   : > { %3803 = vmatprep.subr.bf16.mxu1 %v3292_v3  ;;  %v3003_v3 = vld [vmem:[#allocation3 + $0x390] sm:$0xff] }
 0x6b7   : > { %v3347_v47 = vunpack.c.h.s8.bf16 %v3003_v3  ;;  %v3340_v39 = vunpack.c.l.s8.bf16 %v3003_v3  ;;  %v3087_v3 = vld [vmem:[#allocation3 + $0x630] sm:$0xff] }
 0x6b8   : > { %3763 = vmatpush2.bf16.msra.mxu0 %v3179_v7  ;;  %v3459_v7 = vunpack.c.h.s8.bf16 %v3059_v4 }
 0x6b9   : > { %3804 = vmatpush2.bf16.msra.mxu1 %v3291_v23  ;;  %3764 = vmatprep.subr.bf16.mxu0 %v3173_v28  ;;  %v3341_v23 = vunpack.c.l.s8.bf16 %v3004_v57  ;;  %v3453_v28 = vunpack.c.l.s8.bf16 %v3060_v63  ;;  %v3088_v57 = vld [vmem:[#allocation3 + $0x638] sm:$0xff] }
 0x6ba   : > { %3805 = vmatprep.subr.bf16.mxu1 %v3285_v22  ;;  %v3053_v22 = vld [vmem:[#allocation3 + $0x520] sm:$0xff] }
 0x6bc   : > { %3765 = vmatpush2.bf16.msra.mxu0 %v3172_v34  ;;  %v3452_v34 = vunpack.c.l.s8.bf16 %v3059_v4 }
 0x6bd   : > { %3806 = vmatpush2.bf16.msra.mxu1 %v3284_v50  ;;  %3816 = vmatprep.subr.bf16.mxu0 %v3390_v53  ;;  %v3446_v50 = vunpack.c.h.s8.bf16 %v3053_v22  ;;  %v3558_v53 = vunpack.c.h.s8.bf16 %v3109_v29 }
 0x6be   : > { %3857 = vmatprep.subr.bf16.mxu1 %v3502_v48  ;;  %v3052_v48 = vld [vmem:[#allocation3 + $0x518] sm:$0xff] }
 0x6bf   : > { %3767 = vmatmul.mubr.bf16.vlgmr.msra.gmra.mxu0 %v6207_v24  ;;  %v3445_v11 = vunpack.c.h.s8.bf16 %v3052_v48  ;;  %v3438_v5 = vunpack.c.l.s8.bf16 %v3052_v48  ;;  %v2970_v48 = vld [vmem:[#allocation3 + $0x288] sm:$0xff] }
 0x6c0   : > { %3808 = vmatmul.mubr.bf16.vlgmr.msra.gmra.mxu1 %v6211_v27  ;;  %3817 = vmatpush1.bf16.msra.mxu0 %v3389_v17  ;;  %v3557_v17 = vunpack.c.h.s8.bf16 %v3108_v9 }
 0x6c1   : > { %3858 = vmatpush1.bf16.msra.mxu1 %v3501_v19  ;;  %3818 = vmatprep.subr.bf16.mxu0 %v3383_v30  ;;  %v3439_v19 = vunpack.c.l.s8.bf16 %v3053_v22  ;;  %v3551_v30 = vunpack.c.l.s8.bf16 %v3109_v29  ;;  %v2971_v22 = vld [vmem:[#allocation3 + $0x290] sm:$0xff] }
 0x6c2   : > { %3859 = vmatprep.subr.bf16.mxu1 %v3495_v36  ;;  %3848 = vmatprep.mubr.bf16.mxu0 %v6215_v31  ;;  %v3046_v36 = vld [vmem:[#allocation3 + $0x4e8] sm:$0xff] }
 0x6c3   : > { %3889 = vmatprep.mubr.bf16.mxu1 %v6219_v8 }
 0x6c4   : > { %3819 = vmatpush1.bf16.msra.mxu0 %v3382_v38  ;;  %v3550_v38 = vunpack.c.l.s8.bf16 %v3108_v9 }
 0x6c5   : > { %3860 = vmatpush1.bf16.msra.mxu1 %v3494_v40  ;;  %3820 = vmatprep.subr.bf16.mxu0 %v3376_v12  ;;  %v3432_v40 = vunpack.c.h.s8.bf16 %v3046_v36  ;;  %v3544_v12 = vunpack.c.h.s8.bf16 %v3102_v37 }
 0x6c6   : > { %3861 = vmatprep.subr.bf16.mxu1 %v3488_v10  ;;  %v3045_v10 = vld [vmem:[#allocation3 + $0x4e0] sm:$0xff] }
 0x6c7   : > { %v3431_v58 = vunpack.c.h.s8.bf16 %v3045_v10  ;;  %v3424_v15 = vunpack.c.l.s8.bf16 %v3045_v10 }
 0x6c8   : > { %3821 = vmatpush1.bf16.msra.mxu0 %v3375_v59  ;;  %v3543_v59 = vunpack.c.h.s8.bf16 %v3101_v14 }
 0x6c9   : > { %3862 = vmatpush1.bf16.msra.mxu1 %v3487_v18  ;;  %3822 = vmatprep.subr.bf16.mxu0 %v3369_v61  ;;  %v3425_v18 = vunpack.c.l.s8.bf16 %v3046_v36  ;;  %v3537_v61 = vunpack.c.l.s8.bf16 %v3102_v37  ;;  %v2964_v36 = vld [vmem:[#allocation3 + $0x258] sm:$0xff] }
 0x6ca   : > { %3863 = vmatprep.subr.bf16.mxu1 %v3481_v41  ;;  %v3039_v41 = vld [vmem:[#allocation3 + $0x4b0] sm:$0xff] }
 0x6cc   : > { %3823 = vmatpush1.bf16.msra.mxu0 %v3368_v42  ;;  %v3536_v42 = vunpack.c.l.s8.bf16 %v3101_v14 }
 0x6cd   : > { %3864 = vmatpush1.bf16.msra.mxu1 %v3480_v52  ;;  %3824 = vmatprep.subr.bf16.mxu0 %v3362_v44  ;;  %v3418_v52 = vunpack.c.h.s8.bf16 %v3039_v41  ;;  %v3530_v44 = vunpack.c.h.s8.bf16 %v3095_v13 }
 0x6ce   : > { %3865 = vmatprep.subr.bf16.mxu1 %v3474_v46  ;;  %v3038_v46 = vld [vmem:[#allocation3 + $0x4a8] sm:$0xff] }
 0x6cf   : > { %v3417_v56 = vunpack.c.h.s8.bf16 %v3038_v46  ;;  %v3410_v63 = vunpack.c.l.s8.bf16 %v3038_v46  ;;  %v3259_v46 = vunpack.c.l.s8.bf16 %v2964_v36 }
 0x6d0   : > { %3825 = vmatpush1.bf16.msra.mxu0 %v3361_v25  ;;  %v3529_v25 = vunpack.c.h.s8.bf16 %v3094_v49 }
 0x6d1   : > { %3866 = vmatpush1.bf16.msra.mxu1 %v3473_v26  ;;  %3826 = vmatprep.subr.bf16.mxu0 %v3355_v54  ;;  %v3411_v26 = vunpack.c.l.s8.bf16 %v3039_v41  ;;  %v3523_v54 = vunpack.c.l.s8.bf16 %v3095_v13 }
 0x6d2   : > { %3867 = vmatprep.subr.bf16.mxu1 %v3467_v55  ;;  %v3032_v55 = vld [vmem:[#allocation3 + $0x478] sm:$0xff] }
 0x6d4   : > { %3827 = vmatpush1.bf16.msra.mxu0 %v3354_v0  ;;  %v3522_v0 = vunpack.c.l.s8.bf16 %v3094_v49  ;;  %v2901_v49 = vld [vmem:[#allocation3 + $0x60] sm:$0xff] }
 0x6d5   : > { %3868 = vmatpush1.bf16.msra.mxu1 %v3466_v1  ;;  %3828 = vmatprep.subr.bf16.mxu0 %v3348_v2  ;;  %v3404_v1 = vunpack.c.h.s8.bf16 %v3032_v55  ;;  %v3516_v2 = vunpack.c.h.s8.bf16 %v3088_v57 }
 0x6d6   : > { %3869 = vmatprep.subr.bf16.mxu1 %v3460_v51  ;;  %v3031_v51 = vld [vmem:[#allocation3 + $0x470] sm:$0xff] }
 0x6d7   : > { %v3403_v4 = vunpack.c.h.s8.bf16 %v3031_v51  ;;  %v3396_v29 = vunpack.c.l.s8.bf16 %v3031_v51 }
 0x6d8   : > { %3829 = vmatpush1.bf16.msra.mxu0 %v3347_v47  ;;  %v3515_v47 = vunpack.c.h.s8.bf16 %v3087_v3 }
 0x6d9   : > { %3870 = vmatpush1.bf16.msra.mxu1 %v3459_v7  ;;  %3830 = vmatprep.subr.bf16.mxu0 %v3341_v23  ;;  %v3397_v7 = vunpack.c.l.s8.bf16 %v3032_v55  ;;  %v3509_v23 = vunpack.c.l.s8.bf16 %v3088_v57  ;;  %v2900_v57 = vld [vmem:[#allocation3 + $0x58] sm:$0xff] }
 0x6da   : > { %3871 = vmatprep.subr.bf16.mxu1 %v3453_v28  ;;  %v2915_v28 = vld [vmem:[#allocation3 + $0xd0] sm:$0xff] }
 0x6dc   : > { %3831 = vmatpush1.bf16.msra.mxu0 %v3340_v39  ;;  %v3508_v39 = vunpack.c.l.s8.bf16 %v3087_v3  ;;  %v2894_v3 = vld [vmem:[#allocation3 + $0x28] sm:$0xff] }
 0x6dd   : > { %3872 = vmatpush1.bf16.msra.mxu1 %v3452_v34  ;;  %3832 = vmatprep.subr.bf16.mxu0 %v3446_v50  ;;  %v3168_v34 = vunpack.c.h.s8.bf16 %v2915_v28  ;;  %v3280_v50 = vunpack.c.h.s8.bf16 %v2971_v22 }
 0x6de   : > { %3873 = vmatprep.subr.bf16.mxu1 %v3558_v53  ;;  %v2914_v53 = vld [vmem:[#allocation3 + $0xc8] sm:$0xff] }
 0x6df   : > { %v3167_v9 = vunpack.c.h.s8.bf16 %v2914_v53 }
 0x6e0   : > { %3833 = vmatpush2.bf16.msra.mxu0 %v3445_v11  ;;  %v3279_v11 = vunpack.c.h.s8.bf16 %v2970_v48 }
 0x6e1   : > { %3874 = vmatpush2.bf16.msra.mxu1 %v3557_v17  ;;  %3834 = vmatprep.subr.bf16.mxu0 %v3439_v19  ;;  %v3161_v17 = vunpack.c.l.s8.bf16 %v2915_v28  ;;  %v3273_v19 = vunpack.c.l.s8.bf16 %v2971_v22  ;;  %v2893_v22 = vld [vmem:[#allocation3 + $0x20] sm:$0xff] }
 0x6e2   : > { %3875 = vmatprep.subr.bf16.mxu1 %v3551_v30  ;;  %v2908_v30 = vld [vmem:[#allocation3 + $0x98] sm:$0xff] }
 0x6e3   : > { %v3154_v14 = vunpack.c.h.s8.bf16 %v2908_v30 }
 0x6e4   : > { %3835 = vmatpush2.bf16.msra.mxu0 %v3438_v5 }
 0x6e5   : > { %3876 = vmatpush2.bf16.msra.mxu1 %v3550_v38  ;;  %3836 = vmatprep.subr.bf16.mxu0 %v3432_v40  ;;  %v3160_v38 = vunpack.c.l.s8.bf16 %v2914_v53  ;;  %v3272_v40 = vunpack.c.l.s8.bf16 %v2970_v48  ;;  %v2943_v48 = vld [vmem:[#allocation3 + $0x1b0] sm:$0xff] }
 0x6e6   : > { %3877 = vmatprep.subr.bf16.mxu1 %v3544_v12 }
 0x6e8   : > { %3837 = vmatpush2.bf16.msra.mxu0 %v3431_v58  ;;  %v3266_v58 = vunpack.c.h.s8.bf16 %v2964_v36  ;;  %v2942_v36 = vld [vmem:[#allocation3 + $0x1a8] sm:$0xff] }
 0x6e9   : > { %3878 = vmatpush2.bf16.msra.mxu1 %v3543_v59  ;;  %3838 = vmatprep.subr.bf16.mxu0 %v3425_v18  ;;  %v2907_v59 = vld [vmem:[#allocation3 + $0x90] sm:$0xff] }
 0x6ea   : > { %3879 = vmatprep.subr.bf16.mxu1 %v3537_v61  ;;  %v2963_v18 = vld [vmem:[#allocation3 + $0x250] sm:$0xff]  ;;  %v3153_v13 = vunpack.c.h.s8.bf16 %v2907_v59 }
 0x6ec   : > { %3839 = vmatpush2.bf16.msra.mxu0 %v3424_v15  ;;  %v3265_v15 = vunpack.c.h.s8.bf16 %v2963_v18 }
 0x6ed   : > { %3880 = vmatpush2.bf16.msra.mxu1 %v3536_v42  ;;  %3840 = vmatprep.subr.bf16.mxu0 %v3418_v52 }
 0x6ee   : > { %3881 = vmatprep.subr.bf16.mxu1 %v3530_v44  ;;  %v3147_v44 = vunpack.c.l.s8.bf16 %v2908_v30 }
 0x6f0   : > { %3841 = vmatpush2.bf16.msra.mxu0 %v3417_v56  ;;  %v2957_v56 = vld [vmem:[#allocation3 + $0x220] sm:$0xff] }
 0x6f1   : > { %3882 = vmatpush2.bf16.msra.mxu1 %v3529_v25  ;;  %3842 = vmatprep.subr.bf16.mxu0 %v3411_v26  ;;  %v3146_v25 = vunpack.c.l.s8.bf16 %v2907_v59  ;;  %v3258_v26 = vunpack.c.l.s8.bf16 %v2963_v18  ;;  %v3252_v55 = vunpack.c.h.s8.bf16 %v2957_v56  ;;  %v3245_v51 = vunpack.c.l.s8.bf16 %v2957_v56  ;;  %v2936_v18 = vld [vmem:[#allocation3 + $0x178] sm:$0xff] }
 0x6f2   : > { %3883 = vmatprep.subr.bf16.mxu1 %v3523_v54  ;;  %v3140_v54 = vunpack.c.h.s8.bf16 %v2901_v49  ;;  %v3203_v56 = vunpack.c.l.s8.bf16 %v2936_v18 }
 0x6f4   : > { %3843 = vmatpush2.bf16.msra.mxu0 %v3410_v63  ;;  %v2956_v63 = vld [vmem:[#allocation3 + $0x218] sm:$0xff] }
 0x6f5   : > { %3884 = vmatpush2.bf16.msra.mxu1 %v3522_v0  ;;  %3844 = vmatprep.subr.bf16.mxu0 %v3404_v1  ;;  %v3139_v0 = vunpack.c.h.s8.bf16 %v2900_v57  ;;  %v3251_v1 = vunpack.c.h.s8.bf16 %v2956_v63 }
 0x6f6   : > { %3885 = vmatprep.subr.bf16.mxu1 %v3516_v2  ;;  %v3133_v2 = vunpack.c.l.s8.bf16 %v2901_v49 }
 0x6f8   : > { %3845 = vmatpush2.bf16.msra.mxu0 %v3403_v4  ;;  %v2950_v4 = vld [vmem:[#allocation3 + $0x1e8] sm:$0xff] }
 0x6f9   : > { %3886 = vmatpush2.bf16.msra.mxu1 %v3515_v47  ;;  %3846 = vmatprep.subr.bf16.mxu0 %v3397_v7  ;;  %v3132_v47 = vunpack.c.l.s8.bf16 %v2900_v57  ;;  %v3244_v7 = vunpack.c.l.s8.bf16 %v2956_v63  ;;  %v3238_v28 = vunpack.c.h.s8.bf16 %v2950_v4  ;;  %v3231_v53 = vunpack.c.l.s8.bf16 %v2950_v4 }
 0x6fa   : > { %3887 = vmatprep.subr.bf16.mxu1 %v3509_v23  ;;  %v3126_v23 = vunpack.c.h.s8.bf16 %v2894_v3 }
 0x6fc   : > { %3847 = vmatpush2.bf16.msra.mxu0 %v3396_v29  ;;  %v2949_v29 = vld [vmem:[#allocation3 + $0x1e0] sm:$0xff] }
 0x6fd   : > { %3888 = vmatpush2.bf16.msra.mxu1 %v3508_v39  ;;  %3898 = vmatprep.subr.bf16.mxu0 %v3168_v34  ;;  %v3125_v39 = vunpack.c.h.s8.bf16 %v2893_v22  ;;  %v3237_v34 = vunpack.c.h.s8.bf16 %v2949_v29 }
 0x6fe   : > { %3939 = vmatprep.subr.bf16.mxu1 %v3280_v50  ;;  %v3119_v50 = vunpack.c.l.s8.bf16 %v2894_v3 }
 0x6ff   : > { %v6241_v37 = vpop.f32.mrf.mxu0  ;;  %3849 = vmatmul.mubr.bf16.vlgmr.msra.gmra.mxu0 %v6227_v20 }
 0x700   : > { %v6243_v5 = vpop.f32.mrf.mxu1  ;;  %3890 = vmatmul.mubr.bf16.vlgmr.msra.gmra.mxu1 %v6231_v21  ;;  %3899 = vmatpush1.bf16.msra.mxu0 %v3167_v9  ;;  %v2999_v9 = vld [vmem:[#allocation3 + $0x370] sm:$0xff] }
 0x701   : > { %3940 = vmatpush1.bf16.msra.mxu1 %v3279_v11  ;;  %v6247_v12 = vpop.f32.mrf.mxu0  ;;  %3900 = vmatprep.subr.bf16.mxu0 %v3161_v17  ;;  %v3118_v11 = vunpack.c.l.s8.bf16 %v2893_v22  ;;  %v3230_v17 = vunpack.c.l.s8.bf16 %v2949_v29  ;;  %v3336_v30 = vunpack.c.h.s8.bf16 %v2999_v9  ;;  %v3329_v59 = vunpack.c.l.s8.bf16 %v2999_v9 }
 0x702   : > { %v6249_v10 = vpop.f32.mrf.mxu1  ;;  %3941 = vmatprep.subr.bf16.mxu1 %v3273_v19  ;;  %3930 = vmatprep.mubr.bf16.mxu0 %v6199_v32  ;;  %v3224_v19 = vunpack.c.h.s8.bf16 %v2943_v48 }
 0x703   : > { %3971 = vmatprep.mubr.bf16.mxu1 %v6201_v16  ;;  %v3608_v61 = vpop.f32.mrf.mxu0 }
 0x704   : > { %v3649_v41 = vpop.f32.mrf.mxu1  ;;  %3901 = vmatpush1.bf16.msra.mxu0 %v3160_v38  ;;  %v2998_v38 = vld [vmem:[#allocation3 + $0x368] sm:$0xff]  ;;  %v2992_v61 = vld [vmem:[#allocation3 + $0x338] sm:$0xff] }
 0x705   : > { %3942 = vmatpush1.bf16.msra.mxu1 %v3272_v40  ;;  %v3609_v42 = vpop.f32.mrf.mxu0  ;;  %3902 = vmatprep.subr.bf16.mxu0 %v3154_v14  ;;  %v3223_v40 = vunpack.c.h.s8.bf16 %v2942_v36  ;;  %v3335_v14 = vunpack.c.h.s8.bf16 %v2998_v38  ;;  %v3216_v41 = vunpack.c.l.s8.bf16 %v2942_v36 }
 0x706   : > { %v3650_v52 = vpop.f32.mrf.mxu1  ;;  %3943 = vmatprep.subr.bf16.mxu1 %v3266_v58  ;;  %v3217_v58 = vunpack.c.l.s8.bf16 %v2943_v48  ;;  %v3322_v42 = vunpack.c.h.s8.bf16 %v2992_v61 }
 0x707   : > { %v2935_v52 = vld [vmem:[#allocation3 + $0x170] sm:$0xff] }
 0x708   : > { %3903 = vmatpush1.bf16.msra.mxu0 %v3153_v13  ;;  %v3328_v13 = vunpack.c.l.s8.bf16 %v2998_v38 }
 0x709   : > { %3944 = vmatpush1.bf16.msra.mxu1 %v3265_v15  ;;  %3904 = vmatprep.subr.bf16.mxu0 %v3147_v44  ;;  %v3210_v15 = vunpack.c.h.s8.bf16 %v2936_v18  ;;  %v2991_v44 = vld [vmem:[#allocation3 + $0x330] sm:$0xff] }
 0x70a   : > { %3945 = vmatprep.subr.bf16.mxu1 %v3259_v46  ;;  %v3209_v46 = vunpack.c.h.s8.bf16 %v2935_v52  ;;  %v3321_v49 = vunpack.c.h.s8.bf16 %v2991_v44  ;;  %v3314_v57 = vunpack.c.l.s8.bf16 %v2991_v44  ;;  %v3076_v44 = vld [vmem:[#allocation3 + $0x5d8] sm:$0xff] }
 0x70c   : > { %3905 = vmatpush1.bf16.msra.mxu0 %v3146_v25  ;;  %v3315_v25 = vunpack.c.l.s8.bf16 %v2992_v61 }
 0x70d   : > { %3946 = vmatpush1.bf16.msra.mxu1 %v3258_v26  ;;  %3906 = vmatprep.subr.bf16.mxu0 %v3140_v54  ;;  %v2929_v26 = vld [vmem:[#allocation3 + $0x140] sm:$0xff] }
 0x70e   : > { %3947 = vmatprep.subr.bf16.mxu1 %v3252_v55  ;;  %v2985_v54 = vld [vmem:[#allocation3 + $0x300] sm:$0xff]  ;;  %v3202_v55 = vunpack.c.l.s8.bf16 %v2935_v52  ;;  %v3196_v63 = vunpack.c.h.s8.bf16 %v2929_v26  ;;  %v3189_v4 = vunpack.c.l.s8.bf16 %v2929_v26  ;;  %v3020_v52 = vld [vmem:[#allocation3 + $0x418] sm:$0xff] }
 0x710   : > { %3907 = vmatpush1.bf16.msra.mxu0 %v3139_v0  ;;  %v3308_v0 = vunpack.c.h.s8.bf16 %v2985_v54 }
 0x711   : > { %3948 = vmatpush1.bf16.msra.mxu1 %v3251_v1  ;;  %3908 = vmatprep.subr.bf16.mxu0 %v3133_v2  ;;  %v2928_v1 = vld [vmem:[#allocation3 + $0x138] sm:$0xff] }
 0x712   : > { %3949 = vmatprep.subr.bf16.mxu1 %v3245_v51  ;;  %v2984_v2 = vld [vmem:[#allocation3 + $0x2f8] sm:$0xff]  ;;  %v3195_v51 = vunpack.c.h.s8.bf16 %v2928_v1 }
 0x713   : > { %v3307_v3 = vunpack.c.h.s8.bf16 %v2984_v2  ;;  %v3300_v22 = vunpack.c.l.s8.bf16 %v2984_v2  ;;  %v3075_v2 = vld [vmem:[#allocation3 + $0x5d0] sm:$0xff] }
 0x714   : > { %3909 = vmatpush1.bf16.msra.mxu0 %v3132_v47  ;;  %v3301_v47 = vunpack.c.l.s8.bf16 %v2985_v54 }
 0x715   : > { %3950 = vmatpush1.bf16.msra.mxu1 %v3244_v7  ;;  %3910 = vmatprep.subr.bf16.mxu0 %v3126_v23  ;;  %v2922_v7 = vld [vmem:[#allocation3 + $0x108] sm:$0xff] }
 0x716   : > { %3951 = vmatprep.subr.bf16.mxu1 %v3238_v28  ;;  %v2978_v23 = vld [vmem:[#allocation3 + $0x2c8] sm:$0xff]  ;;  %v3188_v28 = vunpack.c.l.s8.bf16 %v2928_v1  ;;  %v3182_v29 = vunpack.c.h.s8.bf16 %v2922_v7  ;;  %v3175_v9 = vunpack.c.l.s8.bf16 %v2922_v7  ;;  %v3019_v1 = vld [vmem:[#allocation3 + $0x410] sm:$0xff] }
 0x718   : > { %3911 = vmatpush1.bf16.msra.mxu0 %v3125_v39  ;;  %v3294_v39 = vunpack.c.h.s8.bf16 %v2978_v23 }
 0x719   : > { %3952 = vmatpush1.bf16.msra.mxu1 %v3237_v34  ;;  %3912 = vmatprep.subr.bf16.mxu0 %v3119_v50  ;;  %v2921_v34 = vld [vmem:[#allocation3 + $0x100] sm:$0xff] }
 0x71a   : > { %3953 = vmatprep.subr.bf16.mxu1 %v3231_v53  ;;  %v2977_v50 = vld [vmem:[#allocation3 + $0x2c0] sm:$0xff]  ;;  %v3181_v53 = vunpack.c.h.s8.bf16 %v2921_v34 }
 0x71b   : > { %v3293_v48 = vunpack.c.h.s8.bf16 %v2977_v50  ;;  %v3286_v36 = vunpack.c.l.s8.bf16 %v2977_v50 }
 0x71c   : > { %3913 = vmatpush1.bf16.msra.mxu0 %v3118_v11  ;;  %v3287_v11 = vunpack.c.l.s8.bf16 %v2978_v23  ;;  %v3377_v23 = vunpack.c.h.s8.bf16 %v3019_v1 }
 0x71d   : > { %3954 = vmatpush1.bf16.msra.mxu1 %v3230_v17  ;;  %3914 = vmatprep.subr.bf16.mxu0 %v3224_v19  ;;  %v3027_v17 = vld [vmem:[#allocation3 + $0x450] sm:$0xff] }
 0x71e   : > { %3955 = vmatprep.subr.bf16.mxu1 %v3336_v30  ;;  %v3083_v19 = vld [vmem:[#allocation3 + $0x610] sm:$0xff]  ;;  %v3174_v30 = vunpack.c.l.s8.bf16 %v2921_v34  ;;  %v3392_v38 = vunpack.c.h.s8.bf16 %v3027_v17  ;;  %v3483_v34 = vunpack.c.l.s8.bf16 %v3076_v44 }
 0x720   : > { %3915 = vmatpush2.bf16.msra.mxu0 %v3223_v40  ;;  %v3504_v40 = vunpack.c.h.s8.bf16 %v3083_v19 }
 0x721   : > { %3956 = vmatpush2.bf16.msra.mxu1 %v3335_v14  ;;  %3916 = vmatprep.subr.bf16.mxu0 %v3217_v58  ;;  %v3026_v14 = vld [vmem:[#allocation3 + $0x448] sm:$0xff] }
 0x722   : > { %3957 = vmatprep.subr.bf16.mxu1 %v3329_v59  ;;  %v3082_v58 = vld [vmem:[#allocation3 + $0x608] sm:$0xff]  ;;  %v6253_v59 = vld [vmem:[#allocation24] sm:$0xff]  ;;  %v3391_v18 = vunpack.c.h.s8.bf16 %v3026_v14 }
 0x723   : > { %v3503_v61 = vunpack.c.h.s8.bf16 %v3082_v58 }
 0x724   : > { %3917 = vmatpush2.bf16.msra.mxu0 %v3216_v41  ;;  %v3385_v41 = vunpack.c.l.s8.bf16 %v3027_v17  ;;  %v3482_v17 = vunpack.c.l.s8.bf16 %v3075_v2 }
 0x725   : > { %3958 = vmatpush2.bf16.msra.mxu1 %v3328_v13  ;;  %3918 = vmatprep.subr.bf16.mxu0 %v3210_v15  ;;  %v3497_v13 = vunpack.c.l.s8.bf16 %v3083_v19  ;;  %v3646_v15 = vadd.f32 %v6243_v5, %v6241_v37  ;;  %v3384_v37 = vunpack.c.l.s8.bf16 %v3026_v14  ;;  %v3496_v5 = vunpack.c.l.s8.bf16 %v3082_v58 }
 0x726   : > { %3959 = vmatprep.subr.bf16.mxu1 %v3322_v42  ;;  %v6257_v42 = vld [vmem:[#allocation25] sm:$0xff] }
 0x727   : > { %v4270_v54 = vrot.slane %v6257_v42, %v5951_v33 }
 0x728   : > { %3919 = vmatpush2.bf16.msra.mxu0 %v3209_v46 }
 0x729   : > { %3960 = vmatpush2.bf16.msra.mxu1 %v3321_v49  ;;  %3920 = vmatprep.subr.bf16.mxu0 %v3203_v56  ;;  %v4226_v56 = vrot.slane %v6253_v59, %v5951_v33  ;;  %v4274_v33 = vrot.slane %v6257_v42, %v5954_v35 }
 0x72a   : > { %3961 = vmatprep.subr.bf16.mxu1 %v3315_v25  ;;  %v3648_v25 = vadd.f32 %v6249_v10, %v6247_v12  ;;  %v4230_v12 = vrot.slane %v6253_v59, %v5954_v35 }
 0x72c   : > { %3921 = vmatpush2.bf16.msra.mxu0 %v3202_v55 }
 0x72d   : > { %3962 = vmatpush2.bf16.msra.mxu1 %v3314_v57  ;;  %3922 = vmatprep.subr.bf16.mxu0 %v3196_v63  ;;  %v3378_v63 = vunpack.c.h.s8.bf16 %v3020_v52 }
 0x72e   : > { %3963 = vmatprep.subr.bf16.mxu1 %v3308_v0  ;;  %v3490_v0 = vunpack.c.h.s8.bf16 %v3076_v44 }
 0x730   : > { %3923 = vmatpush2.bf16.msra.mxu0 %v3195_v51 }
 0x731   : > { %3964 = vmatpush2.bf16.msra.mxu1 %v3307_v3  ;;  %3924 = vmatprep.subr.bf16.mxu0 %v3189_v4 }
 0x732   : > { %3965 = vmatprep.subr.bf16.mxu1 %v3301_v47 }
 0x734   : > { %3925 = vmatpush2.bf16.msra.mxu0 %v3188_v28  ;;  %v3489_v28 = vunpack.c.h.s8.bf16 %v3075_v2 }
 0x735   : > { %3966 = vmatpush2.bf16.msra.mxu1 %v3300_v22  ;;  %3926 = vmatprep.subr.bf16.mxu0 %v3182_v29 }
 0x736   : > { %3967 = vmatprep.subr.bf16.mxu1 %v3294_v39  ;;  %v3371_v39 = vunpack.c.l.s8.bf16 %v3020_v52 }
 0x738   : > { %3927 = vmatpush2.bf16.msra.mxu0 %v3181_v53 }
 0x739   : > { %3968 = vmatpush2.bf16.msra.mxu1 %v3293_v48  ;;  %3928 = vmatprep.subr.bf16.mxu0 %v3175_v9  ;;  %v3013_v48 = vld [vmem:[#allocation3 + $0x3e0] sm:$0xff] }
 0x73a   : > { %3969 = vmatprep.subr.bf16.mxu1 %v3287_v11  ;;  %v3069_v9 = vld [vmem:[#allocation3 + $0x5a0] sm:$0xff]  ;;  %v3370_v11 = vunpack.c.l.s8.bf16 %v3019_v1  ;;  %v3364_v19 = vunpack.c.h.s8.bf16 %v3013_v48  ;;  %v3357_v58 = vunpack.c.l.s8.bf16 %v3013_v48 }
 0x73c   : > { %3929 = vmatpush2.bf16.msra.mxu0 %v3174_v30  ;;  %v3476_v30 = vunpack.c.h.s8.bf16 %v3069_v9 }
 0x73d   : > { %3970 = vmatpush2.bf16.msra.mxu1 %v3286_v36  ;;  %3980 = vmatprep.subr.bf16.mxu0 %v3392_v38  ;;  %v3012_v36 = vld [vmem:[#allocation3 + $0x3d8] sm:$0xff] }
 0x73e   : > { %4021 = vmatprep.subr.bf16.mxu1 %v3504_v40  ;;  %v3068_v38 = vld [vmem:[#allocation3 + $0x598] sm:$0xff]  ;;  %v3363_v40 = vunpack.c.h.s8.bf16 %v3012_v36 }
 0x73f   : > { %v3686_v46 = vpop.f32.mrf.mxu0  ;;  %3931 = vmatmul.mubr.bf16.vlgmr.msra.gmra.mxu0 %v6207_v24  ;;  %v3475_v14 = vunpack.c.h.s8.bf16 %v3068_v38 }
 0x740   : > { %v3727_v49 = vpop.f32.mrf.mxu1  ;;  %3972 = vmatmul.mubr.bf16.vlgmr.msra.gmra.mxu1 %v6211_v27  ;;  %v3687_v26 = vadd.f32 %v3686_v46, %v3646_v15  ;;  %3981 = vmatpush1.bf16.msra.mxu0 %v3391_v18  ;;  %v3469_v18 = vunpack.c.l.s8.bf16 %v3069_v9  ;;  %v3468_v15 = vunpack.c.l.s8.bf16 %v3068_v38  ;;  %v3005_v46 = vld [vmem:[#allocation3 + $0x3a0] sm:$0xff]  ;;  %v3040_v38 = vld [vmem:[#allocation3 + $0x4b8] sm:$0xff] }
 0x741   : > { %4022 = vmatpush1.bf16.msra.mxu1 %v3503_v61  ;;  %v3688_v55 = vpop.f32.mrf.mxu0  ;;  %3982 = vmatprep.subr.bf16.mxu0 %v3385_v41  ;;  %v3006_v61 = vld [vmem:[#allocation3 + $0x3a8] sm:$0xff] }
 0x742   : > { %v3729_v57 = vpop.f32.mrf.mxu1  ;;  %4023 = vmatprep.subr.bf16.mxu1 %v3497_v13  ;;  %v3728_v51 = vadd.f32 %v3727_v49, %v3687_v26  ;;  %v3689_v3 = vadd.f32 %v3688_v55, %v3648_v25  ;;  %4012 = vmatprep.mubr.bf16.mxu0 %v6215_v31  ;;  %v3062_v41 = vld [vmem:[#allocation3 + $0x568] sm:$0xff]  ;;  %v3356_v13 = vunpack.c.l.s8.bf16 %v3012_v36  ;;  %v3350_v52 = vunpack.c.h.s8.bf16 %v3006_v61  ;;  %v3061_v49 = vld [vmem:[#allocation3 + $0x560] sm:$0xff]  ;;  %v3111_v55 = vld [vmem:[#allocation3 + $0x6f0] sm:$0xff] }
 0x743   : > { %4053 = vmatprep.mubr.bf16.mxu1 %v6219_v8  ;;  %v3690_v10 = vpop.f32.mrf.mxu0  ;;  %v3462_v44 = vunpack.c.h.s8.bf16 %v3062_v41  ;;  %v3461_v25 = vunpack.c.h.s8.bf16 %v3061_v49  ;;  %v3560_v2 = vunpack.c.h.s8.bf16 %v3111_v55 }
 0x744   : > { %v3731_v4 = vpop.f32.mrf.mxu1  ;;  %v4258_v47 = vmul.f32 %v4226_v56, %v3728_v51  ;;  %v3730_v7 = vadd.f32 %v3729_v57, %v3689_v3  ;;  %3983 = vmatpush1.bf16.msra.mxu0 %v3384_v37  ;;  %v3349_v56 = vunpack.c.h.s8.bf16 %v3005_v46  ;;  %v3343_v37 = vunpack.c.l.s8.bf16 %v3006_v61  ;;  %v3054_v51 = vld [vmem:[#allocation3 + $0x528] sm:$0xff] }
 0x745   : > { %4024 = vmatpush1.bf16.msra.mxu1 %v3496_v5  ;;  %v3691_v22 = vpop.f32.mrf.mxu0  ;;  %3984 = vmatprep.subr.bf16.mxu0 %v3378_v63  ;;  %v3455_v5 = vunpack.c.l.s8.bf16 %v3062_v41  ;;  %v3342_v63 = vunpack.c.l.s8.bf16 %v3005_v46  ;;  %v3110_v3 = vld [vmem:[#allocation3 + $0x6e8] sm:$0xff]  ;;  %v3553_v4 = vunpack.c.l.s8.bf16 %v3111_v55  ;;  %v3000_v55 = vld [vmem:[#allocation3 + $0x378] sm:$0xff] }
 0x746   : > { %v3732_v29 = vpop.f32.mrf.mxu1  ;;  %4025 = vmatprep.subr.bf16.mxu1 %v3490_v0  ;;  %v4302_v50 = vadd.f32 %v4270_v54, %v4258_v47  ;;  %v4259_v53 = vmul.f32 %v4230_v12, %v3730_v7  ;;  %v3055_v54 = vld [vmem:[#allocation3 + $0x530] sm:$0xff]  ;;  %v3454_v0 = vunpack.c.l.s8.bf16 %v3061_v49  ;;  %v3447_v12 = vunpack.c.h.s8.bf16 %v3054_v51  ;;  %v3048_v47 = vld [vmem:[#allocation3 + $0x4f8] sm:$0xff]  ;;  %v3034_v41 = vld [vmem:[#allocation3 + $0x488] sm:$0xff] }
 0x747   : > { %v3448_v1 = vunpack.c.h.s8.bf16 %v3055_v54  ;;  %v3441_v10 = vunpack.c.l.s8.bf16 %v3055_v54  ;;  %v3104_v7 = vld [vmem:[#allocation3 + $0x6b8] sm:$0xff]  ;;  %v3434_v22 = vunpack.c.h.s8.bf16 %v3048_v47  ;;  %v3427_v48 = vunpack.c.l.s8.bf16 %v3048_v47  ;;  %v3033_v49 = vld [vmem:[#allocation3 + $0x480] sm:$0xff] }
 0x748   : > { %5092 = vtanh.f32 %v4302_v50  ;;  %v4303_v35 = vadd.f32 %v4274_v33, %v4259_v53  ;;  %3985 = vmatpush1.bf16.msra.mxu0 %v3377_v23  ;;  %v3559_v33 = vunpack.c.h.s8.bf16 %v3110_v3  ;;  %v3440_v23 = vunpack.c.l.s8.bf16 %v3054_v51  ;;  %v2944_v54 = vld [vmem:[#allocation3 + $0x1b8] sm:$0xff]  ;;  %v2993_v47 = vld [vmem:[#allocation3 + $0x340] sm:$0xff] }
 0x749   : > { %4026 = vmatpush1.bf16.msra.mxu1 %v3489_v28  ;;  %3986 = vmatprep.subr.bf16.mxu0 %v3371_v39  ;;  %v3552_v28 = vunpack.c.l.s8.bf16 %v3110_v3  ;;  %v3546_v29 = vunpack.c.h.s8.bf16 %v3104_v7  ;;  %v3047_v39 = vld [vmem:[#allocation3 + $0x4f0] sm:$0xff]  ;;  %v3539_v9 = vunpack.c.l.s8.bf16 %v3104_v7  ;;  %v2972_v51 = vld [vmem:[#allocation3 + $0x298] sm:$0xff] }
 0x74a   : > { %4027 = vmatprep.subr.bf16.mxu1 %v3483_v34  ;;  %5094 = vtanh.f32 %v4303_v35  ;;  %v3103_v34 = vld [vmem:[#allocation3 + $0x6b0] sm:$0xff]  ;;  %v3433_v50 = vunpack.c.h.s8.bf16 %v3047_v39  ;;  %v3041_v35 = vld [vmem:[#allocation3 + $0x4c0] sm:$0xff] }
 0x74b   : > { %v3545_v53 = vunpack.c.h.s8.bf16 %v3103_v34 }
 0x74c   : > { %3987 = vmatpush1.bf16.msra.mxu0 %v3370_v11  ;;  %v3097_v11 = vld [vmem:[#allocation3 + $0x680] sm:$0xff] }
 0x74d   : > { %4028 = vmatpush1.bf16.msra.mxu1 %v3482_v17  ;;  %3988 = vmatprep.subr.bf16.mxu0 %v3364_v19  ;;  %v3426_v17 = vunpack.c.l.s8.bf16 %v3047_v39  ;;  %v3538_v19 = vunpack.c.l.s8.bf16 %v3103_v34  ;;  %v3532_v36 = vunpack.c.h.s8.bf16 %v3097_v11  ;;  %v3525_v61 = vunpack.c.l.s8.bf16 %v3097_v11 }
 0x74e   : > { %4029 = vmatprep.subr.bf16.mxu1 %v3476_v30  ;;  %v3420_v30 = vunpack.c.h.s8.bf16 %v3041_v35 }
 0x750   : > { %3989 = vmatpush1.bf16.msra.mxu0 %v3363_v40  ;;  %v3096_v40 = vld [vmem:[#allocation3 + $0x678] sm:$0xff] }
 0x751   : > { %4030 = vmatpush1.bf16.msra.mxu1 %v3475_v14  ;;  %3990 = vmatprep.subr.bf16.mxu0 %v3357_v58  ;;  %v3419_v14 = vunpack.c.h.s8.bf16 %v3040_v38  ;;  %v3531_v58 = vunpack.c.h.s8.bf16 %v3096_v40 }
 0x752   : > { %4031 = vmatprep.subr.bf16.mxu1 %v3469_v18  ;;  %v3413_v18 = vunpack.c.l.s8.bf16 %v3041_v35 }
 0x754   : > { %3991 = vmatpush1.bf16.msra.mxu0 %v3356_v13  ;;  %v3090_v13 = vld [vmem:[#allocation3 + $0x648] sm:$0xff] }
 0x755   : > { %4032 = vmatpush1.bf16.msra.mxu1 %v3468_v15  ;;  %v5093_v26 = vpop.eup %5092  ;;  %3992 = vmatprep.subr.bf16.mxu0 %v3350_v52  ;;  %v3412_v15 = vunpack.c.l.s8.bf16 %v3040_v38  ;;  %v3524_v52 = vunpack.c.l.s8.bf16 %v3096_v40  ;;  %v3518_v46 = vunpack.c.h.s8.bf16 %v3090_v13  ;;  %v3316_v38 = vunpack.c.l.s8.bf16 %v2993_v47  ;;  %v2930_v40 = vld [vmem:[#allocation3 + $0x148] sm:$0xff] }
 0x756   : > { %4033 = vmatprep.subr.bf16.mxu1 %v3462_v44  ;;  %4316 = vst [vmem:[%s5972_s6] sm:$0xff] %v5093_v26  ;;  %v3406_v44 = vunpack.c.h.s8.bf16 %v3034_v41 }
 0x757   : > { %v5095_v57 = vpop.eup %5094 }
 0x758   : > { %4317 = vst [vmem:[%s5972_s6 + $0x8] sm:$0xff] %v5095_v57  ;;  %3993 = vmatpush1.bf16.msra.mxu0 %v3349_v56  ;;  %v3089_v56 = vld [vmem:[#allocation3 + $0x640] sm:$0xff]  ;;  %v3398_v57 = vunpack.c.l.s8.bf16 %v3033_v49 }
 0x759   : > { %4034 = vmatpush1.bf16.msra.mxu1 %v3461_v25  ;;  %3994 = vmatprep.subr.bf16.mxu0 %v3343_v37  ;;  %v3405_v25 = vunpack.c.h.s8.bf16 %v3033_v49  ;;  %v3517_v26 = vunpack.c.h.s8.bf16 %v3089_v56  ;;  %v3399_v37 = vunpack.c.l.s8.bf16 %v3034_v41  ;;  %v2958_v41 = vld [vmem:[#allocation3 + $0x228] sm:$0xff]  ;;  %v2979_v49 = vld [vmem:[#allocation3 + $0x2d0] sm:$0xff] }
 0x75a   : > { %4035 = vmatprep.subr.bf16.mxu1 %v3455_v5  ;;  %v3511_v5 = vunpack.c.l.s8.bf16 %v3090_v13 }
 0x75c   : > { %3995 = vmatpush1.bf16.msra.mxu0 %v3342_v63  ;;  %v3510_v63 = vunpack.c.l.s8.bf16 %v3089_v56 }
 0x75d   : > { %4036 = vmatpush1.bf16.msra.mxu1 %v3454_v0  ;;  %3996 = vmatprep.subr.bf16.mxu0 %v3448_v1  ;;  %v3225_v0 = vunpack.c.h.s8.bf16 %v2944_v54  ;;  %v3337_v1 = vunpack.c.h.s8.bf16 %v3000_v55 }
 0x75e   : > { %4037 = vmatprep.subr.bf16.mxu1 %v3560_v2  ;;  %v2916_v2 = vld [vmem:[#allocation3 + $0xd8] sm:$0xff] }
 0x75f   : > { %v3169_v3 = vunpack.c.h.s8.bf16 %v2916_v2 }
 0x760   : > { %3997 = vmatpush2.bf16.msra.mxu0 %v3447_v12  ;;  %v3281_v12 = vunpack.c.h.s8.bf16 %v2972_v51 }
 0x761   : > { %4038 = vmatpush2.bf16.msra.mxu1 %v3559_v33  ;;  %3998 = vmatprep.subr.bf16.mxu0 %v3441_v10  ;;  %v3218_v33 = vunpack.c.l.s8.bf16 %v2944_v54  ;;  %v3330_v10 = vunpack.c.l.s8.bf16 %v3000_v55  ;;  %v2951_v54 = vld [vmem:[#allocation3 + $0x1f0] sm:$0xff] }
 0x762   : > { %4039 = vmatprep.subr.bf16.mxu1 %v3553_v4  ;;  %v2937_v4 = vld [vmem:[#allocation3 + $0x180] sm:$0xff] }
 0x763   : > { %v3211_v34 = vunpack.c.h.s8.bf16 %v2937_v4 }
 0x764   : > { %3999 = vmatpush2.bf16.msra.mxu0 %v3440_v23 }
 0x765   : > { %4040 = vmatpush2.bf16.msra.mxu1 %v3552_v28  ;;  %4000 = vmatprep.subr.bf16.mxu0 %v3434_v22  ;;  %v3162_v28 = vunpack.c.l.s8.bf16 %v2916_v2  ;;  %v3274_v22 = vunpack.c.l.s8.bf16 %v2972_v51  ;;  %v3112_v2 = vld [vmem:[#allocation3 + $0x6f8] sm:$0xff] }
 0x766   : > { %4041 = vmatprep.subr.bf16.mxu1 %v3546_v29 }
 0x768   : > { %4001 = vmatpush2.bf16.msra.mxu0 %v3433_v50  ;;  %v3323_v50 = vunpack.c.h.s8.bf16 %v2993_v47 }
 0x769   : > { %4042 = vmatpush2.bf16.msra.mxu1 %v3545_v53  ;;  %4002 = vmatprep.subr.bf16.mxu0 %v3427_v48  ;;  %v2909_v53 = vld [vmem:[#allocation3 + $0xa0] sm:$0xff] }
 0x76a   : > { %4043 = vmatprep.subr.bf16.mxu1 %v3539_v9  ;;  %v2965_v48 = vld [vmem:[#allocation3 + $0x260] sm:$0xff]  ;;  %v3155_v11 = vunpack.c.h.s8.bf16 %v2909_v53 }
 0x76c   : > { %4003 = vmatpush2.bf16.msra.mxu0 %v3426_v17  ;;  %v3267_v17 = vunpack.c.h.s8.bf16 %v2965_v48 }
 0x76d   : > { %4044 = vmatpush2.bf16.msra.mxu1 %v3538_v19  ;;  %4004 = vmatprep.subr.bf16.mxu0 %v3420_v30 }
 0x76e   : > { %4045 = vmatprep.subr.bf16.mxu1 %v3532_v36  ;;  %v3204_v36 = vunpack.c.l.s8.bf16 %v2937_v4  ;;  %v3084_v4 = vld [vmem:[#allocation3 + $0x618] sm:$0xff] }
 0x770   : > { %4005 = vmatpush2.bf16.msra.mxu0 %v3419_v14  ;;  %v2986_v14 = vld [vmem:[#allocation3 + $0x308] sm:$0xff] }
 0x771   : > { %4046 = vmatpush2.bf16.msra.mxu1 %v3531_v58  ;;  %4006 = vmatprep.subr.bf16.mxu0 %v3413_v18  ;;  %v3148_v58 = vunpack.c.l.s8.bf16 %v2909_v53  ;;  %v3309_v18 = vunpack.c.h.s8.bf16 %v2986_v14  ;;  %v3105_v53 = vld [vmem:[#allocation3 + $0x6c0] sm:$0xff] }
 0x772   : > { %4047 = vmatprep.subr.bf16.mxu1 %v3525_v61  ;;  %v2902_v61 = vld [vmem:[#allocation3 + $0x68] sm:$0xff] }
 0x773   : > { %v3141_v13 = vunpack.c.h.s8.bf16 %v2902_v61  ;;  %v3134_v56 = vunpack.c.l.s8.bf16 %v2902_v61 }
 0x774   : > { %4007 = vmatpush2.bf16.msra.mxu0 %v3412_v15  ;;  %v3253_v15 = vunpack.c.h.s8.bf16 %v2958_v41 }
 0x775   : > { %4048 = vmatpush2.bf16.msra.mxu1 %v3524_v52  ;;  %4008 = vmatprep.subr.bf16.mxu0 %v3406_v44  ;;  %v3190_v52 = vunpack.c.l.s8.bf16 %v2930_v40  ;;  %v3302_v44 = vunpack.c.l.s8.bf16 %v2986_v14 }
 0x776   : > { %4049 = vmatprep.subr.bf16.mxu1 %v3518_v46  ;;  %v2923_v46 = vld [vmem:[#allocation3 + $0x110] sm:$0xff] }
 0x778   : > { %4009 = vmatpush2.bf16.msra.mxu0 %v3405_v25  ;;  %v3246_v25 = vunpack.c.l.s8.bf16 %v2958_v41 }
 0x779   : > { %4050 = vmatpush2.bf16.msra.mxu1 %v3517_v26  ;;  %4010 = vmatprep.subr.bf16.mxu0 %v3399_v37  ;;  %v3183_v26 = vunpack.c.h.s8.bf16 %v2923_v46  ;;  %v3295_v37 = vunpack.c.h.s8.bf16 %v2979_v49 }
 0x77a   : > { %4051 = vmatprep.subr.bf16.mxu1 %v3511_v5  ;;  %v2895_v5 = vld [vmem:[#allocation3 + $0x30] sm:$0xff] }
 0x77b   : > { %v3127_v55 = vunpack.c.h.s8.bf16 %v2895_v5  ;;  %v3120_v51 = vunpack.c.l.s8.bf16 %v2895_v5 }
 0x77c   : > { %4011 = vmatpush2.bf16.msra.mxu0 %v3398_v57  ;;  %v3239_v57 = vunpack.c.h.s8.bf16 %v2951_v54 }
 0x77d   : > { %4052 = vmatpush2.bf16.msra.mxu1 %v3510_v63  ;;  %4655 = vmatprep.subr.bf16.mxu0 %v3225_v0  ;;  %v3176_v63 = vunpack.c.l.s8.bf16 %v2923_v46  ;;  %v3288_v0 = vunpack.c.l.s8.bf16 %v2979_v49 }
 0x77e   : > { %4677 = vmatprep.subr.bf16.mxu1 %v3337_v1  ;;  %v3056_v1 = vld [vmem:[#allocation3 + $0x538] sm:$0xff] }
 0x77f   : > { %v6275_v7 = vpop.f32.mrf.mxu0  ;;  %4013 = vmatmul.mubr.bf16.vlgmr.msra.gmra.mxu0 %v6227_v20 }
 0x780   : > { %v6277_v23 = vpop.f32.mrf.mxu1  ;;  %4054 = vmatmul.mubr.bf16.vlgmr.msra.gmra.mxu1 %v6231_v21  ;;  %4656 = vmatpush3.bf16.msra.mxu0 %v3169_v3  ;;  %v3232_v3 = vunpack.c.l.s8.bf16 %v2951_v54 }
 0x781   : > { %4678 = vmatpush3.bf16.msra.mxu1 %v3281_v12  ;;  %v6281_v29 = vpop.f32.mrf.mxu0  ;;  %4657 = vmatprep.subr.bf16.mxu0 %v3218_v33  ;;  %v3449_v12 = vunpack.c.h.s8.bf16 %v3056_v1  ;;  %v3561_v33 = vunpack.c.h.s8.bf16 %v3112_v2 }
 0x782   : > { %v6283_v39 = vpop.f32.mrf.mxu1  ;;  %4679 = vmatprep.subr.bf16.mxu1 %v3330_v10  ;;  %4094 = vmatprep.mubr.bf16.mxu0 %v6199_v32  ;;  %v3260_v32 = vunpack.c.l.s8.bf16 %v2965_v48  ;;  %v3028_v10 = vld [vmem:[#allocation3 + $0x458] sm:$0xff] }
 0x783   : > { %4134 = vmatprep.mubr.bf16.mxu1 %v6201_v16  ;;  %v3772_v9 = vpop.f32.mrf.mxu0  ;;  %v3197_v16 = vunpack.c.h.s8.bf16 %v2930_v40  ;;  %v3393_v47 = vunpack.c.h.s8.bf16 %v3028_v10  ;;  %v3386_v48 = vunpack.c.l.s8.bf16 %v3028_v10  ;;  %v3098_v40 = vld [vmem:[#allocation3 + $0x688] sm:$0xff] }
 0x784   : > { %v3813_v35 = vpop.f32.mrf.mxu1  ;;  %4658 = vmatpush3.bf16.msra.mxu0 %v3162_v28  ;;  %v3505_v28 = vunpack.c.h.s8.bf16 %v3084_v4  ;;  %v3498_v9 = vunpack.c.l.s8.bf16 %v3084_v4 }
 0x785   : > { %4680 = vmatpush3.bf16.msra.mxu1 %v3274_v22  ;;  %v3773_v19 = vpop.f32.mrf.mxu0  ;;  %4659 = vmatprep.subr.bf16.mxu0 %v3211_v34  ;;  %v3442_v22 = vunpack.c.l.s8.bf16 %v3056_v1  ;;  %v3554_v34 = vunpack.c.l.s8.bf16 %v3112_v2 }
 0x786   : > { %v3814_v30 = vpop.f32.mrf.mxu1  ;;  %4681 = vmatprep.subr.bf16.mxu1 %v3323_v50  ;;  %v3049_v50 = vld [vmem:[#allocation3 + $0x500] sm:$0xff] }
 0x787   : > { %v3435_v35 = vunpack.c.h.s8.bf16 %v3049_v50  ;;  %v3077_v19 = vld [vmem:[#allocation3 + $0x5e0] sm:$0xff] }
 0x788   : > { %4660 = vmatpush3.bf16.msra.mxu0 %v3155_v11  ;;  %v3547_v11 = vunpack.c.h.s8.bf16 %v3105_v53 }
 0x789   : > { %4682 = vmatpush3.bf16.msra.mxu1 %v3267_v17  ;;  %4661 = vmatprep.subr.bf16.mxu0 %v3204_v36  ;;  %v3021_v17 = vld [vmem:[#allocation3 + $0x420] sm:$0xff]  ;;  %v3540_v36 = vunpack.c.l.s8.bf16 %v3105_v53 }
 0x78a   : > { %4683 = vmatprep.subr.bf16.mxu1 %v3316_v38  ;;  %v3379_v30 = vunpack.c.h.s8.bf16 %v3021_v17  ;;  %v3042_v38 = vld [vmem:[#allocation3 + $0x4c8] sm:$0xff]  ;;  %v3372_v14 = vunpack.c.l.s8.bf16 %v3021_v17 }
 0x78b   : > { %v3414_v41 = vunpack.c.l.s8.bf16 %v3042_v38 }
 0x78c   : > { %4662 = vmatpush3.bf16.msra.mxu0 %v3148_v58  ;;  %v3484_v58 = vunpack.c.l.s8.bf16 %v3077_v19 }
 0x78d   : > { %4684 = vmatpush3.bf16.msra.mxu1 %v3260_v32  ;;  %4663 = vmatprep.subr.bf16.mxu0 %v3197_v16  ;;  %v3421_v32 = vunpack.c.h.s8.bf16 %v3042_v38  ;;  %v3014_v16 = vld [vmem:[#allocation3 + $0x3e8] sm:$0xff] }
 0x78e   : > { %4685 = vmatprep.subr.bf16.mxu1 %v3309_v18  ;;  %v3365_v18 = vunpack.c.h.s8.bf16 %v3014_v16 }
 0x790   : > { %4664 = vmatpush3.bf16.msra.mxu0 %v3141_v13  ;;  %v3526_v13 = vunpack.c.l.s8.bf16 %v3098_v40 }
 0x791   : > { %4686 = vmatpush3.bf16.msra.mxu1 %v3253_v15  ;;  %4665 = vmatprep.subr.bf16.mxu0 %v3190_v52  ;;  %v3035_v15 = vld [vmem:[#allocation3 + $0x490] sm:$0xff] }
 0x792   : > { %4687 = vmatprep.subr.bf16.mxu1 %v3302_v44  ;;  %v3091_v52 = vld [vmem:[#allocation3 + $0x650] sm:$0xff]  ;;  %v3358_v44 = vunpack.c.l.s8.bf16 %v3014_v16  ;;  %v3407_v49 = vunpack.c.h.s8.bf16 %v3035_v15  ;;  %v3400_v54 = vunpack.c.l.s8.bf16 %v3035_v15 }
 0x794   : > { %4666 = vmatpush3.bf16.msra.mxu0 %v3134_v56  ;;  %v3519_v56 = vunpack.c.h.s8.bf16 %v3091_v52 }
 0x795   : > { %4688 = vmatpush3.bf16.msra.mxu1 %v3246_v25  ;;  %4667 = vmatprep.subr.bf16.mxu0 %v3183_v26  ;;  %v3007_v25 = vld [vmem:[#allocation3 + $0x3b0] sm:$0xff] }
 0x796   : > { %4689 = vmatprep.subr.bf16.mxu1 %v3295_v37  ;;  %v3063_v26 = vld [vmem:[#allocation3 + $0x570] sm:$0xff]  ;;  %v3351_v37 = vunpack.c.h.s8.bf16 %v3007_v25 }
 0x797   : > { %v3463_v5 = vunpack.c.h.s8.bf16 %v3063_v26 }
 0x798   : > { %4668 = vmatpush3.bf16.msra.mxu0 %v3127_v55  ;;  %v3512_v55 = vunpack.c.l.s8.bf16 %v3091_v52 }
 0x799   : > { %4690 = vmatpush3.bf16.msra.mxu1 %v3239_v57  ;;  %4669 = vmatprep.subr.bf16.mxu0 %v3176_v63  ;;  %v3344_v57 = vunpack.c.l.s8.bf16 %v3007_v25  ;;  %v3456_v63 = vunpack.c.l.s8.bf16 %v3063_v26 }
 0x79a   : > { %4691 = vmatprep.subr.bf16.mxu1 %v3288_v0  ;;  %v3810_v0 = vadd.f32 %v6277_v23, %v6275_v7 }
 0x79c   : > { %4670 = vmatpush3.bf16.msra.mxu0 %v3120_v51  ;;  %v3812_v51 = vadd.f32 %v6283_v39, %v6281_v29  ;;  %v4282_v39 = vrot.slane %v6257_v42, %v5992_v45 }
 0x79d   : > { %4692 = vmatpush3.bf16.msra.mxu1 %v3232_v3  ;;  %4699 = vmatprep.subr.bf16.mxu0 %v3449_v12  ;;  %v4234_v12 = vrot.slane %v6253_v59, %v5989_v43 }
 0x79e   : > { %4721 = vmatprep.subr.bf16.mxu1 %v3561_v33 }
 0x79f   : > { %4095 = vmatmul.mubr.bf16.vlgmr.msra.gmra.mxu0 %v6207_v24  ;;  %v3491_v24 = vunpack.c.h.s8.bf16 %v3077_v19 }
 0x7a0   : > { %4135 = vmatmul.mubr.bf16.vlgmr.msra.gmra.mxu1 %v6211_v27  ;;  %4700 = vmatpush3.bf16.msra.mxu0 %v3393_v47  ;;  %v3428_v27 = vunpack.c.l.s8.bf16 %v3049_v50  ;;  %v4278_v47 = vrot.slane %v6257_v42, %v5989_v43 }
 0x7a1   : > { %4722 = vmatpush3.bf16.msra.mxu1 %v3505_v28  ;;  %4701 = vmatprep.subr.bf16.mxu0 %v3442_v22 }
 0x7a2   : > { %4723 = vmatprep.subr.bf16.mxu1 %v3554_v34  ;;  %4174 = vmatprep.mubr.bf16.mxu0 %v6215_v31  ;;  %v3533_v31 = vunpack.c.h.s8.bf16 %v3098_v40 }
 0x7a3   : > { %4214 = vmatprep.mubr.bf16.mxu1 %v6219_v8  ;;  %v3070_v8 = vld [vmem:[#allocation3 + $0x5a8] sm:$0xff] }
 0x7a4   : > { %4702 = vmatpush3.bf16.msra.mxu0 %v3386_v48  ;;  %v3477_v61 = vunpack.c.h.s8.bf16 %v3070_v8  ;;  %v3470_v46 = vunpack.c.l.s8.bf16 %v3070_v8 }
 0x7a5   : > { %4724 = vmatpush3.bf16.msra.mxu1 %v3498_v9  ;;  %4703 = vmatprep.subr.bf16.mxu0 %v3435_v35 }
 0x7a6   : > { %4725 = vmatprep.subr.bf16.mxu1 %v3547_v11 }
 0x7a8   : > { %4704 = vmatpush3.bf16.msra.mxu0 %v3379_v30 }
 0x7a9   : > { %4726 = vmatpush3.bf16.msra.mxu1 %v3491_v24  ;;  %4705 = vmatprep.subr.bf16.mxu0 %v3428_v27 }
 0x7aa   : > { %4727 = vmatprep.subr.bf16.mxu1 %v3540_v36 }
 0x7ac   : > { %4706 = vmatpush3.bf16.msra.mxu0 %v3372_v14 }
 0x7ad   : > { %4728 = vmatpush3.bf16.msra.mxu1 %v3484_v58  ;;  %4707 = vmatprep.subr.bf16.mxu0 %v3421_v32  ;;  %v4242_v32 = vrot.slane %v6253_v59, %v6106_v60 }
 0x7ae   : > { %4729 = vmatprep.subr.bf16.mxu1 %v3533_v31 }
 0x7b0   : > { %4708 = vmatpush3.bf16.msra.mxu0 %v3365_v18  ;;  %v4286_v18 = vrot.slane %v6257_v42, %v6106_v60 }
 0x7b1   : > { %4730 = vmatpush3.bf16.msra.mxu1 %v3477_v61  ;;  %4709 = vmatprep.subr.bf16.mxu0 %v3414_v41  ;;  %v4246_v41 = vrot.slane %v6253_v59, %v6111_v62 }
 0x7b2   : > { %4731 = vmatprep.subr.bf16.mxu1 %v3526_v13 }
 0x7b4   : > { %4710 = vmatpush3.bf16.msra.mxu0 %v3358_v44 }
 0x7b5   : > { %4732 = vmatpush3.bf16.msra.mxu1 %v3470_v46  ;;  %4711 = vmatprep.subr.bf16.mxu0 %v3407_v49  ;;  %v4290_v46 = vrot.slane %v6257_v42, %v6111_v62 }
 0x7b6   : > { %4733 = vmatprep.subr.bf16.mxu1 %v3519_v56 }
 0x7b8   : > { %4712 = vmatpush3.bf16.msra.mxu0 %v3351_v37 }
 0x7b9   : > { %4734 = vmatpush3.bf16.msra.mxu1 %v3463_v5  ;;  %4713 = vmatprep.subr.bf16.mxu0 %v3400_v54 }
 0x7ba   : > { %4735 = vmatprep.subr.bf16.mxu1 %v3512_v55 }
 0x7bc   : > { %4714 = vmatpush3.bf16.msra.mxu0 %v3344_v57 }
 0x7bd   : > { %4736 = vmatpush3.bf16.msra.mxu1 %v3456_v63 }
 0x7bf   : > { %v3850_v1 = vpop.f32.mrf.mxu0  ;;  %4175 = vmatmul.mubr.bf16.vlgmr.msra.gmra.mxu0 %v6227_v20  ;;  %v4238_v20 = vrot.slane %v6253_v59, %v5992_v45 }
 0x7c0   : > { %v3891_v2 = vpop.f32.mrf.mxu1  ;;  %4215 = vmatmul.mubr.bf16.vlgmr.msra.gmra.mxu1 %v6231_v21  ;;  %v3851_v3 = vadd.f32 %v3850_v1, %v3810_v0 }
 0x7c1   : > { %v3852_v33 = vpop.f32.mrf.mxu0 }
 0x7c2   : > { %v3893_v10 = vpop.f32.mrf.mxu1  ;;  %v3892_v4 = vadd.f32 %v3891_v2, %v3851_v3  ;;  %v3853_v7 = vadd.f32 %v3852_v33, %v3812_v51 }
 0x7c3   : > { %v3854_v21 = vpop.f32.mrf.mxu0 }
 0x7c4   : > { %v3895_v23 = vpop.f32.mrf.mxu1  ;;  %v4260_v28 = vmul.f32 %v4234_v12, %v3892_v4  ;;  %v3894_v29 = vadd.f32 %v3893_v10, %v3853_v7 }
 0x7c5   : > { %v3855_v22 = vpop.f32.mrf.mxu0 }
 0x7c6   : > { %v3896_v34 = vpop.f32.mrf.mxu1  ;;  %v4304_v50 = vadd.f32 %v4278_v47, %v4260_v28  ;;  %v4261_v53 = vmul.f32 %v4238_v20, %v3894_v29  ;;  %v4250_v29 = vrot.slane %v6253_v59, %v6133_v6 }
 0x7c8   : > { %5096 = vtanh.f32 %v4304_v50  ;;  %v4305_v48 = vadd.f32 %v4282_v39, %v4261_v53  ;;  %v4294_v50 = vrot.slane %v6257_v42, %v6133_v6 }
 0x7ca   : > { %5098 = vtanh.f32 %v4305_v48 }
 0x7d5   : > { %v5097_v43 = vpop.eup %5096 }
 0x7d6   : > { %4318 = vst [vmem:[%s5972_s6 + $0x10] sm:$0xff] %v5097_v43 }
 0x7d7   : > { %v5099_v9 = vpop.eup %5098 }
 0x7d8   : > { %4319 = vst [vmem:[%s5972_s6 + $0x18] sm:$0xff] %v5099_v9 }
 0x7ff   : > { %v3932_v35 = vpop.f32.mrf.mxu0 }
 0x800   : > { %v3973_v11 = vpop.f32.mrf.mxu1 }
 0x801   : > { %v3934_v17 = vpop.f32.mrf.mxu0  ;;  %v3974_v45 = vadd.f32 %v3973_v11, %v3932_v35 }
 0x802   : > { %v3975_v19 = vpop.f32.mrf.mxu1 }
 0x803   : > { %v3936_v30 = vpop.f32.mrf.mxu0  ;;  %v3976_v14 = vadd.f32 %v3975_v19, %v3934_v17 }
 0x804   : > { %v3977_v24 = vpop.f32.mrf.mxu1 }
 0x805   : > { %v3937_v27 = vpop.f32.mrf.mxu0 }
 0x806   : > { %v3978_v36 = vpop.f32.mrf.mxu1 }
 0x83f   : > { %v4014_v38 = vpop.f32.mrf.mxu0 }
 0x840   : > { %v4055_v40 = vpop.f32.mrf.mxu1  ;;  %v4015_v58 = vadd.f32 %v4014_v38, %v3974_v45 }
 0x841   : > { %v4016_v31 = vpop.f32.mrf.mxu0 }
 0x842   : > { %v4057_v16 = vpop.f32.mrf.mxu1  ;;  %v4056_v8 = vadd.f32 %v4055_v40, %v4015_v58  ;;  %v4017_v61 = vadd.f32 %v4016_v31, %v3976_v14 }
 0x843   : > { %v4018_v13 = vpop.f32.mrf.mxu0 }
 0x844   : > { %v4059_v15 = vpop.f32.mrf.mxu1  ;;  %v4262_v52 = vmul.f32 %v4242_v32, %v4056_v8  ;;  %v4058_v44 = vadd.f32 %v4057_v16, %v4017_v61 }
 0x845   : > { %v4019_v49 = vpop.f32.mrf.mxu0 }
 0x846   : > { %v4060_v56 = vpop.f32.mrf.mxu1  ;;  %v4306_v25 = vadd.f32 %v4286_v18, %v4262_v52  ;;  %v4263_v26 = vmul.f32 %v4246_v41, %v4058_v44 }
 0x848   : > { %5100 = vtanh.f32 %v4306_v25  ;;  %v4307_v37 = vadd.f32 %v4290_v46, %v4263_v26 }
 0x84a   : > { %5102 = vtanh.f32 %v4307_v37 }
 0x855   : > { %v5101_v60 = vpop.eup %5100 }
 0x856   : > { %4320 = vst [vmem:[%s5972_s6 + $0x20] sm:$0xff] %v5101_v60 }
 0x857   : > { %v5103_v5 = vpop.eup %5102 }
 0x858   : > { %4321 = vst [vmem:[%s5972_s6 + $0x28] sm:$0xff] %v5103_v5 }
 0x85f   : > { %v4671_v54 = vpop.f32.mrf.mxu0 }
 0x860   : > { %v4693_v55 = vpop.f32.mrf.mxu1 }
 0x861   : > { %v4672_v57 = vpop.f32.mrf.mxu0 }
 0x862   : > { %v4694_v63 = vpop.f32.mrf.mxu1  ;;  %v4673_v62 = vadd.f32 %v4672_v57, %v4671_v54 }
 0x863   : > { %v4674_v0 = vpop.f32.mrf.mxu0  ;;  %v4695_v3 = vadd.f32 %v4694_v63, %v4693_v55 }
 0x864   : > { %v4696_v1 = vpop.f32.mrf.mxu1 }
 0x865   : > { %v4675_v2 = vpop.f32.mrf.mxu0  ;;  %v4137_v47 = vadd.f32 %v4695_v3, %v4673_v62 }
 0x866   : > { %v4697_v51 = vpop.f32.mrf.mxu1 }
 0x87f   : > { %v4715_v12 = vpop.f32.mrf.mxu0 }
 0x880   : > { %v4737_v33 = vpop.f32.mrf.mxu1 }
 0x881   : > { %v4716_v10 = vpop.f32.mrf.mxu0 }
 0x882   : > { %v4738_v4 = vpop.f32.mrf.mxu1  ;;  %v4717_v7 = vadd.f32 %v4716_v10, %v4715_v12 }
 0x883   : > { %v4718_v20 = vpop.f32.mrf.mxu0  ;;  %v4739_v28 = vadd.f32 %v4738_v4, %v4737_v33 }
 0x884   : > { %v4740_v21 = vpop.f32.mrf.mxu1  ;;  %v4177_v23 = vadd.f32 %v4717_v7, %v4137_v47 }
 0x885   : > { %v4719_v39 = vpop.f32.mrf.mxu0 }
 0x886   : > { %v4741_v22 = vpop.f32.mrf.mxu1  ;;  %v4217_v34 = vadd.f32 %v4739_v28, %v4177_v23 }
 0x888   : > { %v4264_v53 = vmul.f32 %v4250_v29, %v4217_v34 }
 0x88a   : > { %v4308_v48 = vadd.f32 %v4294_v50, %v4264_v53 }
 0x88c   : > { %5104 = vtanh.f32 %v4308_v48 }
 0x899   : > { %v5105_v43 = vpop.eup %5104 }
 0x89a   : > { %4322 = vst [vmem:[%s5972_s6 + $0x30] sm:$0xff] %v5105_v43 }
 0x89b PF: > { %p36_p9 = scmp.ge.s32.totalorder %s5859_s28, 4   ;;  %s6411_s0 = smov %s5582_s30 }
 0x89c   : > { %s6412_s30 = smov %s5586_s20  ;;  %s6413_s20 = smov %s5870_s16 }
 0x89d   : > { %s6414_s21 = smov %s5859_s28  ;;  %38 = sbr.rel (!%p36_p9) target bundleno = 22 (0x16), region = 203 }
 0x8a2   :  { %4344 = vsyncpa [#allocation6], 1 }
 0x8a3   :  { %4346 = vsyncpa [#allocation6 + $0x1], 1 }
 0x8a4   :  { %4347 = vsyncpa [#allocation8], 1 }
 0x8a5   :  { %4348 = vsyncpa [#allocation11], 1 }
 0x8a6   :  { %4349 = vsyncpa [#allocation14], 1 }
 0x8a7   :  { %4350 = vsyncpa [#allocation17], 1 }
 0x8a8   :  { %4351 = vsyncpa [#allocation20], 1 }
 0x8a9   :  { %4352 = vsyncpa [#allocation23], 1 }
 0x8aa   :  { %4353 = vsyncpa [#allocation26], 1 }
 0x8ab   :  { %4354 = vsyncmov [#allocation4] }
 0x8ae   :  { %s4355_s2 = vpop.sfrf %4354 }
 0x8af   :  { %p4650_p11 = scmp.ne.s32.totalorder %s4355_s2, 0 }
 0x8b1   :  { %4359 = shalt.err (%p4650_p11)  }
 0x8b2   :  { %4361 = vsyncmov [#allocation4 + $0x1] }
 0x8b5   :  { %s4362_s19 = vpop.sfrf %4361 }
 0x8b6   :  { %p4651_p3 = scmp.ne.s32.totalorder %s4362_s19, 0 }
 0x8b8   :  { %4366 = shalt.err (%p4651_p3)  }

</bundles_post_ra>
